<compile_context>
chip_gen: v6e
topology: v6e:2x2x1
jax: 0.10.0
libtpu: 0.0.40
codegen_flags: <defaults>
</compile_context>

<pallas_src>
import functools

import jax
import jax.numpy as jnp
from jax.experimental import pallas as pl
from jax.experimental.pallas import tpu as pltpu


def _round_up(x, m):
    return ((x + m - 1) // m) * m


def gru_kernel(x_ref, wih_ref, whh_ref, bih_ref, bhn_ref,
               out_ref, hfin_ref, h_ref, gi_ref,
               *, seq_len, chunk_len, guard_tail, unroll_threshold):
    """One grid step == one (batch block, time chunk) of the GRU recurrence.

    x_ref   : (Tc*Bb, Ep)   bf16  time-major inputs for this chunk / batch block
    wih_ref : (Ep, 3*Hp)    bf16  W_ih^T, per-gate padded  [r | z | n]
    whh_ref : (Hp, 3*Hp)    bf16  W_hh^T, per-gate padded
    bih_ref : (1, 3*Hp)     f32   b_ih with b_hh(r,z) folded in
    bhn_ref : (1, Hp)       f32   b_hh(n) (stays inside the r*(...) term)
    out_ref : (Tc*Bb, Hp)   bf16  hidden states for this chunk (time-major)
    hfin_ref: (Bb, Hp)      f32   final hidden state (last chunk wins)
    h_ref   : (Bb, Hp)      f32   carried hidden state (VMEM scratch)
    gi_ref  : (Tc*Bb, 3*Hp) bf16  hoisted input-projection scratch
    """
    c = pl.program_id(1)                      # time-chunk index (serial axis)

    @pl.when(c == 0)
    def _():
        # PyTorch nn.GRU default initial hidden state is zeros (per batch block).
        h_ref[...] = jnp.zeros_like(h_ref)

    bp, hp = h_ref.shape
    tc = chunk_len

    # (1) Hoisted, time-independent input projection: one (Tc*Bb, Ep) x (Ep, 3Hp) MXU
    #     matmul per chunk, bf16 operands / f32 accumulation, biases pre-folded,
    #     stored bf16 to halve the largest scratch buffer.
    gi_ref[...] = (
        jnp.dot(x_ref[...], wih_ref[...], preferred_element_type=jnp.float32)
        + bih_ref[...]
    ).astype(gi_ref.dtype)

    whh = whh_ref[...]                                        # (Hp, 3*Hp) bf16
    w_r, w_z, w_n = whh[:, :hp], whh[:, hp:2 * hp], whh[:, 2 * hp:]
    # n-gate recurrent bias: broadcast hoisted out of the loop (JAX does not CSE
    # broadcast_in_dim, so doing this per-step would re-emit it every iteration).
    bhn = jnp.broadcast_to(bhn_ref[...], (bp, hp)).astype(jnp.float32)

    t0 = c * tc

    def step(t, h):
        row = t * bp
        if not isinstance(t, int):                            # dynamic (fori) index
            row = pl.multiple_of(row, bp)
        gi = gi_ref[pl.ds(row, bp), :]                        # (Bb, 3*Hp) bf16
        h_b = h.astype(whh.dtype)
        # Per-gate recurrent matmuls interleaved with the gate math: only ~one
        # (Bb, Hp) f32 tile live at a time (keeps vreg pressure ~1/3 at large Hp).
        gh_r = jnp.dot(h_b, w_r, preferred_element_type=jnp.float32)
        r = jax.nn.sigmoid(gi[:, :hp] + gh_r)
        gh_z = jnp.dot(h_b, w_z, preferred_element_type=jnp.float32)
        z = jax.nn.sigmoid(gi[:, hp:2 * hp] + gh_z)
        gh_n = jnp.dot(h_b, w_n, preferred_element_type=jnp.float32)
        n = jnp.tanh(gi[:, 2 * hp:] + r * (gh_n + bhn))
        h_new = n + z * (h - n)                               # == (1-z)*n + z*h
        if guard_tail:
            # Padded tail steps: freeze h so the final hidden state stays correct.
            h_new = jnp.where(t0 + t < seq_len, h_new, h)
        out_ref[pl.ds(row, bp), :] = h_new.astype(out_ref.dtype)
        return h_new

    h = h_ref[...]
    if tc <= unroll_threshold:
        for t in range(tc):                                   # small chunk: full unroll
            h = step(t, h)
    else:
        # Bounded unroll keeps LLO visibility while capping vreg pressure / code size.
        h = jax.lax.fori_loop(0, tc, step, h, unroll=4)

    h_ref[...] = h                                            # carry to next time chunk
    hfin_ref[...] = h                                         # f32 final hidden state


def gru_linear_forward(x_tbe, w_ih, w_hh, b_ih, b_hh, w_lin, b_lin,
                       *, time_chunk=None, batch_blocks=1):
    """x_tbe: (T, B, E) float32 time-major.  Returns (out (B,1), gru_out (B,T,H))."""
    T, B, E = x_tbe.shape
    H = w_hh.shape[1]

    n_bb = max(int(batch_blocks), 1)            # >1 only pays off on multi-TC (v7x)
    Bp = _round_up(max(B, 8 * n_bb), 8 * n_bb)  # full sublanes, divisible by blocks
    Bb = Bp // n_bb
    Ep = _round_up(E, 128)                      # full lanes
    Hp = _round_up(H, 128)                      # lane-dense hidden dim (per gate)

    # --- VMEM budgeting: per-generation Tc + explicit vmem limit --------------------
    vmem_cap = 64 << 20
    try:
        vmem_cap = int(pltpu.get_tpu_info().vmem_capacity_bytes)
    except Exception:
        pass

    def footprint(tc):
        x_chunk = 2 * tc * Bb * Ep * 2                  # bf16 input, double-buffered
        out_chunk = 2 * tc * Bb * Hp * 2                # bf16 output, double-buffered
        hfin = 2 * Bb * Hp * 4                          # f32 final-h output
        weights = (Ep + Hp) * 3 * Hp * 2 + (3 * Hp + Hp) * 4   # single-buffered
        gi = tc * Bb * 3 * Hp * 2                       # bf16 scratch
        hscr = Bb * Hp * 4                              # f32 carry scratch
        return x_chunk + out_chunk + hfin + weights + gi + hscr

    if time_chunk is not None:
        Tc = max(1, int(time_chunk))
    else:
        Tc = min(T, 64)
        while Tc > 1 and footprint(Tc) > int(0.7 * vmem_cap):
            Tc //= 2
    Tp = _round_up(T, Tc)
    n_chunks = Tp // Tc
    vmem_limit = int(min(0.9 * vmem_cap, max(2 * footprint(Tc), 32 << 20)))

    # --- Activations: pad, cast bf16, time-major, batch-block-leading layout --------
    x_pad = jnp.pad(x_tbe.astype(jnp.bfloat16),
                    ((0, Tp - T), (0, Bp - B), (0, Ep - E)))
    x_blk = (x_pad.reshape(Tp, n_bb, Bb, Ep)
                  .transpose(1, 0, 2, 3)
                  .reshape(n_bb, Tp * Bb, Ep))

    # --- Weights: transpose, pad *each gate* to Hp (lane-aligned r/z/n slices), bf16.
    def prep_w(w, rows, rows_p):                        # (3H, rows) -> (rows_p, 3*Hp)
        gates = [jnp.pad(w[g * H:(g + 1) * H, :].T,
                         ((0, rows_p - rows), (0, Hp - H))) for g in range(3)]
        return jnp.concatenate(gates, axis=1).astype(jnp.bfloat16)

    wih_t = prep_w(w_ih, E, Ep)                         # (Ep, 3*Hp)
    whh_t = prep_w(w_hh, H, Hp)                         # (Hp, 3*Hp)

    # Fold b_hh(r,z) into b_ih (PyTorch adds them anyway); b_hh(n) stays separate
    # because it multiplies by r inside the n gate.
    def padH(v):
        return jnp.pad(v, (0, Hp - H))

    bih = jnp.concatenate([padH(b_ih[:H] + b_hh[:H]),
                           padH(b_ih[H:2 * H] + b_hh[H:2 * H]),
                           padH(b_ih[2 * H:])]).reshape(1, 3 * Hp).astype(jnp.float32)
    bhn = padH(b_hh[2 * H:]).reshape(1, Hp).astype(jnp.float32)

    kernel = functools.partial(gru_kernel, seq_len=T, chunk_len=Tc,
                               guard_tail=(Tp != T), unroll_threshold=8)

    def build(single_buffer_weights):
        def const_spec(shape):
            if single_buffer_weights:
                # Constant index_map => single-buffer the resident weights/biases.
                return pl.BlockSpec(shape, lambda j, i: (0, 0),
                                    pipeline_mode=pl.Buffered(1))
            return pl.BlockSpec(shape, lambda j, i: (0, 0))

        grid_spec = pltpu.PrefetchScalarGridSpec(
            num_scalar_prefetch=0,
            grid=(n_bb, n_chunks),                      # (batch parallel, time serial)
            in_specs=[
                pl.BlockSpec((None, Tc * Bb, Ep), lambda j, i: (j, i, 0)),   # x chunk
                const_spec((Ep, 3 * Hp)),                                    # W_ih^T
                const_spec((Hp, 3 * Hp)),                                    # W_hh^T
                const_spec((1, 3 * Hp)),                                     # b_ih fold
                const_spec((1, Hp)),                                         # b_hh(n)
            ],
            out_specs=(
                pl.BlockSpec((None, Tc * Bb, Hp), lambda j, i: (j, i, 0)),   # states
                pl.BlockSpec((None, Bb, Hp), lambda j, i: (j, 0, 0)),        # final h
            ),
            scratch_shapes=[
                pltpu.VMEM((Bb, Hp), jnp.float32),                  # carried hidden
                pltpu.VMEM((Tc * Bb, 3 * Hp), jnp.bfloat16),        # hoisted input proj
            ],
        )
        return pl.pallas_call(
            kernel,
            out_shape=(jax.ShapeDtypeStruct((n_bb, Tp * Bb, Hp), jnp.bfloat16),
                       jax.ShapeDtypeStruct((n_bb, Bb, Hp), jnp.float32)),
            grid_spec=grid_spec,
            compiler_params=pltpu.CompilerParams(
                dimension_semantics=("parallel", "arbitrary"),
                vmem_limit_bytes=vmem_limit),
        )

    try:
        gru_blk, h_fin = build(True)(x_blk, wih_t, whh_t, bih, bhn)
    except Exception:
        # pl.Buffered(1) rejected on this jax/libtpu -> default double-buffering.
        gru_blk, h_fin = build(False)(x_blk, wih_t, whh_t, bih, bhn)

    gru_tbh = (gru_blk.reshape(n_bb, Tp, Bb, Hp)
                      .transpose(1, 0, 2, 3)
                      .reshape(Tp, Bp, Hp))
    gru_out = jnp.transpose(gru_tbh[:T, :B, :H], (1, 0, 2)).astype(jnp.float32)

    h_last = h_fin.reshape(Bp, Hp)[:B, :H]              # f32 == hidden_state.squeeze(0)
    # Final Linear (H -> 1): negligible single-column matmul, done in XLA per review.
    out = h_last @ w_lin.T + b_lin
    return out, gru_out


class VanillaGRUModelPallas:
    """Embedding -> Dropout(eval: identity) -> GRU(batch_first) -> Linear."""

    def __init__(self, embedding_size, hidden_size, vocab_size, key, dropout_rate=0.0):
        ks = jax.random.split(key, 7)
        E, H, V = embedding_size, hidden_size, vocab_size
        s = 1.0 / jnp.sqrt(H)
        self.embedding = jax.random.normal(ks[0], (V, E), jnp.float32)
        self.w_ih = jax.random.uniform(ks[1], (3 * H, E), jnp.float32, -s, s)
        self.w_hh = jax.random.uniform(ks[2], (3 * H, H), jnp.float32, -s, s)
        self.b_ih = jax.random.uniform(ks[3], (3 * H,), jnp.float32, -s, s)
        self.b_hh = jax.random.uniform(ks[4], (3 * H,), jnp.float32, -s, s)
        self.w_lin = jax.random.uniform(ks[5], (1, H), jnp.float32, -s, s)
        self.b_lin = jax.random.uniform(ks[6], (1,), jnp.float32, -s, s)

    def __call__(self, token_ids, *, time_chunk=None, batch_blocks=1):
        # Gather directly time-major (transpose the tiny index array, not activations).
        emb_tbe = jnp.take(self.embedding, token_ids.T, axis=0)   # (T, B, E)
        # Dropout is identity at inference (PyTorch eval mode).
        return gru_linear_forward(
            emb_tbe, self.w_ih, self.w_hh, self.b_ih, self.b_hh,
            self.w_lin, self.b_lin,
            time_chunk=time_chunk, batch_blocks=batch_blocks)


def _reference(model, token_ids):
    """Pure-JAX reference mirroring the kernel arithmetic exactly
    (bf16 matmul operands / f32 accum, bf16 gi storage, bf16 gru_out storage)."""
    emb = jnp.take(model.embedding, token_ids, axis=0)            # (B, T, E)
    B, T, _ = emb.shape
    H = model.w_hh.shape[1]
    wih = model.w_ih.astype(jnp.bfloat16)
    whh = model.w_hh.astype(jnp.bfloat16)
    b_fold = jnp.concatenate([model.b_ih[:2 * H] + model.b_hh[:2 * H],
                              model.b_ih[2 * H:]])
    b_hn = model.b_hh[2 * H:]
    h = jnp.zeros((B, H), jnp.float32)
    outs = []
    for t in range(T):
        x_t = emb[:, t, :].astype(jnp.bfloat16)
        gi = (jnp.dot(x_t, wih.T, preferred_element_type=jnp.float32)
              + b_fold).astype(jnp.bfloat16)
        h_b = h.astype(jnp.bfloat16)
        gh_r = jnp.dot(h_b, whh[:H].T, preferred_element_type=jnp.float32)
        r = jax.nn.sigmoid(gi[:, :H].astype(jnp.float32) + gh_r)
        gh_z = jnp.dot(h_b, whh[H:2 * H].T, preferred_element_type=jnp.float32)
        z = jax.nn.sigmoid(gi[:, H:2 * H].astype(jnp.float32) + gh_z)
        gh_n = jnp.dot(h_b, whh[2 * H:].T, preferred_element_type=jnp.float32)
        n = jnp.tanh(gi[:, 2 * H:].astype(jnp.float32) + r * (gh_n + b_hn))
        h = n + z * (h - n)
        outs.append(h.astype(jnp.bfloat16))
    gru_out = jnp.stack(outs, axis=1).astype(jnp.float32)         # (B, T, H)
    out = h @ model.w_lin.T + model.b_lin
    return out, gru_out


if __name__ == "__main__":
    key = jax.random.PRNGKey(0)
    k_param, k_data1, k_data2 = jax.random.split(key, 3)

    VOCAB, EMB, HID = 50, 16, 32
    model = VanillaGRUModelPallas(EMB, HID, VOCAB, k_param)

    # Case 1: small shapes, T % Tc == 0, single batch block, fully-unrolled time loop.
    B1, T1 = 2, 8
    ids1 = jax.random.randint(k_data1, (B1, T1), 0, VOCAB, dtype=jnp.int32)
    out1, gru1 = model(ids1)
    jax.block_until_ready((out1, gru1))
    assert out1.shape == (B1, 1) and gru1.shape == (B1, T1, HID)
    r_out1, r_gru1 = _reference(model, ids1)
    assert jnp.allclose(gru1, r_gru1, atol=4e-3, rtol=4e-3), \
        float(jnp.max(jnp.abs(gru1 - r_gru1)))
    assert jnp.allclose(out1, r_out1, atol=2e-3, rtol=2e-3), \
        float(jnp.max(jnp.abs(out1 - r_out1)))

    # Case 2: exercises the batch-block grid axis (parallel on v7x), the fori_loop
    # time path, and the padded-tail guard (T % Tc != 0).
    B2, T2 = 20, 37
    ids2 = jax.random.randint(k_data2, (B2, T2), 0, VOCAB, dtype=jnp.int32)
    out2, gru2 = model(ids2, time_chunk=16, batch_blocks=3)
    jax.block_until_ready((out2, gru2))
    assert out2.shape == (B2, 1) and gru2.shape == (B2, T2, HID)
    r_out2, r_gru2 = _reference(model, ids2)
    assert jnp.allclose(gru2, r_gru2, atol=4e-3, rtol=4e-3), \
        float(jnp.max(jnp.abs(gru2 - r_gru2)))
    assert jnp.allclose(out2, r_out2, atol=2e-3, rtol=2e-3), \
        float(jnp.max(jnp.abs(out2 - r_out2)))

    print("KERNEL_OK")
</pallas_src>

<mosaic_0001>
module attributes {stable_mosaic.version = 11 : i64} {
  func.func @gru_kernel(%arg0: i32, %arg1: i32, %arg2: memref<1x64x128xbf16, #tpu.memory_space<vmem>>, %arg3: memref<128x384xbf16, #tpu.memory_space<vmem>>, %arg4: memref<128x384xbf16, #tpu.memory_space<vmem>>, %arg5: memref<1x384xf32, #tpu.memory_space<vmem>>, %arg6: memref<1x128xf32, #tpu.memory_space<vmem>>, %arg7: memref<1x64x128xbf16, #tpu.memory_space<vmem>>, %arg8: memref<1x8x128xf32, #tpu.memory_space<vmem>>, %arg9: memref<8x128xf32, #tpu.memory_space<vmem>>, %arg10: memref<64x384xbf16, #tpu.memory_space<vmem>>) attributes {dimension_semantics = [#tpu.dimension_semantics<parallel>, #tpu.dimension_semantics<arbitrary>], iteration_bounds = array<i64: 1, 1>, scalar_prefetch = 0 : i64, scratch_operands = 2 : i64, tpu.core_type = #tpu.core_type<tc>, window_params = [{transform_indices = @transform_0, window_bounds = array<i64: 1, 64, 128>}, {pipeline_mode = #tpu.pipeline_mode<synchronous>, transform_indices = @transform_1, window_bounds = array<i64: 128, 384>}, {pipeline_mode = #tpu.pipeline_mode<synchronous>, transform_indices = @transform_2, window_bounds = array<i64: 128, 384>}, {pipeline_mode = #tpu.pipeline_mode<synchronous>, transform_indices = @transform_3, window_bounds = array<i64: 1, 384>}, {pipeline_mode = #tpu.pipeline_mode<synchronous>, transform_indices = @transform_4, window_bounds = array<i64: 1, 128>}, {transform_indices = @transform_5, window_bounds = array<i64: 1, 64, 128>}, {transform_indices = @transform_6, window_bounds = array<i64: 1, 8, 128>}]} {
    %c0_i32 = arith.constant 0 : i32
    %0 = arith.cmpi eq, %arg1, %c0_i32 : i32
    %1 = arith.extui %0 : i1 to i32
    %c0_i32_0 = arith.constant 0 : i32
    %2 = arith.cmpi ne, %1, %c0_i32_0 : i32
    scf.if %2 {
      %cst_93 = arith.constant 0.000000e+00 : f32
      %296 = vector.broadcast %cst_93 : f32 to vector<8x128xf32>
      %c0_94 = arith.constant 0 : index
      %c0_95 = arith.constant 0 : index
      %297 = vector.load %arg9[%c0_94, %c0_95] : memref<8x128xf32, #tpu.memory_space<vmem>>, vector<8x128xf32>
      tpu.vector_store %arg9[%c0_94, %c0_95], %296 {strides = array<i32>} : memref<8x128xf32, #tpu.memory_space<vmem>>, vector<8x128xf32>,
    } else {
    }
    %c0 = arith.constant 0 : index
    %c0_1 = arith.constant 0 : index
    %c0_2 = arith.constant 0 : index
    %3 = vector.load %arg2[%c0, %c0_1, %c0_2] : memref<1x64x128xbf16, #tpu.memory_space<vmem>>, vector<1x64x128xbf16>
    %4 = vector.shape_cast %3 : vector<1x64x128xbf16> to vector<64x128xbf16>
    %c0_3 = arith.constant 0 : index
    %c0_4 = arith.constant 0 : index
    %5 = vector.load %arg3[%c0_3, %c0_4] : memref<128x384xbf16, #tpu.memory_space<vmem>>, vector<128x384xbf16>
    %cst = arith.constant dense<0.000000e+00> : vector<64x384xf32>
    %6 = tpu.matmul %4, %5, %cst {dimension_numbers = #tpu.dot_dimension_numbers<[1], [0], [0], [1], [0, 0, 1, 1], [], []>} : vector<64x128xbf16>, vector<128x384xbf16>, vector<64x384xf32> -> vector<64x384xf32>
    %c0_5 = arith.constant 0 : index
    %c0_6 = arith.constant 0 : index
    %7 = vector.load %arg5[%c0_5, %c0_6] : memref<1x384xf32, #tpu.memory_space<vmem>>, vector<1x384xf32>
    %8 = vector.broadcast %7 : vector<1x384xf32> to vector<64x384xf32>
    %9 = arith.addf %6, %8 : vector<64x384xf32>
    %10 = arith.truncf %9 : vector<64x384xf32> to vector<64x384xbf16>
    %c0_7 = arith.constant 0 : index
    %c0_8 = arith.constant 0 : index
    %11 = vector.load %arg10[%c0_7, %c0_8] : memref<64x384xbf16, #tpu.memory_space<vmem>>, vector<64x384xbf16>
    tpu.vector_store %arg10[%c0_7, %c0_8], %10 {strides = array<i32>} : memref<64x384xbf16, #tpu.memory_space<vmem>>, vector<64x384xbf16>,
    %c0_9 = arith.constant 0 : index
    %c0_10 = arith.constant 0 : index
    %12 = vector.load %arg4[%c0_9, %c0_10] : memref<128x384xbf16, #tpu.memory_space<vmem>>, vector<128x384xbf16>
    %13 = vector.extract_strided_slice %12 {offsets = [0, 0], sizes = [128, 128], strides = [1, 1]} : vector<128x384xbf16> to vector<128x128xbf16>
    %14 = vector.extract_strided_slice %12 {offsets = [0, 128], sizes = [128, 128], strides = [1, 1]} : vector<128x384xbf16> to vector<128x128xbf16>
    %15 = vector.extract_strided_slice %12 {offsets = [0, 256], sizes = [128, 128], strides = [1, 1]} : vector<128x384xbf16> to vector<128x128xbf16>
    %c0_11 = arith.constant 0 : index
    %c0_12 = arith.constant 0 : index
    %16 = vector.load %arg6[%c0_11, %c0_12] : memref<1x128xf32, #tpu.memory_space<vmem>>, vector<1x128xf32>
    %17 = vector.shape_cast %16 : vector<1x128xf32> to vector<1x128xf32>
    %18 = vector.broadcast %17 : vector<1x128xf32> to vector<8x128xf32>
    %c0_13 = arith.constant 0 : index
    %c0_14 = arith.constant 0 : index
    %19 = vector.load %arg9[%c0_13, %c0_14] : memref<8x128xf32, #tpu.memory_space<vmem>>, vector<8x128xf32>
    %c0_15 = arith.constant 0 : index
    %c0_16 = arith.constant 0 : index
    %20 = vector.load %arg10[%c0_15, %c0_16] : memref<64x384xbf16, #tpu.memory_space<vmem>>, vector<8x384xbf16>
    %21 = arith.truncf %19 : vector<8x128xf32> to vector<8x128xbf16>
    %cst_17 = arith.constant dense<0.000000e+00> : vector<8x128xf32>
    %22 = tpu.matmul %21, %13, %cst_17 {dimension_numbers = #tpu.dot_dimension_numbers<[1], [0], [0], [1], [0, 0, 1, 1], [], []>} : vector<8x128xbf16>, vector<128x128xbf16>, vector<8x128xf32> -> vector<8x128xf32>
    %23 = vector.extract_strided_slice %20 {offsets = [0, 0], sizes = [8, 128], strides = [1, 1]} : vector<8x384xbf16> to vector<8x128xbf16>
    %24 = arith.extf %23 : vector<8x128xbf16> to vector<8x128xf32>
    %25 = arith.addf %24, %22 : vector<8x128xf32>
    %26 = arith.negf %25 : vector<8x128xf32>
    %27 = math.exp %26 : vector<8x128xf32>
    %cst_18 = arith.constant 1.000000e+00 : f32
    %28 = vector.broadcast %cst_18 : f32 to vector<8x128xf32>
    %29 = arith.addf %28, %27 : vector<8x128xf32>
    %30 = arith.divf %28, %29 : vector<8x128xf32>
    %cst_19 = arith.constant dense<0.000000e+00> : vector<8x128xf32>
    %31 = tpu.matmul %21, %14, %cst_19 {dimension_numbers = #tpu.dot_dimension_numbers<[1], [0], [0], [1], [0, 0, 1, 1], [], []>} : vector<8x128xbf16>, vector<128x128xbf16>, vector<8x128xf32> -> vector<8x128xf32>
    %32 = vector.extract_strided_slice %20 {offsets = [0, 128], sizes = [8, 128], strides = [1, 1]} : vector<8x384xbf16> to vector<8x128xbf16>
    %33 = arith.extf %32 : vector<8x128xbf16> to vector<8x128xf32>
    %34 = arith.addf %33, %31 : vector<8x128xf32>
    %35 = arith.negf %34 : vector<8x128xf32>
    %36 = math.exp %35 : vector<8x128xf32>
    %cst_20 = arith.constant 1.000000e+00 : f32
    %37 = vector.broadcast %cst_20 : f32 to vector<8x128xf32>
    %38 = arith.addf %37, %36 : vector<8x128xf32>
    %39 = arith.divf %37, %38 : vector<8x128xf32>
    %cst_21 = arith.constant dense<0.000000e+00> : vector<8x128xf32>
    %40 = tpu.matmul %21, %15, %cst_21 {dimension_numbers = #tpu.dot_dimension_numbers<[1], [0], [0], [1], [0, 0, 1, 1], [], []>} : vector<8x128xbf16>, vector<128x128xbf16>, vector<8x128xf32> -> vector<8x128xf32>
    %41 = vector.extract_strided_slice %20 {offsets = [0, 256], sizes = [8, 128], strides = [1, 1]} : vector<8x384xbf16> to vector<8x128xbf16>
    %42 = arith.addf %40, %18 : vector<8x128xf32>
    %43 = arith.mulf %30, %42 : vector<8x128xf32>
    %44 = arith.extf %41 : vector<8x128xbf16> to vector<8x128xf32>
    %45 = arith.addf %44, %43 : vector<8x128xf32>
    %46 = math.tanh %45 : vector<8x128xf32>
    %47 = arith.subf %19, %46 : vector<8x128xf32>
    %48 = arith.mulf %39, %47 : vector<8x128xf32>
    %49 = arith.addf %46, %48 : vector<8x128xf32>
    %50 = arith.truncf %49 : vector<8x128xf32> to vector<8x128xbf16>
    %c0_22 = arith.constant 0 : index
    %c0_23 = arith.constant 0 : index
    %c0_24 = arith.constant 0 : index
    %51 = vector.load %arg7[%c0_22, %c0_23, %c0_24] : memref<1x64x128xbf16, #tpu.memory_space<vmem>>, vector<1x8x128xbf16>
    %52 = vector.shape_cast %51 : vector<1x8x128xbf16> to vector<8x128xbf16>
    %53 = vector.shape_cast %50 : vector<8x128xbf16> to vector<1x8x128xbf16>
    tpu.vector_store %arg7[%c0_22, %c0_23, %c0_24], %53 {strides = array<i32>} : memref<1x64x128xbf16, #tpu.memory_space<vmem>>, vector<1x8x128xbf16>,
    %c8 = arith.constant 8 : index
    %c0_25 = arith.constant 0 : index
    %54 = vector.load %arg10[%c8, %c0_25] : memref<64x384xbf16, #tpu.memory_space<vmem>>, vector<8x384xbf16>
    %55 = arith.truncf %49 : vector<8x128xf32> to vector<8x128xbf16>
    %cst_26 = arith.constant dense<0.000000e+00> : vector<8x128xf32>
    %56 = tpu.matmul %55, %13, %cst_26 {dimension_numbers = #tpu.dot_dimension_numbers<[1], [0], [0], [1], [0, 0, 1, 1], [], []>} : vector<8x128xbf16>, vector<128x128xbf16>, vector<8x128xf32> -> vector<8x128xf32>
    %57 = vector.extract_strided_slice %54 {offsets = [0, 0], sizes = [8, 128], strides = [1, 1]} : vector<8x384xbf16> to vector<8x128xbf16>
    %58 = arith.extf %57 : vector<8x128xbf16> to vector<8x128xf32>
    %59 = arith.addf %58, %56 : vector<8x128xf32>
    %60 = arith.negf %59 : vector<8x128xf32>
    %61 = math.exp %60 : vector<8x128xf32>
    %cst_27 = arith.constant 1.000000e+00 : f32
    %62 = vector.broadcast %cst_27 : f32 to vector<8x128xf32>
    %63 = arith.addf %62, %61 : vector<8x128xf32>
    %64 = arith.divf %62, %63 : vector<8x128xf32>
    %cst_28 = arith.constant dense<0.000000e+00> : vector<8x128xf32>
    %65 = tpu.matmul %55, %14, %cst_28 {dimension_numbers = #tpu.dot_dimension_numbers<[1], [0], [0], [1], [0, 0, 1, 1], [], []>} : vector<8x128xbf16>, vector<128x128xbf16>, vector<8x128xf32> -> vector<8x128xf32>
    %66 = vector.extract_strided_slice %54 {offsets = [0, 128], sizes = [8, 128], strides = [1, 1]} : vector<8x384xbf16> to vector<8x128xbf16>
    %67 = arith.extf %66 : vector<8x128xbf16> to vector<8x128xf32>
    %68 = arith.addf %67, %65 : vector<8x128xf32>
    %69 = arith.negf %68 : vector<8x128xf32>
    %70 = math.exp %69 : vector<8x128xf32>
    %cst_29 = arith.constant 1.000000e+00 : f32
    %71 = vector.broadcast %cst_29 : f32 to vector<8x128xf32>
    %72 = arith.addf %71, %70 : vector<8x128xf32>
    %73 = arith.divf %71, %72 : vector<8x128xf32>
    %cst_30 = arith.constant dense<0.000000e+00> : vector<8x128xf32>
    %74 = tpu.matmul %55, %15, %cst_30 {dimension_numbers = #tpu.dot_dimension_numbers<[1], [0], [0], [1], [0, 0, 1, 1], [], []>} : vector<8x128xbf16>, vector<128x128xbf16>, vector<8x128xf32> -> vector<8x128xf32>
    %75 = vector.extract_strided_slice %54 {offsets = [0, 256], sizes = [8, 128], strides = [1, 1]} : vector<8x384xbf16> to vector<8x128xbf16>
    %76 = arith.addf %74, %18 : vector<8x128xf32>
    %77 = arith.mulf %64, %76 : vector<8x128xf32>
    %78 = arith.extf %75 : vector<8x128xbf16> to vector<8x128xf32>
    %79 = arith.addf %78, %77 : vector<8x128xf32>
    %80 = math.tanh %79 : vector<8x128xf32>
    %81 = arith.subf %49, %80 : vector<8x128xf32>
    %82 = arith.mulf %73, %81 : vector<8x128xf32>
    %83 = arith.addf %80, %82 : vector<8x128xf32>
    %84 = arith.truncf %83 : vector<8x128xf32> to vector<8x128xbf16>
    %c0_31 = arith.constant 0 : index
    %c8_32 = arith.constant 8 : index
    %c0_33 = arith.constant 0 : index
    %85 = vector.load %arg7[%c0_31, %c8_32, %c0_33] : memref<1x64x128xbf16, #tpu.memory_space<vmem>>, vector<1x8x128xbf16>
    %86 = vector.shape_cast %85 : vector<1x8x128xbf16> to vector<8x128xbf16>
    %87 = vector.shape_cast %84 : vector<8x128xbf16> to vector<1x8x128xbf16>
    tpu.vector_store %arg7[%c0_31, %c8_32, %c0_33], %87 {strides = array<i32>} : memref<1x64x128xbf16, #tpu.memory_space<vmem>>, vector<1x8x128xbf16>,
    %c16 = arith.constant 16 : index
    %c0_34 = arith.constant 0 : index
    %88 = vector.load %arg10[%c16, %c0_34] : memref<64x384xbf16, #tpu.memory_space<vmem>>, vector<8x384xbf16>
    %89 = arith.truncf %83 : vector<8x128xf32> to vector<8x128xbf16>
    %cst_35 = arith.constant dense<0.000000e+00> : vector<8x128xf32>
    %90 = tpu.matmul %89, %13, %cst_35 {dimension_numbers = #tpu.dot_dimension_numbers<[1], [0], [0], [1], [0, 0, 1, 1], [], []>} : vector<8x128xbf16>, vector<128x128xbf16>, vector<8x128xf32> -> vector<8x128xf32>
    %91 = vector.extract_strided_slice %88 {offsets = [0, 0], sizes = [8, 128], strides = [1, 1]} : vector<8x384xbf16> to vector<8x128xbf16>
    %92 = arith.extf %91 : vector<8x128xbf16> to vector<8x128xf32>
    %93 = arith.addf %92, %90 : vector<8x128xf32>
    %94 = arith.negf %93 : vector<8x128xf32>
    %95 = math.exp %94 : vector<8x128xf32>
    %cst_36 = arith.constant 1.000000e+00 : f32
    %96 = vector.broadcast %cst_36 : f32 to vector<8x128xf32>
    %97 = arith.addf %96, %95 : vector<8x128xf32>
    %98 = arith.divf %96, %97 : vector<8x128xf32>
    %cst_37 = arith.constant dense<0.000000e+00> : vector<8x128xf32>
    %99 = tpu.matmul %89, %14, %cst_37 {dimension_numbers = #tpu.dot_dimension_numbers<[1], [0], [0], [1], [0, 0, 1, 1], [], []>} : vector<8x128xbf16>, vector<128x128xbf16>, vector<8x128xf32> -> vector<8x128xf32>
    %100 = vector.extract_strided_slice %88 {offsets = [0, 128], sizes = [8, 128], strides = [1, 1]} : vector<8x384xbf16> to vector<8x128xbf16>
    %101 = arith.extf %100 : vector<8x128xbf16> to vector<8x128xf32>
    %102 = arith.addf %101, %99 : vector<8x128xf32>
    %103 = arith.negf %102 : vector<8x128xf32>
    %104 = math.exp %103 : vector<8x128xf32>
    %cst_38 = arith.constant 1.000000e+00 : f32
    %105 = vector.broadcast %cst_38 : f32 to vector<8x128xf32>
    %106 = arith.addf %105, %104 : vector<8x128xf32>
    %107 = arith.divf %105, %106 : vector<8x128xf32>
    %cst_39 = arith.constant dense<0.000000e+00> : vector<8x128xf32>
    %108 = tpu.matmul %89, %15, %cst_39 {dimension_numbers = #tpu.dot_dimension_numbers<[1], [0], [0], [1], [0, 0, 1, 1], [], []>} : vector<8x128xbf16>, vector<128x128xbf16>, vector<8x128xf32> -> vector<8x128xf32>
    %109 = vector.extract_strided_slice %88 {offsets = [0, 256], sizes = [8, 128], strides = [1, 1]} : vector<8x384xbf16> to vector<8x128xbf16>
    %110 = arith.addf %108, %18 : vector<8x128xf32>
    %111 = arith.mulf %98, %110 : vector<8x128xf32>
    %112 = arith.extf %109 : vector<8x128xbf16> to vector<8x128xf32>
    %113 = arith.addf %112, %111 : vector<8x128xf32>
    %114 = math.tanh %113 : vector<8x128xf32>
    %115 = arith.subf %83, %114 : vector<8x128xf32>
    %116 = arith.mulf %107, %115 : vector<8x128xf32>
    %117 = arith.addf %114, %116 : vector<8x128xf32>
    %118 = arith.truncf %117 : vector<8x128xf32> to vector<8x128xbf16>
    %c0_40 = arith.constant 0 : index
    %c16_41 = arith.constant 16 : index
    %c0_42 = arith.constant 0 : index
    %119 = vector.load %arg7[%c0_40, %c16_41, %c0_42] : memref<1x64x128xbf16, #tpu.memory_space<vmem>>, vector<1x8x128xbf16>
    %120 = vector.shape_cast %119 : vector<1x8x128xbf16> to vector<8x128xbf16>
    %121 = vector.shape_cast %118 : vector<8x128xbf16> to vector<1x8x128xbf16>
    tpu.vector_store %arg7[%c0_40, %c16_41, %c0_42], %121 {strides = array<i32>} : memref<1x64x128xbf16, #tpu.memory_space<vmem>>, vector<1x8x128xbf16>,
    %c24 = arith.constant 24 : index
    %c0_43 = arith.constant 0 : index
    %122 = vector.load %arg10[%c24, %c0_43] : memref<64x384xbf16, #tpu.memory_space<vmem>>, vector<8x384xbf16>
    %123 = arith.truncf %117 : vector<8x128xf32> to vector<8x128xbf16>
    %cst_44 = arith.constant dense<0.000000e+00> : vector<8x128xf32>
    %124 = tpu.matmul %123, %13, %cst_44 {dimension_numbers = #tpu.dot_dimension_numbers<[1], [0], [0], [1], [0, 0, 1, 1], [], []>} : vector<8x128xbf16>, vector<128x128xbf16>, vector<8x128xf32> -> vector<8x128xf32>
    %125 = vector.extract_strided_slice %122 {offsets = [0, 0], sizes = [8, 128], strides = [1, 1]} : vector<8x384xbf16> to vector<8x128xbf16>
    %126 = arith.extf %125 : vector<8x128xbf16> to vector<8x128xf32>
    %127 = arith.addf %126, %124 : vector<8x128xf32>
    %128 = arith.negf %127 : vector<8x128xf32>
    %129 = math.exp %128 : vector<8x128xf32>
    %cst_45 = arith.constant 1.000000e+00 : f32
    %130 = vector.broadcast %cst_45 : f32 to vector<8x128xf32>
    %131 = arith.addf %130, %129 : vector<8x128xf32>
    %132 = arith.divf %130, %131 : vector<8x128xf32>
    %cst_46 = arith.constant dense<0.000000e+00> : vector<8x128xf32>
    %133 = tpu.matmul %123, %14, %cst_46 {dimension_numbers = #tpu.dot_dimension_numbers<[1], [0], [0], [1], [0, 0, 1, 1], [], []>} : vector<8x128xbf16>, vector<128x128xbf16>, vector<8x128xf32> -> vector<8x128xf32>
    %134 = vector.extract_strided_slice %122 {offsets = [0, 128], sizes = [8, 128], strides = [1, 1]} : vector<8x384xbf16> to vector<8x128xbf16>
    %135 = arith.extf %134 : vector<8x128xbf16> to vector<8x128xf32>
    %136 = arith.addf %135, %133 : vector<8x128xf32>
    %137 = arith.negf %136 : vector<8x128xf32>
    %138 = math.exp %137 : vector<8x128xf32>
    %cst_47 = arith.constant 1.000000e+00 : f32
    %139 = vector.broadcast %cst_47 : f32 to vector<8x128xf32>
    %140 = arith.addf %139, %138 : vector<8x128xf32>
    %141 = arith.divf %139, %140 : vector<8x128xf32>
    %cst_48 = arith.constant dense<0.000000e+00> : vector<8x128xf32>
    %142 = tpu.matmul %123, %15, %cst_48 {dimension_numbers = #tpu.dot_dimension_numbers<[1], [0], [0], [1], [0, 0, 1, 1], [], []>} : vector<8x128xbf16>, vector<128x128xbf16>, vector<8x128xf32> -> vector<8x128xf32>
    %143 = vector.extract_strided_slice %122 {offsets = [0, 256], sizes = [8, 128], strides = [1, 1]} : vector<8x384xbf16> to vector<8x128xbf16>
    %144 = arith.addf %142, %18 : vector<8x128xf32>
    %145 = arith.mulf %132, %144 : vector<8x128xf32>
    %146 = arith.extf %143 : vector<8x128xbf16> to vector<8x128xf32>
    %147 = arith.addf %146, %145 : vector<8x128xf32>
    %148 = math.tanh %147 : vector<8x128xf32>
    %149 = arith.subf %117, %148 : vector<8x128xf32>
    %150 = arith.mulf %141, %149 : vector<8x128xf32>
    %151 = arith.addf %148, %150 : vector<8x128xf32>
    %152 = arith.truncf %151 : vector<8x128xf32> to vector<8x128xbf16>
    %c0_49 = arith.constant 0 : index
    %c24_50 = arith.constant 24 : index
    %c0_51 = arith.constant 0 : index
    %153 = vector.load %arg7[%c0_49, %c24_50, %c0_51] : memref<1x64x128xbf16, #tpu.memory_space<vmem>>, vector<1x8x128xbf16>
    %154 = vector.shape_cast %153 : vector<1x8x128xbf16> to vector<8x128xbf16>
    %155 = vector.shape_cast %152 : vector<8x128xbf16> to vector<1x8x128xbf16>
    tpu.vector_store %arg7[%c0_49, %c24_50, %c0_51], %155 {strides = array<i32>} : memref<1x64x128xbf16, #tpu.memory_space<vmem>>, vector<1x8x128xbf16>,
    %c32 = arith.constant 32 : index
    %c0_52 = arith.constant 0 : index
    %156 = vector.load %arg10[%c32, %c0_52] : memref<64x384xbf16, #tpu.memory_space<vmem>>, vector<8x384xbf16>
    %157 = arith.truncf %151 : vector<8x128xf32> to vector<8x128xbf16>
    %cst_53 = arith.constant dense<0.000000e+00> : vector<8x128xf32>
    %158 = tpu.matmul %157, %13, %cst_53 {dimension_numbers = #tpu.dot_dimension_numbers<[1], [0], [0], [1], [0, 0, 1, 1], [], []>} : vector<8x128xbf16>, vector<128x128xbf16>, vector<8x128xf32> -> vector<8x128xf32>
    %159 = vector.extract_strided_slice %156 {offsets = [0, 0], sizes = [8, 128], strides = [1, 1]} : vector<8x384xbf16> to vector<8x128xbf16>
    %160 = arith.extf %159 : vector<8x128xbf16> to vector<8x128xf32>
    %161 = arith.addf %160, %158 : vector<8x128xf32>
    %162 = arith.negf %161 : vector<8x128xf32>
    %163 = math.exp %162 : vector<8x128xf32>
    %cst_54 = arith.constant 1.000000e+00 : f32
    %164 = vector.broadcast %cst_54 : f32 to vector<8x128xf32>
    %165 = arith.addf %164, %163 : vector<8x128xf32>
    %166 = arith.divf %164, %165 : vector<8x128xf32>
    %cst_55 = arith.constant dense<0.000000e+00> : vector<8x128xf32>
    %167 = tpu.matmul %157, %14, %cst_55 {dimension_numbers = #tpu.dot_dimension_numbers<[1], [0], [0], [1], [0, 0, 1, 1], [], []>} : vector<8x128xbf16>, vector<128x128xbf16>, vector<8x128xf32> -> vector<8x128xf32>
    %168 = vector.extract_strided_slice %156 {offsets = [0, 128], sizes = [8, 128], strides = [1, 1]} : vector<8x384xbf16> to vector<8x128xbf16>
    %169 = arith.extf %168 : vector<8x128xbf16> to vector<8x128xf32>
    %170 = arith.addf %169, %167 : vector<8x128xf32>
    %171 = arith.negf %170 : vector<8x128xf32>
    %172 = math.exp %171 : vector<8x128xf32>
    %cst_56 = arith.constant 1.000000e+00 : f32
    %173 = vector.broadcast %cst_56 : f32 to vector<8x128xf32>
    %174 = arith.addf %173, %172 : vector<8x128xf32>
    %175 = arith.divf %173, %174 : vector<8x128xf32>
    %cst_57 = arith.constant dense<0.000000e+00> : vector<8x128xf32>
    %176 = tpu.matmul %157, %15, %cst_57 {dimension_numbers = #tpu.dot_dimension_numbers<[1], [0], [0], [1], [0, 0, 1, 1], [], []>} : vector<8x128xbf16>, vector<128x128xbf16>, vector<8x128xf32> -> vector<8x128xf32>
    %177 = vector.extract_strided_slice %156 {offsets = [0, 256], sizes = [8, 128], strides = [1, 1]} : vector<8x384xbf16> to vector<8x128xbf16>
    %178 = arith.addf %176, %18 : vector<8x128xf32>
    %179 = arith.mulf %166, %178 : vector<8x128xf32>
    %180 = arith.extf %177 : vector<8x128xbf16> to vector<8x128xf32>
    %181 = arith.addf %180, %179 : vector<8x128xf32>
    %182 = math.tanh %181 : vector<8x128xf32>
    %183 = arith.subf %151, %182 : vector<8x128xf32>
    %184 = arith.mulf %175, %183 : vector<8x128xf32>
    %185 = arith.addf %182, %184 : vector<8x128xf32>
    %186 = arith.truncf %185 : vector<8x128xf32> to vector<8x128xbf16>
    %c0_58 = arith.constant 0 : index
    %c32_59 = arith.constant 32 : index
    %c0_60 = arith.constant 0 : index
    %187 = vector.load %arg7[%c0_58, %c32_59, %c0_60] : memref<1x64x128xbf16, #tpu.memory_space<vmem>>, vector<1x8x128xbf16>
    %188 = vector.shape_cast %187 : vector<1x8x128xbf16> to vector<8x128xbf16>
    %189 = vector.shape_cast %186 : vector<8x128xbf16> to vector<1x8x128xbf16>
    tpu.vector_store %arg7[%c0_58, %c32_59, %c0_60], %189 {strides = array<i32>} : memref<1x64x128xbf16, #tpu.memory_space<vmem>>, vector<1x8x128xbf16>,
    %c40 = arith.constant 40 : index
    %c0_61 = arith.constant 0 : index
    %190 = vector.load %arg10[%c40, %c0_61] : memref<64x384xbf16, #tpu.memory_space<vmem>>, vector<8x384xbf16>
    %191 = arith.truncf %185 : vector<8x128xf32> to vector<8x128xbf16>
    %cst_62 = arith.constant dense<0.000000e+00> : vector<8x128xf32>
    %192 = tpu.matmul %191, %13, %cst_62 {dimension_numbers = #tpu.dot_dimension_numbers<[1], [0], [0], [1], [0, 0, 1, 1], [], []>} : vector<8x128xbf16>, vector<128x128xbf16>, vector<8x128xf32> -> vector<8x128xf32>
    %193 = vector.extract_strided_slice %190 {offsets = [0, 0], sizes = [8, 128], strides = [1, 1]} : vector<8x384xbf16> to vector<8x128xbf16>
    %194 = arith.extf %193 : vector<8x128xbf16> to vector<8x128xf32>
    %195 = arith.addf %194, %192 : vector<8x128xf32>
    %196 = arith.negf %195 : vector<8x128xf32>
    %197 = math.exp %196 : vector<8x128xf32>
    %cst_63 = arith.constant 1.000000e+00 : f32
    %198 = vector.broadcast %cst_63 : f32 to vector<8x128xf32>
    %199 = arith.addf %198, %197 : vector<8x128xf32>
    %200 = arith.divf %198, %199 : vector<8x128xf32>
    %cst_64 = arith.constant dense<0.000000e+00> : vector<8x128xf32>
    %201 = tpu.matmul %191, %14, %cst_64 {dimension_numbers = #tpu.dot_dimension_numbers<[1], [0], [0], [1], [0, 0, 1, 1], [], []>} : vector<8x128xbf16>, vector<128x128xbf16>, vector<8x128xf32> -> vector<8x128xf32>
    %202 = vector.extract_strided_slice %190 {offsets = [0, 128], sizes = [8, 128], strides = [1, 1]} : vector<8x384xbf16> to vector<8x128xbf16>
    %203 = arith.extf %202 : vector<8x128xbf16> to vector<8x128xf32>
    %204 = arith.addf %203, %201 : vector<8x128xf32>
    %205 = arith.negf %204 : vector<8x128xf32>
    %206 = math.exp %205 : vector<8x128xf32>
    %cst_65 = arith.constant 1.000000e+00 : f32
    %207 = vector.broadcast %cst_65 : f32 to vector<8x128xf32>
    %208 = arith.addf %207, %206 : vector<8x128xf32>
    %209 = arith.divf %207, %208 : vector<8x128xf32>
    %cst_66 = arith.constant dense<0.000000e+00> : vector<8x128xf32>
    %210 = tpu.matmul %191, %15, %cst_66 {dimension_numbers = #tpu.dot_dimension_numbers<[1], [0], [0], [1], [0, 0, 1, 1], [], []>} : vector<8x128xbf16>, vector<128x128xbf16>, vector<8x128xf32> -> vector<8x128xf32>
    %211 = vector.extract_strided_slice %190 {offsets = [0, 256], sizes = [8, 128], strides = [1, 1]} : vector<8x384xbf16> to vector<8x128xbf16>
    %212 = arith.addf %210, %18 : vector<8x128xf32>
    %213 = arith.mulf %200, %212 : vector<8x128xf32>
    %214 = arith.extf %211 : vector<8x128xbf16> to vector<8x128xf32>
    %215 = arith.addf %214, %213 : vector<8x128xf32>
    %216 = math.tanh %215 : vector<8x128xf32>
    %217 = arith.subf %185, %216 : vector<8x128xf32>
    %218 = arith.mulf %209, %217 : vector<8x128xf32>
    %219 = arith.addf %216, %218 : vector<8x128xf32>
    %220 = arith.truncf %219 : vector<8x128xf32> to vector<8x128xbf16>
    %c0_67 = arith.constant 0 : index
    %c40_68 = arith.constant 40 : index
    %c0_69 = arith.constant 0 : index
    %221 = vector.load %arg7[%c0_67, %c40_68, %c0_69] : memref<1x64x128xbf16, #tpu.memory_space<vmem>>, vector<1x8x128xbf16>
    %222 = vector.shape_cast %221 : vector<1x8x128xbf16> to vector<8x128xbf16>
    %223 = vector.shape_cast %220 : vector<8x128xbf16> to vector<1x8x128xbf16>
    tpu.vector_store %arg7[%c0_67, %c40_68, %c0_69], %223 {strides = array<i32>} : memref<1x64x128xbf16, #tpu.memory_space<vmem>>, vector<1x8x128xbf16>,
    %c48 = arith.constant 48 : index
    %c0_70 = arith.constant 0 : index
    %224 = vector.load %arg10[%c48, %c0_70] : memref<64x384xbf16, #tpu.memory_space<vmem>>, vector<8x384xbf16>
    %225 = arith.truncf %219 : vector<8x128xf32> to vector<8x128xbf16>
    %cst_71 = arith.constant dense<0.000000e+00> : vector<8x128xf32>
    %226 = tpu.matmul %225, %13, %cst_71 {dimension_numbers = #tpu.dot_dimension_numbers<[1], [0], [0], [1], [0, 0, 1, 1], [], []>} : vector<8x128xbf16>, vector<128x128xbf16>, vector<8x128xf32> -> vector<8x128xf32>
    %227 = vector.extract_strided_slice %224 {offsets = [0, 0], sizes = [8, 128], strides = [1, 1]} : vector<8x384xbf16> to vector<8x128xbf16>
    %228 = arith.extf %227 : vector<8x128xbf16> to vector<8x128xf32>
    %229 = arith.addf %228, %226 : vector<8x128xf32>
    %230 = arith.negf %229 : vector<8x128xf32>
    %231 = math.exp %230 : vector<8x128xf32>
    %cst_72 = arith.constant 1.000000e+00 : f32
    %232 = vector.broadcast %cst_72 : f32 to vector<8x128xf32>
    %233 = arith.addf %232, %231 : vector<8x128xf32>
    %234 = arith.divf %232, %233 : vector<8x128xf32>
    %cst_73 = arith.constant dense<0.000000e+00> : vector<8x128xf32>
    %235 = tpu.matmul %225, %14, %cst_73 {dimension_numbers = #tpu.dot_dimension_numbers<[1], [0], [0], [1], [0, 0, 1, 1], [], []>} : vector<8x128xbf16>, vector<128x128xbf16>, vector<8x128xf32> -> vector<8x128xf32>
    %236 = vector.extract_strided_slice %224 {offsets = [0, 128], sizes = [8, 128], strides = [1, 1]} : vector<8x384xbf16> to vector<8x128xbf16>
    %237 = arith.extf %236 : vector<8x128xbf16> to vector<8x128xf32>
    %238 = arith.addf %237, %235 : vector<8x128xf32>
    %239 = arith.negf %238 : vector<8x128xf32>
    %240 = math.exp %239 : vector<8x128xf32>
    %cst_74 = arith.constant 1.000000e+00 : f32
    %241 = vector.broadcast %cst_74 : f32 to vector<8x128xf32>
    %242 = arith.addf %241, %240 : vector<8x128xf32>
    %243 = arith.divf %241, %242 : vector<8x128xf32>
    %cst_75 = arith.constant dense<0.000000e+00> : vector<8x128xf32>
    %244 = tpu.matmul %225, %15, %cst_75 {dimension_numbers = #tpu.dot_dimension_numbers<[1], [0], [0], [1], [0, 0, 1, 1], [], []>} : vector<8x128xbf16>, vector<128x128xbf16>, vector<8x128xf32> -> vector<8x128xf32>
    %245 = vector.extract_strided_slice %224 {offsets = [0, 256], sizes = [8, 128], strides = [1, 1]} : vector<8x384xbf16> to vector<8x128xbf16>
    %246 = arith.addf %244, %18 : vector<8x128xf32>
    %247 = arith.mulf %234, %246 : vector<8x128xf32>
    %248 = arith.extf %245 : vector<8x128xbf16> to vector<8x128xf32>
    %249 = arith.addf %248, %247 : vector<8x128xf32>
    %250 = math.tanh %249 : vector<8x128xf32>
    %251 = arith.subf %219, %250 : vector<8x128xf32>
    %252 = arith.mulf %243, %251 : vector<8x128xf32>
    %253 = arith.addf %250, %252 : vector<8x128xf32>
    %254 = arith.truncf %253 : vector<8x128xf32> to vector<8x128xbf16>
    %c0_76 = arith.constant 0 : index
    %c48_77 = arith.constant 48 : index
    %c0_78 = arith.constant 0 : index
    %255 = vector.load %arg7[%c0_76, %c48_77, %c0_78] : memref<1x64x128xbf16, #tpu.memory_space<vmem>>, vector<1x8x128xbf16>
    %256 = vector.shape_cast %255 : vector<1x8x128xbf16> to vector<8x128xbf16>
    %257 = vector.shape_cast %254 : vector<8x128xbf16> to vector<1x8x128xbf16>
    tpu.vector_store %arg7[%c0_76, %c48_77, %c0_78], %257 {strides = array<i32>} : memref<1x64x128xbf16, #tpu.memory_space<vmem>>, vector<1x8x128xbf16>,
    %c56 = arith.constant 56 : index
    %c0_79 = arith.constant 0 : index
    %258 = vector.load %arg10[%c56, %c0_79] : memref<64x384xbf16, #tpu.memory_space<vmem>>, vector<8x384xbf16>
    %259 = arith.truncf %253 : vector<8x128xf32> to vector<8x128xbf16>
    %cst_80 = arith.constant dense<0.000000e+00> : vector<8x128xf32>
    %260 = tpu.matmul %259, %13, %cst_80 {dimension_numbers = #tpu.dot_dimension_numbers<[1], [0], [0], [1], [0, 0, 1, 1], [], []>} : vector<8x128xbf16>, vector<128x128xbf16>, vector<8x128xf32> -> vector<8x128xf32>
    %261 = vector.extract_strided_slice %258 {offsets = [0, 0], sizes = [8, 128], strides = [1, 1]} : vector<8x384xbf16> to vector<8x128xbf16>
    %262 = arith.extf %261 : vector<8x128xbf16> to vector<8x128xf32>
    %263 = arith.addf %262, %260 : vector<8x128xf32>
    %264 = arith.negf %263 : vector<8x128xf32>
    %265 = math.exp %264 : vector<8x128xf32>
    %cst_81 = arith.constant 1.000000e+00 : f32
    %266 = vector.broadcast %cst_81 : f32 to vector<8x128xf32>
    %267 = arith.addf %266, %265 : vector<8x128xf32>
    %268 = arith.divf %266, %267 : vector<8x128xf32>
    %cst_82 = arith.constant dense<0.000000e+00> : vector<8x128xf32>
    %269 = tpu.matmul %259, %14, %cst_82 {dimension_numbers = #tpu.dot_dimension_numbers<[1], [0], [0], [1], [0, 0, 1, 1], [], []>} : vector<8x128xbf16>, vector<128x128xbf16>, vector<8x128xf32> -> vector<8x128xf32>
    %270 = vector.extract_strided_slice %258 {offsets = [0, 128], sizes = [8, 128], strides = [1, 1]} : vector<8x384xbf16> to vector<8x128xbf16>
    %271 = arith.extf %270 : vector<8x128xbf16> to vector<8x128xf32>
    %272 = arith.addf %271, %269 : vector<8x128xf32>
    %273 = arith.negf %272 : vector<8x128xf32>
    %274 = math.exp %273 : vector<8x128xf32>
    %cst_83 = arith.constant 1.000000e+00 : f32
    %275 = vector.broadcast %cst_83 : f32 to vector<8x128xf32>
    %276 = arith.addf %275, %274 : vector<8x128xf32>
    %277 = arith.divf %275, %276 : vector<8x128xf32>
    %cst_84 = arith.constant dense<0.000000e+00> : vector<8x128xf32>
    %278 = tpu.matmul %259, %15, %cst_84 {dimension_numbers = #tpu.dot_dimension_numbers<[1], [0], [0], [1], [0, 0, 1, 1], [], []>} : vector<8x128xbf16>, vector<128x128xbf16>, vector<8x128xf32> -> vector<8x128xf32>
    %279 = vector.extract_strided_slice %258 {offsets = [0, 256], sizes = [8, 128], strides = [1, 1]} : vector<8x384xbf16> to vector<8x128xbf16>
    %280 = arith.addf %278, %18 : vector<8x128xf32>
    %281 = arith.mulf %268, %280 : vector<8x128xf32>
    %282 = arith.extf %279 : vector<8x128xbf16> to vector<8x128xf32>
    %283 = arith.addf %282, %281 : vector<8x128xf32>
    %284 = math.tanh %283 : vector<8x128xf32>
    %285 = arith.subf %253, %284 : vector<8x128xf32>
    %286 = arith.mulf %277, %285 : vector<8x128xf32>
    %287 = arith.addf %284, %286 : vector<8x128xf32>
    %288 = arith.truncf %287 : vector<8x128xf32> to vector<8x128xbf16>
    %c0_85 = arith.constant 0 : index
    %c56_86 = arith.constant 56 : index
    %c0_87 = arith.constant 0 : index
    %289 = vector.load %arg7[%c0_85, %c56_86, %c0_87] : memref<1x64x128xbf16, #tpu.memory_space<vmem>>, vector<1x8x128xbf16>
    %290 = vector.shape_cast %289 : vector<1x8x128xbf16> to vector<8x128xbf16>
    %291 = vector.shape_cast %288 : vector<8x128xbf16> to vector<1x8x128xbf16>
    tpu.vector_store %arg7[%c0_85, %c56_86, %c0_87], %291 {strides = array<i32>} : memref<1x64x128xbf16, #tpu.memory_space<vmem>>, vector<1x8x128xbf16>,
    %c0_88 = arith.constant 0 : index
    %c0_89 = arith.constant 0 : index
    %292 = vector.load %arg9[%c0_88, %c0_89] : memref<8x128xf32, #tpu.memory_space<vmem>>, vector<8x128xf32>
    tpu.vector_store %arg9[%c0_88, %c0_89], %287 {strides = array<i32>} : memref<8x128xf32, #tpu.memory_space<vmem>>, vector<8x128xf32>,
    %c0_90 = arith.constant 0 : index
    %c0_91 = arith.constant 0 : index
    %c0_92 = arith.constant 0 : index
    %293 = vector.load %arg8[%c0_90, %c0_91, %c0_92] : memref<1x8x128xf32, #tpu.memory_space<vmem>>, vector<1x8x128xf32>
    %294 = vector.shape_cast %293 : vector<1x8x128xf32> to vector<8x128xf32>
    %295 = vector.shape_cast %287 : vector<8x128xf32> to vector<1x8x128xf32>
    tpu.vector_store %arg8[%c0_90, %c0_91, %c0_92], %295 {strides = array<i32>} : memref<1x8x128xf32, #tpu.memory_space<vmem>>, vector<1x8x128xf32>,
    return
  }
  func.func @transform_0(%arg0: i32, %arg1: i32) -> (i32, i32, i32) {
    %c0_i32 = arith.constant 0 : i32
    %c0_i32_0 = arith.constant 0 : i32
    return %arg0, %arg1, %c0_i32 : i32, i32, i32
  }
  func.func @transform_1(%arg0: i32, %arg1: i32) -> (i32, i32) {
    %c0_i32 = arith.constant 0 : i32
    %c0_i32_0 = arith.constant 0 : i32
    %c0_i32_1 = arith.constant 0 : i32
    return %c0_i32, %c0_i32_0 : i32, i32
  }
  func.func @transform_2(%arg0: i32, %arg1: i32) -> (i32, i32) {
    %c0_i32 = arith.constant 0 : i32
    %c0_i32_0 = arith.constant 0 : i32
    %c0_i32_1 = arith.constant 0 : i32
    return %c0_i32, %c0_i32_0 : i32, i32
  }
  func.func @transform_3(%arg0: i32, %arg1: i32) -> (i32, i32) {
    %c0_i32 = arith.constant 0 : i32
    %c0_i32_0 = arith.constant 0 : i32
    %c0_i32_1 = arith.constant 0 : i32
    return %c0_i32, %c0_i32_0 : i32, i32
  }
  func.func @transform_4(%arg0: i32, %arg1: i32) -> (i32, i32) {
    %c0_i32 = arith.constant 0 : i32
    %c0_i32_0 = arith.constant 0 : i32
    %c0_i32_1 = arith.constant 0 : i32
    return %c0_i32, %c0_i32_0 : i32, i32
  }
  func.func @transform_5(%arg0: i32, %arg1: i32) -> (i32, i32, i32) {
    %c0_i32 = arith.constant 0 : i32
    %c0_i32_0 = arith.constant 0 : i32
    return %arg0, %arg1, %c0_i32 : i32, i32, i32
  }
  func.func @transform_6(%arg0: i32, %arg1: i32) -> (i32, i32, i32) {
    %c0_i32 = arith.constant 0 : i32
    %c0_i32_0 = arith.constant 0 : i32
    %c0_i32_1 = arith.constant 0 : i32
    return %arg0, %c0_i32, %c0_i32_0 : i32, i32, i32
  }
}

module attributes {stable_mosaic.version = 11 : i64} {
  func.func @gru_kernel(%arg0: i32, %arg1: i32, %arg2: memref<1x64x128xbf16, #tpu.memory_space<vmem>>, %arg3: memref<128x384xbf16, #tpu.memory_space<vmem>>, %arg4: memref<128x384xbf16, #tpu.memory_space<vmem>>, %arg5: memref<1x384xf32, #tpu.memory_space<vmem>>, %arg6: memref<1x128xf32, #tpu.memory_space<vmem>>, %arg7: memref<1x64x128xbf16, #tpu.memory_space<vmem>>, %arg8: memref<1x8x128xf32, #tpu.memory_space<vmem>>, %arg9: memref<8x128xf32, #tpu.memory_space<vmem>>, %arg10: memref<64x384xbf16, #tpu.memory_space<vmem>>) attributes {dimension_semantics = [#tpu.dimension_semantics<parallel>, #tpu.dimension_semantics<arbitrary>], iteration_bounds = array<i64: 1, 1>, scalar_prefetch = 0 : i64, scratch_operands = 2 : i64, tpu.core_type = #tpu.core_type<tc>, window_params = [{transform_indices = @transform_0, window_bounds = array<i64: 1, 64, 128>}, {pipeline_mode = #tpu.pipeline_mode<synchronous>, transform_indices = @transform_1, window_bounds = array<i64: 128, 384>}, {pipeline_mode = #tpu.pipeline_mode<synchronous>, transform_indices = @transform_2, window_bounds = array<i64: 128, 384>}, {pipeline_mode = #tpu.pipeline_mode<synchronous>, transform_indices = @transform_3, window_bounds = array<i64: 1, 384>}, {pipeline_mode = #tpu.pipeline_mode<synchronous>, transform_indices = @transform_4, window_bounds = array<i64: 1, 128>}, {transform_indices = @transform_5, window_bounds = array<i64: 1, 64, 128>}, {transform_indices = @transform_6, window_bounds = array<i64: 1, 8, 128>}]} {
    %c0_i32 = arith.constant 0 : i32
    %0 = arith.cmpi eq, %arg1, %c0_i32 : i32
    %1 = arith.extui %0 : i1 to i32
    %c0_i32_0 = arith.constant 0 : i32
    %2 = arith.cmpi ne, %1, %c0_i32_0 : i32
    scf.if %2 {
      %cst_93 = arith.constant 0.000000e+00 : f32
      %296 = vector.broadcast %cst_93 : f32 to vector<8x128xf32>
      %c0_94 = arith.constant 0 : index
      %c0_95 = arith.constant 0 : index
      %297 = vector.load %arg9[%c0_94, %c0_95] : memref<8x128xf32, #tpu.memory_space<vmem>>, vector<8x128xf32>
      tpu.vector_store %arg9[%c0_94, %c0_95], %296 {strides = array<i32>} : memref<8x128xf32, #tpu.memory_space<vmem>>, vector<8x128xf32>,
    } else {
    }
    %c0 = arith.constant 0 : index
    %c0_1 = arith.constant 0 : index
    %c0_2 = arith.constant 0 : index
    %3 = vector.load %arg2[%c0, %c0_1, %c0_2] : memref<1x64x128xbf16, #tpu.memory_space<vmem>>, vector<1x64x128xbf16>
    %4 = vector.shape_cast %3 : vector<1x64x128xbf16> to vector<64x128xbf16>
    %c0_3 = arith.constant 0 : index
    %c0_4 = arith.constant 0 : index
    %5 = vector.load %arg3[%c0_3, %c0_4] : memref<128x384xbf16, #tpu.memory_space<vmem>>, vector<128x384xbf16>
    %cst = arith.constant dense<0.000000e+00> : vector<64x384xf32>
    %6 = tpu.matmul %4, %5, %cst {dimension_numbers = #tpu.dot_dimension_numbers<[1], [0], [0], [1], [0, 0, 1, 1], [], []>} : vector<64x128xbf16>, vector<128x384xbf16>, vector<64x384xf32> -> vector<64x384xf32>
    %c0_5 = arith.constant 0 : index
    %c0_6 = arith.constant 0 : index
    %7 = vector.load %arg5[%c0_5, %c0_6] : memref<1x384xf32, #tpu.memory_space<vmem>>, vector<1x384xf32>
    %8 = vector.broadcast %7 : vector<1x384xf32> to vector<64x384xf32>
    %9 = arith.addf %6, %8 : vector<64x384xf32>
    %10 = arith.truncf %9 : vector<64x384xf32> to vector<64x384xbf16>
    %c0_7 = arith.constant 0 : index
    %c0_8 = arith.constant 0 : index
    %11 = vector.load %arg10[%c0_7, %c0_8] : memref<64x384xbf16, #tpu.memory_space<vmem>>, vector<64x384xbf16>
    tpu.vector_store %arg10[%c0_7, %c0_8], %10 {strides = array<i32>} : memref<64x384xbf16, #tpu.memory_space<vmem>>, vector<64x384xbf16>,
    %c0_9 = arith.constant 0 : index
    %c0_10 = arith.constant 0 : index
    %12 = vector.load %arg4[%c0_9, %c0_10] : memref<128x384xbf16, #tpu.memory_space<vmem>>, vector<128x384xbf16>
    %13 = vector.extract_strided_slice %12 {offsets = [0, 0], sizes = [128, 128], strides = [1, 1]} : vector<128x384xbf16> to vector<128x128xbf16>
    %14 = vector.extract_strided_slice %12 {offsets = [0, 128], sizes = [128, 128], strides = [1, 1]} : vector<128x384xbf16> to vector<128x128xbf16>
    %15 = vector.extract_strided_slice %12 {offsets = [0, 256], sizes = [128, 128], strides = [1, 1]} : vector<128x384xbf16> to vector<128x128xbf16>
    %c0_11 = arith.constant 0 : index
    %c0_12 = arith.constant 0 : index
    %16 = vector.load %arg6[%c0_11, %c0_12] : memref<1x128xf32, #tpu.memory_space<vmem>>, vector<1x128xf32>
    %17 = vector.shape_cast %16 : vector<1x128xf32> to vector<1x128xf32>
    %18 = vector.broadcast %17 : vector<1x128xf32> to vector<8x128xf32>
    %c0_13 = arith.constant 0 : index
    %c0_14 = arith.constant 0 : index
    %19 = vector.load %arg9[%c0_13, %c0_14] : memref<8x128xf32, #tpu.memory_space<vmem>>, vector<8x128xf32>
    %c0_15 = arith.constant 0 : index
    %c0_16 = arith.constant 0 : index
    %20 = vector.load %arg10[%c0_15, %c0_16] : memref<64x384xbf16, #tpu.memory_space<vmem>>, vector<8x384xbf16>
    %21 = arith.truncf %19 : vector<8x128xf32> to vector<8x128xbf16>
    %cst_17 = arith.constant dense<0.000000e+00> : vector<8x128xf32>
    %22 = tpu.matmul %21, %13, %cst_17 {dimension_numbers = #tpu.dot_dimension_numbers<[1], [0], [0], [1], [0, 0, 1, 1], [], []>} : vector<8x128xbf16>, vector<128x128xbf16>, vector<8x128xf32> -> vector<8x128xf32>
    %23 = vector.extract_strided_slice %20 {offsets = [0, 0], sizes = [8, 128], strides = [1, 1]} : vector<8x384xbf16> to vector<8x128xbf16>
    %24 = arith.extf %23 : vector<8x128xbf16> to vector<8x128xf32>
    %25 = arith.addf %24, %22 : vector<8x128xf32>
    %26 = arith.negf %25 : vector<8x128xf32>
    %27 = math.exp %26 : vector<8x128xf32>
    %cst_18 = arith.constant 1.000000e+00 : f32
    %28 = vector.broadcast %cst_18 : f32 to vector<8x128xf32>
    %29 = arith.addf %28, %27 : vector<8x128xf32>
    %30 = arith.divf %28, %29 : vector<8x128xf32>
    %cst_19 = arith.constant dense<0.000000e+00> : vector<8x128xf32>
    %31 = tpu.matmul %21, %14, %cst_19 {dimension_numbers = #tpu.dot_dimension_numbers<[1], [0], [0], [1], [0, 0, 1, 1], [], []>} : vector<8x128xbf16>, vector<128x128xbf16>, vector<8x128xf32> -> vector<8x128xf32>
    %32 = vector.extract_strided_slice %20 {offsets = [0, 128], sizes = [8, 128], strides = [1, 1]} : vector<8x384xbf16> to vector<8x128xbf16>
    %33 = arith.extf %32 : vector<8x128xbf16> to vector<8x128xf32>
    %34 = arith.addf %33, %31 : vector<8x128xf32>
    %35 = arith.negf %34 : vector<8x128xf32>
    %36 = math.exp %35 : vector<8x128xf32>
    %cst_20 = arith.constant 1.000000e+00 : f32
    %37 = vector.broadcast %cst_20 : f32 to vector<8x128xf32>
    %38 = arith.addf %37, %36 : vector<8x128xf32>
    %39 = arith.divf %37, %38 : vector<8x128xf32>
    %cst_21 = arith.constant dense<0.000000e+00> : vector<8x128xf32>
    %40 = tpu.matmul %21, %15, %cst_21 {dimension_numbers = #tpu.dot_dimension_numbers<[1], [0], [0], [1], [0, 0, 1, 1], [], []>} : vector<8x128xbf16>, vector<128x128xbf16>, vector<8x128xf32> -> vector<8x128xf32>
    %41 = vector.extract_strided_slice %20 {offsets = [0, 256], sizes = [8, 128], strides = [1, 1]} : vector<8x384xbf16> to vector<8x128xbf16>
    %42 = arith.addf %40, %18 : vector<8x128xf32>
    %43 = arith.mulf %30, %42 : vector<8x128xf32>
    %44 = arith.extf %41 : vector<8x128xbf16> to vector<8x128xf32>
    %45 = arith.addf %44, %43 : vector<8x128xf32>
    %46 = math.tanh %45 : vector<8x128xf32>
    %47 = arith.subf %19, %46 : vector<8x128xf32>
    %48 = arith.mulf %39, %47 : vector<8x128xf32>
    %49 = arith.addf %46, %48 : vector<8x128xf32>
    %50 = arith.truncf %49 : vector<8x128xf32> to vector<8x128xbf16>
    %c0_22 = arith.constant 0 : index
    %c0_23 = arith.constant 0 : index
    %c0_24 = arith.constant 0 : index
    %51 = vector.load %arg7[%c0_22, %c0_23, %c0_24] : memref<1x64x128xbf16, #tpu.memory_space<vmem>>, vector<1x8x128xbf16>
    %52 = vector.shape_cast %51 : vector<1x8x128xbf16> to vector<8x128xbf16>
    %53 = vector.shape_cast %50 : vector<8x128xbf16> to vector<1x8x128xbf16>
    tpu.vector_store %arg7[%c0_22, %c0_23, %c0_24], %53 {strides = array<i32>} : memref<1x64x128xbf16, #tpu.memory_space<vmem>>, vector<1x8x128xbf16>,
    %c8 = arith.constant 8 : index
    %c0_25 = arith.constant 0 : index
    %54 = vector.load %arg10[%c8, %c0_25] : memref<64x384xbf16, #tpu.memory_space<vmem>>, vector<8x384xbf16>
    %55 = arith.truncf %49 : vector<8x128xf32> to vector<8x128xbf16>
    %cst_26 = arith.constant dense<0.000000e+00> : vector<8x128xf32>
    %56 = tpu.matmul %55, %13, %cst_26 {dimension_numbers = #tpu.dot_dimension_numbers<[1], [0], [0], [1], [0, 0, 1, 1], [], []>} : vector<8x128xbf16>, vector<128x128xbf16>, vector<8x128xf32> -> vector<8x128xf32>
    %57 = vector.extract_strided_slice %54 {offsets = [0, 0], sizes = [8, 128], strides = [1, 1]} : vector<8x384xbf16> to vector<8x128xbf16>
    %58 = arith.extf %57 : vector<8x128xbf16> to vector<8x128xf32>
    %59 = arith.addf %58, %56 : vector<8x128xf32>
    %60 = arith.negf %59 : vector<8x128xf32>
    %61 = math.exp %60 : vector<8x128xf32>
    %cst_27 = arith.constant 1.000000e+00 : f32
    %62 = vector.broadcast %cst_27 : f32 to vector<8x128xf32>
    %63 = arith.addf %62, %61 : vector<8x128xf32>
    %64 = arith.divf %62, %63 : vector<8x128xf32>
    %cst_28 = arith.constant dense<0.000000e+00> : vector<8x128xf32>
    %65 = tpu.matmul %55, %14, %cst_28 {dimension_numbers = #tpu.dot_dimension_numbers<[1], [0], [0], [1], [0, 0, 1, 1], [], []>} : vector<8x128xbf16>, vector<128x128xbf16>, vector<8x128xf32> -> vector<8x128xf32>
    %66 = vector.extract_strided_slice %54 {offsets = [0, 128], sizes = [8, 128], strides = [1, 1]} : vector<8x384xbf16> to vector<8x128xbf16>
    %67 = arith.extf %66 : vector<8x128xbf16> to vector<8x128xf32>
    %68 = arith.addf %67, %65 : vector<8x128xf32>
    %69 = arith.negf %68 : vector<8x128xf32>
    %70 = math.exp %69 : vector<8x128xf32>
    %cst_29 = arith.constant 1.000000e+00 : f32
    %71 = vector.broadcast %cst_29 : f32 to vector<8x128xf32>
    %72 = arith.addf %71, %70 : vector<8x128xf32>
    %73 = arith.divf %71, %72 : vector<8x128xf32>
    %cst_30 = arith.constant dense<0.000000e+00> : vector<8x128xf32>
    %74 = tpu.matmul %55, %15, %cst_30 {dimension_numbers = #tpu.dot_dimension_numbers<[1], [0], [0], [1], [0, 0, 1, 1], [], []>} : vector<8x128xbf16>, vector<128x128xbf16>, vector<8x128xf32> -> vector<8x128xf32>
    %75 = vector.extract_strided_slice %54 {offsets = [0, 256], sizes = [8, 128], strides = [1, 1]} : vector<8x384xbf16> to vector<8x128xbf16>
    %76 = arith.addf %74, %18 : vector<8x128xf32>
    %77 = arith.mulf %64, %76 : vector<8x128xf32>
    %78 = arith.extf %75 : vector<8x128xbf16> to vector<8x128xf32>
    %79 = arith.addf %78, %77 : vector<8x128xf32>
    %80 = math.tanh %79 : vector<8x128xf32>
    %81 = arith.subf %49, %80 : vector<8x128xf32>
    %82 = arith.mulf %73, %81 : vector<8x128xf32>
    %83 = arith.addf %80, %82 : vector<8x128xf32>
    %84 = arith.truncf %83 : vector<8x128xf32> to vector<8x128xbf16>
    %c0_31 = arith.constant 0 : index
    %c8_32 = arith.constant 8 : index
    %c0_33 = arith.constant 0 : index
    %85 = vector.load %arg7[%c0_31, %c8_32, %c0_33] : memref<1x64x128xbf16, #tpu.memory_space<vmem>>, vector<1x8x128xbf16>
    %86 = vector.shape_cast %85 : vector<1x8x128xbf16> to vector<8x128xbf16>
    %87 = vector.shape_cast %84 : vector<8x128xbf16> to vector<1x8x128xbf16>
    tpu.vector_store %arg7[%c0_31, %c8_32, %c0_33], %87 {strides = array<i32>} : memref<1x64x128xbf16, #tpu.memory_space<vmem>>, vector<1x8x128xbf16>,
    %c16 = arith.constant 16 : index
    %c0_34 = arith.constant 0 : index
    %88 = vector.load %arg10[%c16, %c0_34] : memref<64x384xbf16, #tpu.memory_space<vmem>>, vector<8x384xbf16>
    %89 = arith.truncf %83 : vector<8x128xf32> to vector<8x128xbf16>
    %cst_35 = arith.constant dense<0.000000e+00> : vector<8x128xf32>
    %90 = tpu.matmul %89, %13, %cst_35 {dimension_numbers = #tpu.dot_dimension_numbers<[1], [0], [0], [1], [0, 0, 1, 1], [], []>} : vector<8x128xbf16>, vector<128x128xbf16>, vector<8x128xf32> -> vector<8x128xf32>
    %91 = vector.extract_strided_slice %88 {offsets = [0, 0], sizes = [8, 128], strides = [1, 1]} : vector<8x384xbf16> to vector<8x128xbf16>
    %92 = arith.extf %91 : vector<8x128xbf16> to vector<8x128xf32>
    %93 = arith.addf %92, %90 : vector<8x128xf32>
    %94 = arith.negf %93 : vector<8x128xf32>
    %95 = math.exp %94 : vector<8x128xf32>
    %cst_36 = arith.constant 1.000000e+00 : f32
    %96 = vector.broadcast %cst_36 : f32 to vector<8x128xf32>
    %97 = arith.addf %96, %95 : vector<8x128xf32>
    %98 = arith.divf %96, %97 : vector<8x128xf32>
    %cst_37 = arith.constant dense<0.000000e+00> : vector<8x128xf32>
    %99 = tpu.matmul %89, %14, %cst_37 {dimension_numbers = #tpu.dot_dimension_numbers<[1], [0], [0], [1], [0, 0, 1, 1], [], []>} : vector<8x128xbf16>, vector<128x128xbf16>, vector<8x128xf32> -> vector<8x128xf32>
    %100 = vector.extract_strided_slice %88 {offsets = [0, 128], sizes = [8, 128], strides = [1, 1]} : vector<8x384xbf16> to vector<8x128xbf16>
    %101 = arith.extf %100 : vector<8x128xbf16> to vector<8x128xf32>
    %102 = arith.addf %101, %99 : vector<8x128xf32>
    %103 = arith.negf %102 : vector<8x128xf32>
    %104 = math.exp %103 : vector<8x128xf32>
    %cst_38 = arith.constant 1.000000e+00 : f32
    %105 = vector.broadcast %cst_38 : f32 to vector<8x128xf32>
    %106 = arith.addf %105, %104 : vector<8x128xf32>
    %107 = arith.divf %105, %106 : vector<8x128xf32>
    %cst_39 = arith.constant dense<0.000000e+00> : vector<8x128xf32>
    %108 = tpu.matmul %89, %15, %cst_39 {dimension_numbers = #tpu.dot_dimension_numbers<[1], [0], [0], [1], [0, 0, 1, 1], [], []>} : vector<8x128xbf16>, vector<128x128xbf16>, vector<8x128xf32> -> vector<8x128xf32>
    %109 = vector.extract_strided_slice %88 {offsets = [0, 256], sizes = [8, 128], strides = [1, 1]} : vector<8x384xbf16> to vector<8x128xbf16>
    %110 = arith.addf %108, %18 : vector<8x128xf32>
    %111 = arith.mulf %98, %110 : vector<8x128xf32>
    %112 = arith.extf %109 : vector<8x128xbf16> to vector<8x128xf32>
    %113 = arith.addf %112, %111 : vector<8x128xf32>
    %114 = math.tanh %113 : vector<8x128xf32>
    %115 = arith.subf %83, %114 : vector<8x128xf32>
    %116 = arith.mulf %107, %115 : vector<8x128xf32>
    %117 = arith.addf %114, %116 : vector<8x128xf32>
    %118 = arith.truncf %117 : vector<8x128xf32> to vector<8x128xbf16>
    %c0_40 = arith.constant 0 : index
    %c16_41 = arith.constant 16 : index
    %c0_42 = arith.constant 0 : index
    %119 = vector.load %arg7[%c0_40, %c16_41, %c0_42] : memref<1x64x128xbf16, #tpu.memory_space<vmem>>, vector<1x8x128xbf16>
    %120 = vector.shape_cast %119 : vector<1x8x128xbf16> to vector<8x128xbf16>
    %121 = vector.shape_cast %118 : vector<8x128xbf16> to vector<1x8x128xbf16>
    tpu.vector_store %arg7[%c0_40, %c16_41, %c0_42], %121 {strides = array<i32>} : memref<1x64x128xbf16, #tpu.memory_space<vmem>>, vector<1x8x128xbf16>,
    %c24 = arith.constant 24 : index
    %c0_43 = arith.constant 0 : index
    %122 = vector.load %arg10[%c24, %c0_43] : memref<64x384xbf16, #tpu.memory_space<vmem>>, vector<8x384xbf16>
    %123 = arith.truncf %117 : vector<8x128xf32> to vector<8x128xbf16>
    %cst_44 = arith.constant dense<0.000000e+00> : vector<8x128xf32>
    %124 = tpu.matmul %123, %13, %cst_44 {dimension_numbers = #tpu.dot_dimension_numbers<[1], [0], [0], [1], [0, 0, 1, 1], [], []>} : vector<8x128xbf16>, vector<128x128xbf16>, vector<8x128xf32> -> vector<8x128xf32>
    %125 = vector.extract_strided_slice %122 {offsets = [0, 0], sizes = [8, 128], strides = [1, 1]} : vector<8x384xbf16> to vector<8x128xbf16>
    %126 = arith.extf %125 : vector<8x128xbf16> to vector<8x128xf32>
    %127 = arith.addf %126, %124 : vector<8x128xf32>
    %128 = arith.negf %127 : vector<8x128xf32>
    %129 = math.exp %128 : vector<8x128xf32>
    %cst_45 = arith.constant 1.000000e+00 : f32
    %130 = vector.broadcast %cst_45 : f32 to vector<8x128xf32>
    %131 = arith.addf %130, %129 : vector<8x128xf32>
    %132 = arith.divf %130, %131 : vector<8x128xf32>
    %cst_46 = arith.constant dense<0.000000e+00> : vector<8x128xf32>
    %133 = tpu.matmul %123, %14, %cst_46 {dimension_numbers = #tpu.dot_dimension_numbers<[1], [0], [0], [1], [0, 0, 1, 1], [], []>} : vector<8x128xbf16>, vector<128x128xbf16>, vector<8x128xf32> -> vector<8x128xf32>
    %134 = vector.extract_strided_slice %122 {offsets = [0, 128], sizes = [8, 128], strides = [1, 1]} : vector<8x384xbf16> to vector<8x128xbf16>
    %135 = arith.extf %134 : vector<8x128xbf16> to vector<8x128xf32>
    %136 = arith.addf %135, %133 : vector<8x128xf32>
    %137 = arith.negf %136 : vector<8x128xf32>
    %138 = math.exp %137 : vector<8x128xf32>
    %cst_47 = arith.constant 1.000000e+00 : f32
    %139 = vector.broadcast %cst_47 : f32 to vector<8x128xf32>
    %140 = arith.addf %139, %138 : vector<8x128xf32>
    %141 = arith.divf %139, %140 : vector<8x128xf32>
    %cst_48 = arith.constant dense<0.000000e+00> : vector<8x128xf32>
    %142 = tpu.matmul %123, %15, %cst_48 {dimension_numbers = #tpu.dot_dimension_numbers<[1], [0], [0], [1], [0, 0, 1, 1], [], []>} : vector<8x128xbf16>, vector<128x128xbf16>, vector<8x128xf32> -> vector<8x128xf32>
    %143 = vector.extract_strided_slice %122 {offsets = [0, 256], sizes = [8, 128], strides = [1, 1]} : vector<8x384xbf16> to vector<8x128xbf16>
    %144 = arith.addf %142, %18 : vector<8x128xf32>
    %145 = arith.mulf %132, %144 : vector<8x128xf32>
    %146 = arith.extf %143 : vector<8x128xbf16> to vector<8x128xf32>
    %147 = arith.addf %146, %145 : vector<8x128xf32>
    %148 = math.tanh %147 : vector<8x128xf32>
    %149 = arith.subf %117, %148 : vector<8x128xf32>
    %150 = arith.mulf %141, %149 : vector<8x128xf32>
    %151 = arith.addf %148, %150 : vector<8x128xf32>
    %152 = arith.truncf %151 : vector<8x128xf32> to vector<8x128xbf16>
    %c0_49 = arith.constant 0 : index
    %c24_50 = arith.constant 24 : index
    %c0_51 = arith.constant 0 : index
    %153 = vector.load %arg7[%c0_49, %c24_50, %c0_51] : memref<1x64x128xbf16, #tpu.memory_space<vmem>>, vector<1x8x128xbf16>
    %154 = vector.shape_cast %153 : vector<1x8x128xbf16> to vector<8x128xbf16>
    %155 = vector.shape_cast %152 : vector<8x128xbf16> to vector<1x8x128xbf16>
    tpu.vector_store %arg7[%c0_49, %c24_50, %c0_51], %155 {strides = array<i32>} : memref<1x64x128xbf16, #tpu.memory_space<vmem>>, vector<1x8x128xbf16>,
    %c32 = arith.constant 32 : index
    %c0_52 = arith.constant 0 : index
    %156 = vector.load %arg10[%c32, %c0_52] : memref<64x384xbf16, #tpu.memory_space<vmem>>, vector<8x384xbf16>
    %157 = arith.truncf %151 : vector<8x128xf32> to vector<8x128xbf16>
    %cst_53 = arith.constant dense<0.000000e+00> : vector<8x128xf32>
    %158 = tpu.matmul %157, %13, %cst_53 {dimension_numbers = #tpu.dot_dimension_numbers<[1], [0], [0], [1], [0, 0, 1, 1], [], []>} : vector<8x128xbf16>, vector<128x128xbf16>, vector<8x128xf32> -> vector<8x128xf32>
    %159 = vector.extract_strided_slice %156 {offsets = [0, 0], sizes = [8, 128], strides = [1, 1]} : vector<8x384xbf16> to vector<8x128xbf16>
    %160 = arith.extf %159 : vector<8x128xbf16> to vector<8x128xf32>
    %161 = arith.addf %160, %158 : vector<8x128xf32>
    %162 = arith.negf %161 : vector<8x128xf32>
    %163 = math.exp %162 : vector<8x128xf32>
    %cst_54 = arith.constant 1.000000e+00 : f32
    %164 = vector.broadcast %cst_54 : f32 to vector<8x128xf32>
    %165 = arith.addf %164, %163 : vector<8x128xf32>
    %166 = arith.divf %164, %165 : vector<8x128xf32>
    %cst_55 = arith.constant dense<0.000000e+00> : vector<8x128xf32>
    %167 = tpu.matmul %157, %14, %cst_55 {dimension_numbers = #tpu.dot_dimension_numbers<[1], [0], [0], [1], [0, 0, 1, 1], [], []>} : vector<8x128xbf16>, vector<128x128xbf16>, vector<8x128xf32> -> vector<8x128xf32>
    %168 = vector.extract_strided_slice %156 {offsets = [0, 128], sizes = [8, 128], strides = [1, 1]} : vector<8x384xbf16> to vector<8x128xbf16>
    %169 = arith.extf %168 : vector<8x128xbf16> to vector<8x128xf32>
    %170 = arith.addf %169, %167 : vector<8x128xf32>
    %171 = arith.negf %170 : vector<8x128xf32>
    %172 = math.exp %171 : vector<8x128xf32>
    %cst_56 = arith.constant 1.000000e+00 : f32
    %173 = vector.broadcast %cst_56 : f32 to vector<8x128xf32>
    %174 = arith.addf %173, %172 : vector<8x128xf32>
    %175 = arith.divf %173, %174 : vector<8x128xf32>
    %cst_57 = arith.constant dense<0.000000e+00> : vector<8x128xf32>
    %176 = tpu.matmul %157, %15, %cst_57 {dimension_numbers = #tpu.dot_dimension_numbers<[1], [0], [0], [1], [0, 0, 1, 1], [], []>} : vector<8x128xbf16>, vector<128x128xbf16>, vector<8x128xf32> -> vector<8x128xf32>
    %177 = vector.extract_strided_slice %156 {offsets = [0, 256], sizes = [8, 128], strides = [1, 1]} : vector<8x384xbf16> to vector<8x128xbf16>
    %178 = arith.addf %176, %18 : vector<8x128xf32>
    %179 = arith.mulf %166, %178 : vector<8x128xf32>
    %180 = arith.extf %177 : vector<8x128xbf16> to vector<8x128xf32>
    %181 = arith.addf %180, %179 : vector<8x128xf32>
    %182 = math.tanh %181 : vector<8x128xf32>
    %183 = arith.subf %151, %182 : vector<8x128xf32>
    %184 = arith.mulf %175, %183 : vector<8x128xf32>
    %185 = arith.addf %182, %184 : vector<8x128xf32>
    %186 = arith.truncf %185 : vector<8x128xf32> to vector<8x128xbf16>
    %c0_58 = arith.constant 0 : index
    %c32_59 = arith.constant 32 : index
    %c0_60 = arith.constant 0 : index
    %187 = vector.load %arg7[%c0_58, %c32_59, %c0_60] : memref<1x64x128xbf16, #tpu.memory_space<vmem>>, vector<1x8x128xbf16>
    %188 = vector.shape_cast %187 : vector<1x8x128xbf16> to vector<8x128xbf16>
    %189 = vector.shape_cast %186 : vector<8x128xbf16> to vector<1x8x128xbf16>
    tpu.vector_store %arg7[%c0_58, %c32_59, %c0_60], %189 {strides = array<i32>} : memref<1x64x128xbf16, #tpu.memory_space<vmem>>, vector<1x8x128xbf16>,
    %c40 = arith.constant 40 : index
    %c0_61 = arith.constant 0 : index
    %190 = vector.load %arg10[%c40, %c0_61] : memref<64x384xbf16, #tpu.memory_space<vmem>>, vector<8x384xbf16>
    %191 = arith.truncf %185 : vector<8x128xf32> to vector<8x128xbf16>
    %cst_62 = arith.constant dense<0.000000e+00> : vector<8x128xf32>
    %192 = tpu.matmul %191, %13, %cst_62 {dimension_numbers = #tpu.dot_dimension_numbers<[1], [0], [0], [1], [0, 0, 1, 1], [], []>} : vector<8x128xbf16>, vector<128x128xbf16>, vector<8x128xf32> -> vector<8x128xf32>
    %193 = vector.extract_strided_slice %190 {offsets = [0, 0], sizes = [8, 128], strides = [1, 1]} : vector<8x384xbf16> to vector<8x128xbf16>
    %194 = arith.extf %193 : vector<8x128xbf16> to vector<8x128xf32>
    %195 = arith.addf %194, %192 : vector<8x128xf32>
    %196 = arith.negf %195 : vector<8x128xf32>
    %197 = math.exp %196 : vector<8x128xf32>
    %cst_63 = arith.constant 1.000000e+00 : f32
    %198 = vector.broadcast %cst_63 : f32 to vector<8x128xf32>
    %199 = arith.addf %198, %197 : vector<8x128xf32>
    %200 = arith.divf %198, %199 : vector<8x128xf32>
    %cst_64 = arith.constant dense<0.000000e+00> : vector<8x128xf32>
    %201 = tpu.matmul %191, %14, %cst_64 {dimension_numbers = #tpu.dot_dimension_numbers<[1], [0], [0], [1], [0, 0, 1, 1], [], []>} : vector<8x128xbf16>, vector<128x128xbf16>, vector<8x128xf32> -> vector<8x128xf32>
    %202 = vector.extract_strided_slice %190 {offsets = [0, 128], sizes = [8, 128], strides = [1, 1]} : vector<8x384xbf16> to vector<8x128xbf16>
    %203 = arith.extf %202 : vector<8x128xbf16> to vector<8x128xf32>
    %204 = arith.addf %203, %201 : vector<8x128xf32>
    %205 = arith.negf %204 : vector<8x128xf32>
    %206 = math.exp %205 : vector<8x128xf32>
    %cst_65 = arith.constant 1.000000e+00 : f32
    %207 = vector.broadcast %cst_65 : f32 to vector<8x128xf32>
    %208 = arith.addf %207, %206 : vector<8x128xf32>
    %209 = arith.divf %207, %208 : vector<8x128xf32>
    %cst_66 = arith.constant dense<0.000000e+00> : vector<8x128xf32>
    %210 = tpu.matmul %191, %15, %cst_66 {dimension_numbers = #tpu.dot_dimension_numbers<[1], [0], [0], [1], [0, 0, 1, 1], [], []>} : vector<8x128xbf16>, vector<128x128xbf16>, vector<8x128xf32> -> vector<8x128xf32>
    %211 = vector.extract_strided_slice %190 {offsets = [0, 256], sizes = [8, 128], strides = [1, 1]} : vector<8x384xbf16> to vector<8x128xbf16>
    %212 = arith.addf %210, %18 : vector<8x128xf32>
    %213 = arith.mulf %200, %212 : vector<8x128xf32>
    %214 = arith.extf %211 : vector<8x128xbf16> to vector<8x128xf32>
    %215 = arith.addf %214, %213 : vector<8x128xf32>
    %216 = math.tanh %215 : vector<8x128xf32>
    %217 = arith.subf %185, %216 : vector<8x128xf32>
    %218 = arith.mulf %209, %217 : vector<8x128xf32>
    %219 = arith.addf %216, %218 : vector<8x128xf32>
    %220 = arith.truncf %219 : vector<8x128xf32> to vector<8x128xbf16>
    %c0_67 = arith.constant 0 : index
    %c40_68 = arith.constant 40 : index
    %c0_69 = arith.constant 0 : index
    %221 = vector.load %arg7[%c0_67, %c40_68, %c0_69] : memref<1x64x128xbf16, #tpu.memory_space<vmem>>, vector<1x8x128xbf16>
    %222 = vector.shape_cast %221 : vector<1x8x128xbf16> to vector<8x128xbf16>
    %223 = vector.shape_cast %220 : vector<8x128xbf16> to vector<1x8x128xbf16>
    tpu.vector_store %arg7[%c0_67, %c40_68, %c0_69], %223 {strides = array<i32>} : memref<1x64x128xbf16, #tpu.memory_space<vmem>>, vector<1x8x128xbf16>,
    %c48 = arith.constant 48 : index
    %c0_70 = arith.constant 0 : index
    %224 = vector.load %arg10[%c48, %c0_70] : memref<64x384xbf16, #tpu.memory_space<vmem>>, vector<8x384xbf16>
    %225 = arith.truncf %219 : vector<8x128xf32> to vector<8x128xbf16>
    %cst_71 = arith.constant dense<0.000000e+00> : vector<8x128xf32>
    %226 = tpu.matmul %225, %13, %cst_71 {dimension_numbers = #tpu.dot_dimension_numbers<[1], [0], [0], [1], [0, 0, 1, 1], [], []>} : vector<8x128xbf16>, vector<128x128xbf16>, vector<8x128xf32> -> vector<8x128xf32>
    %227 = vector.extract_strided_slice %224 {offsets = [0, 0], sizes = [8, 128], strides = [1, 1]} : vector<8x384xbf16> to vector<8x128xbf16>
    %228 = arith.extf %227 : vector<8x128xbf16> to vector<8x128xf32>
    %229 = arith.addf %228, %226 : vector<8x128xf32>
    %230 = arith.negf %229 : vector<8x128xf32>
    %231 = math.exp %230 : vector<8x128xf32>
    %cst_72 = arith.constant 1.000000e+00 : f32
    %232 = vector.broadcast %cst_72 : f32 to vector<8x128xf32>
    %233 = arith.addf %232, %231 : vector<8x128xf32>
    %234 = arith.divf %232, %233 : vector<8x128xf32>
    %cst_73 = arith.constant dense<0.000000e+00> : vector<8x128xf32>
    %235 = tpu.matmul %225, %14, %cst_73 {dimension_numbers = #tpu.dot_dimension_numbers<[1], [0], [0], [1], [0, 0, 1, 1], [], []>} : vector<8x128xbf16>, vector<128x128xbf16>, vector<8x128xf32> -> vector<8x128xf32>
    %236 = vector.extract_strided_slice %224 {offsets = [0, 128], sizes = [8, 128], strides = [1, 1]} : vector<8x384xbf16> to vector<8x128xbf16>
    %237 = arith.extf %236 : vector<8x128xbf16> to vector<8x128xf32>
    %238 = arith.addf %237, %235 : vector<8x128xf32>
    %239 = arith.negf %238 : vector<8x128xf32>
    %240 = math.exp %239 : vector<8x128xf32>
    %cst_74 = arith.constant 1.000000e+00 : f32
    %241 = vector.broadcast %cst_74 : f32 to vector<8x128xf32>
    %242 = arith.addf %241, %240 : vector<8x128xf32>
    %243 = arith.divf %241, %242 : vector<8x128xf32>
    %cst_75 = arith.constant dense<0.000000e+00> : vector<8x128xf32>
    %244 = tpu.matmul %225, %15, %cst_75 {dimension_numbers = #tpu.dot_dimension_numbers<[1], [0], [0], [1], [0, 0, 1, 1], [], []>} : vector<8x128xbf16>, vector<128x128xbf16>, vector<8x128xf32> -> vector<8x128xf32>
    %245 = vector.extract_strided_slice %224 {offsets = [0, 256], sizes = [8, 128], strides = [1, 1]} : vector<8x384xbf16> to vector<8x128xbf16>
    %246 = arith.addf %244, %18 : vector<8x128xf32>
    %247 = arith.mulf %234, %246 : vector<8x128xf32>
    %248 = arith.extf %245 : vector<8x128xbf16> to vector<8x128xf32>
    %249 = arith.addf %248, %247 : vector<8x128xf32>
    %250 = math.tanh %249 : vector<8x128xf32>
    %251 = arith.subf %219, %250 : vector<8x128xf32>
    %252 = arith.mulf %243, %251 : vector<8x128xf32>
    %253 = arith.addf %250, %252 : vector<8x128xf32>
    %254 = arith.truncf %253 : vector<8x128xf32> to vector<8x128xbf16>
    %c0_76 = arith.constant 0 : index
    %c48_77 = arith.constant 48 : index
    %c0_78 = arith.constant 0 : index
    %255 = vector.load %arg7[%c0_76, %c48_77, %c0_78] : memref<1x64x128xbf16, #tpu.memory_space<vmem>>, vector<1x8x128xbf16>
    %256 = vector.shape_cast %255 : vector<1x8x128xbf16> to vector<8x128xbf16>
    %257 = vector.shape_cast %254 : vector<8x128xbf16> to vector<1x8x128xbf16>
    tpu.vector_store %arg7[%c0_76, %c48_77, %c0_78], %257 {strides = array<i32>} : memref<1x64x128xbf16, #tpu.memory_space<vmem>>, vector<1x8x128xbf16>,
    %c56 = arith.constant 56 : index
    %c0_79 = arith.constant 0 : index
    %258 = vector.load %arg10[%c56, %c0_79] : memref<64x384xbf16, #tpu.memory_space<vmem>>, vector<8x384xbf16>
    %259 = arith.truncf %253 : vector<8x128xf32> to vector<8x128xbf16>
    %cst_80 = arith.constant dense<0.000000e+00> : vector<8x128xf32>
    %260 = tpu.matmul %259, %13, %cst_80 {dimension_numbers = #tpu.dot_dimension_numbers<[1], [0], [0], [1], [0, 0, 1, 1], [], []>} : vector<8x128xbf16>, vector<128x128xbf16>, vector<8x128xf32> -> vector<8x128xf32>
    %261 = vector.extract_strided_slice %258 {offsets = [0, 0], sizes = [8, 128], strides = [1, 1]} : vector<8x384xbf16> to vector<8x128xbf16>
    %262 = arith.extf %261 : vector<8x128xbf16> to vector<8x128xf32>
    %263 = arith.addf %262, %260 : vector<8x128xf32>
    %264 = arith.negf %263 : vector<8x128xf32>
    %265 = math.exp %264 : vector<8x128xf32>
    %cst_81 = arith.constant 1.000000e+00 : f32
    %266 = vector.broadcast %cst_81 : f32 to vector<8x128xf32>
    %267 = arith.addf %266, %265 : vector<8x128xf32>
    %268 = arith.divf %266, %267 : vector<8x128xf32>
    %cst_82 = arith.constant dense<0.000000e+00> : vector<8x128xf32>
    %269 = tpu.matmul %259, %14, %cst_82 {dimension_numbers = #tpu.dot_dimension_numbers<[1], [0], [0], [1], [0, 0, 1, 1], [], []>} : vector<8x128xbf16>, vector<128x128xbf16>, vector<8x128xf32> -> vector<8x128xf32>
    %270 = vector.extract_strided_slice %258 {offsets = [0, 128], sizes = [8, 128], strides = [1, 1]} : vector<8x384xbf16> to vector<8x128xbf16>
    %271 = arith.extf %270 : vector<8x128xbf16> to vector<8x128xf32>
    %272 = arith.addf %271, %269 : vector<8x128xf32>
    %273 = arith.negf %272 : vector<8x128xf32>
    %274 = math.exp %273 : vector<8x128xf32>
    %cst_83 = arith.constant 1.000000e+00 : f32
    %275 = vector.broadcast %cst_83 : f32 to vector<8x128xf32>
    %276 = arith.addf %275, %274 : vector<8x128xf32>
    %277 = arith.divf %275, %276 : vector<8x128xf32>
    %cst_84 = arith.constant dense<0.000000e+00> : vector<8x128xf32>
    %278 = tpu.matmul %259, %15, %cst_84 {dimension_numbers = #tpu.dot_dimension_numbers<[1], [0], [0], [1], [0, 0, 1, 1], [], []>} : vector<8x128xbf16>, vector<128x128xbf16>, vector<8x128xf32> -> vector<8x128xf32>
    %279 = vector.extract_strided_slice %258 {offsets = [0, 256], sizes = [8, 128], strides = [1, 1]} : vector<8x384xbf16> to vector<8x128xbf16>
    %280 = arith.addf %278, %18 : vector<8x128xf32>
    %281 = arith.mulf %268, %280 : vector<8x128xf32>
    %282 = arith.extf %279 : vector<8x128xbf16> to vector<8x128xf32>
    %283 = arith.addf %282, %281 : vector<8x128xf32>
    %284 = math.tanh %283 : vector<8x128xf32>
    %285 = arith.subf %253, %284 : vector<8x128xf32>
    %286 = arith.mulf %277, %285 : vector<8x128xf32>
    %287 = arith.addf %284, %286 : vector<8x128xf32>
    %288 = arith.truncf %287 : vector<8x128xf32> to vector<8x128xbf16>
    %c0_85 = arith.constant 0 : index
    %c56_86 = arith.constant 56 : index
    %c0_87 = arith.constant 0 : index
    %289 = vector.load %arg7[%c0_85, %c56_86, %c0_87] : memref<1x64x128xbf16, #tpu.memory_space<vmem>>, vector<1x8x128xbf16>
    %290 = vector.shape_cast %289 : vector<1x8x128xbf16> to vector<8x128xbf16>
    %291 = vector.shape_cast %288 : vector<8x128xbf16> to vector<1x8x128xbf16>
    tpu.vector_store %arg7[%c0_85, %c56_86, %c0_87], %291 {strides = array<i32>} : memref<1x64x128xbf16, #tpu.memory_space<vmem>>, vector<1x8x128xbf16>,
    %c0_88 = arith.constant 0 : index
    %c0_89 = arith.constant 0 : index
    %292 = vector.load %arg9[%c0_88, %c0_89] : memref<8x128xf32, #tpu.memory_space<vmem>>, vector<8x128xf32>
    tpu.vector_store %arg9[%c0_88, %c0_89], %287 {strides = array<i32>} : memref<8x128xf32, #tpu.memory_space<vmem>>, vector<8x128xf32>,
    %c0_90 = arith.constant 0 : index
    %c0_91 = arith.constant 0 : index
    %c0_92 = arith.constant 0 : index
    %293 = vector.load %arg8[%c0_90, %c0_91, %c0_92] : memref<1x8x128xf32, #tpu.memory_space<vmem>>, vector<1x8x128xf32>
    %294 = vector.shape_cast %293 : vector<1x8x128xf32> to vector<8x128xf32>
    %295 = vector.shape_cast %287 : vector<8x128xf32> to vector<1x8x128xf32>
    tpu.vector_store %arg8[%c0_90, %c0_91, %c0_92], %295 {strides = array<i32>} : memref<1x8x128xf32, #tpu.memory_space<vmem>>, vector<1x8x128xf32>,
    return
  }
  func.func @transform_0(%arg0: i32, %arg1: i32) -> (i32, i32, i32) {
    %c0_i32 = arith.constant 0 : i32
    %c0_i32_0 = arith.constant 0 : i32
    return %arg0, %arg1, %c0_i32 : i32, i32, i32
  }
  func.func @transform_1(%arg0: i32, %arg1: i32) -> (i32, i32) {
    %c0_i32 = arith.constant 0 : i32
    %c0_i32_0 = arith.constant 0 : i32
    %c0_i32_1 = arith.constant 0 : i32
    return %c0_i32, %c0_i32_0 : i32, i32
  }
  func.func @transform_2(%arg0: i32, %arg1: i32) -> (i32, i32) {
    %c0_i32 = arith.constant 0 : i32
    %c0_i32_0 = arith.constant 0 : i32
    %c0_i32_1 = arith.constant 0 : i32
    return %c0_i32, %c0_i32_0 : i32, i32
  }
  func.func @transform_3(%arg0: i32, %arg1: i32) -> (i32, i32) {
    %c0_i32 = arith.constant 0 : i32
    %c0_i32_0 = arith.constant 0 : i32
    %c0_i32_1 = arith.constant 0 : i32
    return %c0_i32, %c0_i32_0 : i32, i32
  }
  func.func @transform_4(%arg0: i32, %arg1: i32) -> (i32, i32) {
    %c0_i32 = arith.constant 0 : i32
    %c0_i32_0 = arith.constant 0 : i32
    %c0_i32_1 = arith.constant 0 : i32
    return %c0_i32, %c0_i32_0 : i32, i32
  }
  func.func @transform_5(%arg0: i32, %arg1: i32) -> (i32, i32, i32) {
    %c0_i32 = arith.constant 0 : i32
    %c0_i32_0 = arith.constant 0 : i32
    return %arg0, %arg1, %c0_i32 : i32, i32, i32
  }
  func.func @transform_6(%arg0: i32, %arg1: i32) -> (i32, i32, i32) {
    %c0_i32 = arith.constant 0 : i32
    %c0_i32_0 = arith.constant 0 : i32
    %c0_i32_1 = arith.constant 0 : i32
    return %arg0, %c0_i32, %c0_i32_0 : i32, i32, i32
  }
}

</mosaic_0001>

<bundles_post_ra>
// kernel: tpu_custom_call.1
= control target key start
LH: loop header
LB: loop body
LE: loop exit
PB: predicated region body
PF: predicated region fallthrough
CT: control target
= control target key end

     0   :  { %12 = vsyncpa [#allocation5], 0  ;;  %s3752_s0 = inlined_call_operand.hbm [shape: bf16[1,64,128], index: 0, kind: input, shape index: {}]   ;;  %s3753_s1 = inlined_call_operand.hbm [shape: bf16[128,384], index: 1, kind: input, shape index: {}]   ;;  %s3754_s2 = inlined_call_operand.hbm [shape: bf16[128,384], index: 2, kind: input, shape index: {}]   ;;  %s3755_s3 = inlined_call_operand.vmem [shape: f32[1,384], index: 3, kind: input, shape index: {}]   ;;  %s3756_s4 = inlined_call_operand.vmem [shape: f32[1,128], index: 4, kind: input, shape index: {}]   ;;  %s3757_s5 = inlined_call_operand.hbm [shape: bf16[1,64,128], index: 5, kind: output, shape index: {0}]   ;;  %s3758_s6 = inlined_call_operand.hbm [shape: f32[1,8,128], index: 6, kind: output, shape index: {1}]  }
   0x1   :  { %13 = vsyncpa [#allocation8], 0 }
   0x2   :  { %14 = vsyncpa [#allocation6], 0 }
   0x3   :  { %15 = vsyncpa [#allocation12], 0  ;;  %s3044_s21 = smov [#allocation7]  }
   0x4   :  { %s33_s22 = sshll.u32 %s3044_s21, 4  ;;  %s34_s22 = int_to_ptr.vmem [resolvable:$true] %s33_s22 }
   0x5   :  { %s2944_s23 = scalar_lea.vmem %s34_s22, 3072  ;;  %p2949_p1 = scmp.lt.s32.totalorder %s34_s22, %s34_s22 }
   0x6   :  { %p2945_p0 = scmp.ne.s32.totalorder %s34_s22, %s2944_s23  ;;  %p2950_p2 = scmp.lt.s32.totalorder %s2944_s23, %s2944_s23 }
   0x8   :  { %p2951_p3 = por %p2950_p2, %p2949_p1 }
   0xa   :  { %p2952_p4 = pnand %p2951_p3, %p2945_p0 }
   0xc   :  { %2955 = shalt.err (!%p2952_p4)
}
   0xd   :  { %s3045_s24 = smov 192   ;;  %s3046_s25 = smov 12  }
   0xe   :  { %39 = dma.hbm_to_vmem [thread:$0]  %s3753_s1, 3072, %s34_s22, [#allocation8], %s3045_s24, %s3045_s24, %s3046_s25  }
   0xf   :  { %s3047_s28 = smov [#allocation4]  }
  0x10   :  { %s21_s29 = sshll.u32 %s3047_s28, 4  ;;  %s22_s29 = int_to_ptr.vmem [resolvable:$true] %s21_s29 }
  0x11   :  { %s2964_s30 = scalar_lea.vmem %s22_s29, 512  ;;  %p2969_p6 = scmp.lt.s32.totalorder %s22_s29, %s22_s29 }
  0x12   :  { %p2965_p5 = scmp.ne.s32.totalorder %s22_s29, %s2964_s30  ;;  %p2970_p7 = scmp.lt.s32.totalorder %s2964_s30, %s2964_s30 }
  0x14   :  { %p2971_p8 = por %p2970_p7, %p2969_p6 }
  0x16   :  { %p2972_p9 = pnand %p2971_p8, %p2965_p5 }
  0x18   :  { %2975 = shalt.err (!%p2972_p9)
}
  0x19   :  { %s3048_s7 = smov 64   ;;  %s3049_s8 = smov 4  }
  0x1a   :  { %27 = dma.hbm_to_vmem [thread:$0]  %s3752_s0, 512, %s22_s29, [#allocation5], %s3048_s7, %s3048_s7, %s3049_s8  }
  0x1b   :  { %s3050_s1 = smov [#allocation9]  }
  0x1c   :  { %s45_s11 = sshll.u32 %s3050_s1, 4  ;;  %s46_s11 = int_to_ptr.vmem [resolvable:$true] %s45_s11 }
  0x1d   :  { %s2984_s12 = scalar_lea.vmem %s46_s11, 3072  ;;  %p2989_p11 = scmp.lt.s32.totalorder %s46_s11, %s46_s11 }
  0x1e   :  { %p2985_p10 = scmp.ne.s32.totalorder %s46_s11, %s2984_s12  ;;  %p2990_p12 = scmp.lt.s32.totalorder %s2984_s12, %s2984_s12 }
  0x20   :  { %p2991_p13 = por %p2990_p12, %p2989_p11 }
  0x22   :  { %p2992_p0 = pnand %p2991_p13, %p2985_p10 }
  0x24   :  { %2995 = shalt.err (!%p2992_p0)
}
  0x25   :  { %51 = dma.hbm_to_vmem [thread:$0]  %s3754_s2, 3072, %s46_s11, [#allocation8], %s3045_s24, %s3045_s24, %s3046_s25  }
  0x26   :  { %3036 = dma.done.wait [#allocation5], 512  }
  0x27   :  { %3037 = vsyncadd [#allocation5], 4294966784 }
  0x28   :  { %3038 = dma.done.wait [#allocation8], 6144  }
  0x29   :  { %3039 = vsyncadd [#allocation8], 4294961152  ;;  %v3051_v0 = vmov 0   ;;  %v2763_v1 = vld [vmem:[#allocation7 + $0xac] ss:$12 sps:$4 sm:$0xff]   ;;  %v2795_v18 = vld [vmem:[#allocation4] sm:$0xff]   ;;  %v113_v55 = vlaneseq }
  0x2a   :  { %312 = vmatprep.mubr.bf16.mxu0 %v3051_v0  ;;  %v2765_v2 = vld [vmem:[#allocation7 + $0xb0] ss:$12 sps:$4 sm:$0xff]   ;;  %280 = vmatprep.subr.bf16.mxu0 %v2763_v1  ;;  %v2766_v3 = vld [vmem:[#allocation7 + $0xa8] ss:$12 sps:$4 sm:$0xff]   ;;  %v2769_v5 = vld [vmem:[#allocation7 + $0x98] ss:$12 sps:$4 sm:$0xff]  }
  0x2b   :  { %2246 = vmatprep.subr.bf16.mxu1 %v2765_v2  ;;  %v2767_v4 = vld [vmem:[#allocation7 + $0x94] ss:$12 sps:$4 sm:$0xff]   ;;  %281 = vmatpush1.bf16.msra.mxu0 %v2766_v3  ;;  %v2770_v6 = vld [vmem:[#allocation7 + $0x90] ss:$12 sps:$4 sm:$0xff]   ;;  %v2774_v9 = vld [vmem:[#allocation7 + $0x78] ss:$12 sps:$4 sm:$0xff]  }
  0x2c   :  { %2247 = vmatpush3.bf16.msra.mxu1 %v2765_v2  ;;  %282 = vmatprep.subr.bf16.mxu0 %v2767_v4  ;;  %v2771_v7 = vld [vmem:[#allocation7 + $0x7c] ss:$12 sps:$4 sm:$0xff]   ;;  %v2773_v8 = vld [vmem:[#allocation7 + $0x80] ss:$12 sps:$4 sm:$0xff]   ;;  %v2775_v10 = vld [vmem:[#allocation7 + $0x64] ss:$12 sps:$4 sm:$0xff]  }
  0x2d   :  { %2248 = vmatprep.subr.bf16.mxu1 %v2769_v5  ;;  %v2777_v11 = vld [vmem:[#allocation7 + $0x68] ss:$12 sps:$4 sm:$0xff]   ;;  %v2778_v12 = vld [vmem:[#allocation7 + $0x60] ss:$12 sps:$4 sm:$0xff]   ;;  %v2781_v14 = vld [vmem:[#allocation7 + $0x50] ss:$12 sps:$4 sm:$0xff]   ;;  %2262 = vmatprep.mubr.bf16.mxu1 %v2795_v18 }
  0x2e   :  { %v2779_v13 = vld [vmem:[#allocation7 + $0x4c] ss:$12 sps:$4 sm:$0xff]   ;;  %v2782_v15 = vld [vmem:[#allocation7 + $0x48] ss:$12 sps:$4 sm:$0xff]   ;;  %v2786_v19 = vld [vmem:[#allocation7 + $0x30] ss:$12 sps:$4 sm:$0xff]  }
  0x2f   :  { %283 = vmatpush1.bf16.msra.mxu0 %v2770_v6  ;;  %v2783_v16 = vld [vmem:[#allocation7 + $0x34] ss:$12 sps:$4 sm:$0xff]   ;;  %v2785_v17 = vld [vmem:[#allocation7 + $0x38] ss:$12 sps:$4 sm:$0xff]   ;;  %v2787_v20 = vld [vmem:[#allocation7 + $0x1c] ss:$12 sps:$4 sm:$0xff]  }
  0x30   :  { %2249 = vmatpush3.bf16.msra.mxu1 %v2769_v5  ;;  %284 = vmatprep.subr.bf16.mxu0 %v2771_v7  ;;  %v2789_v21 = vld [vmem:[#allocation7 + $0x20] ss:$12 sps:$4 sm:$0xff]   ;;  %v2790_v22 = vld [vmem:[#allocation7 + $0x18] ss:$12 sps:$4 sm:$0xff]   ;;  %v2793_v24 = vld [vmem:[#allocation7 + $0x8] ss:$12 sps:$4 sm:$0xff]  }
  0x31   :  { %2250 = vmatprep.subr.bf16.mxu1 %v2773_v8  ;;  %v2791_v23 = vld [vmem:[#allocation7 + $0x4] ss:$12 sps:$4 sm:$0xff]   ;;  %v2794_v25 = vld [vmem:[#allocation7] ss:$12 sps:$4 sm:$0xff]   ;;  %v3105_v27 = vld [vmem:[#allocation9 + $0xa8] ss:$12 sps:$4 sm:$0xff]  }
  0x32   :  { %v2796_v26 = vld [vmem:[#allocation4 + $0x8] sm:$0xff]   ;;  %v3052_v29 = vmov 0.0   ;;  %v3111_v30 = vld [vmem:[#allocation9 + $0x90] ss:$12 sps:$4 sm:$0xff]   ;;  %v3113_v31 = vld [vmem:[#allocation9 + $0x94] ss:$12 sps:$4 sm:$0xff]  }
  0x33   :  { %285 = vmatpush1.bf16.msra.mxu0 %v2774_v9  ;;  %v3107_v28 = vld [vmem:[#allocation9 + $0xac] ss:$12 sps:$4 sm:$0xff]   ;;  %v2809_v32 = vld [vmem:[#allocation4 + $0x10] sm:$0xff]   ;;  %v3124_v35 = vld [vmem:[#allocation9 + $0x7c] ss:$12 sps:$4 sm:$0xff]   ;;  %vm3053_vm0 = vmmov 0  }
  0x34   :  { %2251 = vmatpush3.bf16.msra.mxu1 %v2773_v8  ;;  %286 = vmatprep.subr.bf16.mxu0 %v2775_v10  ;;  %v3120_v33 = vld [vmem:[#allocation9 + $0x78] ss:$12 sps:$4 sm:$0xff]   ;;  %v3130_v36 = vld [vmem:[#allocation9 + $0x60] ss:$12 sps:$4 sm:$0xff]   ;;  %v3141_v38 = vld [vmem:[#allocation9 + $0x48] ss:$12 sps:$4 sm:$0xff]  }
  0x35   :  { %2252 = vmatprep.subr.bf16.mxu1 %v2777_v11  ;;  %v2816_v34 = vld [vmem:[#allocation4 + $0x18] sm:$0xff]   ;;  %v3132_v37 = vld [vmem:[#allocation9 + $0x64] ss:$12 sps:$4 sm:$0xff]   ;;  %v3151_v41 = vld [vmem:[#allocation9 + $0x34] ss:$12 sps:$4 sm:$0xff]   ;;  %v3054_v47 = vmov 0.0|0.0  }
  0x36   :  { %v3143_v39 = vld [vmem:[#allocation9 + $0x4c] ss:$12 sps:$4 sm:$0xff]   ;;  %v3149_v40 = vld [vmem:[#allocation9 + $0x30] ss:$12 sps:$4 sm:$0xff]   ;;  %v3197_v50 = vld [vmem:[#allocation9 + $0x68] ss:$12 sps:$4 sm:$0xff]  }
  0x37   :  { %287 = vmatpush1.bf16.msra.mxu0 %v2778_v12  ;;  %v3158_v42 = vld [vmem:[#allocation9 + $0x18] ss:$12 sps:$4 sm:$0xff]   ;;  %v3160_v43 = vld [vmem:[#allocation9 + $0x1c] ss:$12 sps:$4 sm:$0xff]   ;;  %v3166_v44 = vld [vmem:[#allocation9] ss:$12 sps:$4 sm:$0xff]  }
  0x38   :  { %2253 = vmatpush3.bf16.msra.mxu1 %v2777_v11  ;;  %288 = vmatprep.subr.bf16.mxu0 %v2779_v13  ;;  %v3168_v45 = vld [vmem:[#allocation9 + $0x4] ss:$12 sps:$4 sm:$0xff]   ;;  %v3191_v49 = vld [vmem:[#allocation9 + $0x80] ss:$12 sps:$4 sm:$0xff]   ;;  %v3221_v54 = vld [vmem:[#allocation9 + $0x8] ss:$12 sps:$4 sm:$0xff]  }
  0x39   :  { %2254 = vmatprep.subr.bf16.mxu1 %v2781_v14  ;;  %v3176_v46 = vld [vmem:[#allocation9 + $0xb0] ss:$12 sps:$4 sm:$0xff]   ;;  %v3181_v48 = vld [vmem:[#allocation9 + $0x98] ss:$12 sps:$4 sm:$0xff]   ;;  %v3215_v53 = vld [vmem:[#allocation9 + $0x20] ss:$12 sps:$4 sm:$0xff]  }
  0x3a   :  { %v3203_v51 = vld [vmem:[#allocation9 + $0x50] ss:$12 sps:$4 sm:$0xff]   ;;  %v3209_v52 = vld [vmem:[#allocation9 + $0x38] ss:$12 sps:$4 sm:$0xff]   ;;  %v114_v56 = vshrl.u32 %v113_v55, 7  ;;  %s3056_s19 = smov [#allocation10]  }
  0x3b   :  { %289 = vmatpush1.bf16.msra.mxu0 %v2782_v15  ;;  %v111_v60 = vld [vmem:[%s3755_s3] sm:$0x7]  ;;  %s1890_s20 = sshll.u32 %s3056_s19, 4  ;;  %s1891_s20 = int_to_ptr.vmem [resolvable:$true] %s1890_s20 }
  0x3c   :  { %2255 = vmatpush3.bf16.msra.mxu1 %v2781_v14  ;;  %290 = vmatprep.subr.bf16.mxu0 %v2783_v16  ;;  %v123_v57 = vsub.s32 2, %v114_v56  ;;  %v115_v58 = vsub.s32 0, %v114_v56  ;;  %v119_v59 = vsub.s32 1, %v114_v56 }
  0x3d   :  { %2256 = vmatprep.subr.bf16.mxu1 %v2785_v17 }
  0x3e   :  { %v124_v61 = vrot.slane %v111_v60, %v123_v57  ;;  %v3251_v62 = vrot.slane %v111_v60, %v115_v58  ;;  %v3253_v63 = vrot.slane %v111_v60, %v119_v59 }
  0x3f   :  { %291 = vmatpush1.bf16.msra.mxu0 %v2786_v19 }
  0x40   :  { %2257 = vmatpush3.bf16.msra.mxu1 %v2785_v17  ;;  %292 = vmatprep.subr.bf16.mxu0 %v2787_v20 }
  0x41   :  { %2258 = vmatprep.subr.bf16.mxu1 %v2789_v21 }
  0x43   :  { %293 = vmatpush1.bf16.msra.mxu0 %v2790_v22 }
  0x44   :  { %2259 = vmatpush3.bf16.msra.mxu1 %v2789_v21  ;;  %294 = vmatprep.subr.bf16.mxu0 %v2791_v23 }
  0x45   :  { %2260 = vmatprep.subr.bf16.mxu1 %v2793_v24 }
  0x47   :  { %295 = vmatpush1.bf16.msra.mxu0 %v2794_v25 }
  0x48   :  { %2261 = vmatpush3.bf16.msra.mxu1 %v2793_v24  ;;  %2270 = vmatprep.subr.bf16.mxu0 %v3052_v29 }
  0x49   :  { %2290 = vmatprep.subr.bf16.mxu1 %v3052_v29 }
  0x4a   :  { %313 = vmatmul.mubr.bf16.vlgmr.msra.gmra.mxu0 %v2795_v18 }
  0x4b   :  { %2263 = vmatmul.mubr.bf16.vlgmr.msra.gmra.mxu1 %v2796_v26  ;;  %2271 = vmatpush3.bf16.msra.mxu0 %v3105_v27 }
  0x4c   :  { %2291 = vmatpush3.bf16.msra.mxu1 %v3107_v28  ;;  %2272 = vmatprep.subr.bf16.mxu0 %v3052_v29 }
  0x4d   :  { %2292 = vmatprep.subr.bf16.mxu1 %v3052_v29  ;;  %322 = vmatprep.mubr.bf16.mxu0 %v3051_v0 }
  0x4e   :  { %2266 = vmatprep.mubr.bf16.mxu1 %v2809_v32 }
  0x4f   :  { %2273 = vmatpush3.bf16.msra.mxu0 %v3111_v30 }
  0x50   :  { %2293 = vmatpush3.bf16.msra.mxu1 %v3113_v31  ;;  %2274 = vmatprep.subr.bf16.mxu0 %v3052_v29 }
  0x51   :  { %2294 = vmatprep.subr.bf16.mxu1 %v3052_v29 }
  0x52   :  { %323 = vmatmul.mubr.bf16.gmra.mxu0 %v2796_v26 }
  0x53   :  { %2267 = vmatmul.mubr.bf16.gmra.mxu1 %v2816_v34  ;;  %2275 = vmatpush3.bf16.msra.mxu0 %v3120_v33 }
  0x54   :  { %2295 = vmatpush3.bf16.msra.mxu1 %v3124_v35  ;;  %2276 = vmatprep.subr.bf16.mxu0 %v3052_v29 }
  0x55   :  { %2296 = vmatprep.subr.bf16.mxu1 %v3052_v29  ;;  %332 = vmatprep.mubr.bf16.mxu0 %v3051_v0 }
  0x56   :  { %2306 = vmatprep.mubr.msk.bf16.mxu1 %vm3053_vm0, %v3052_v29 }
  0x57   :  { %2277 = vmatpush3.bf16.msra.mxu0 %v3130_v36 }
  0x58   :  { %2297 = vmatpush3.bf16.msra.mxu1 %v3132_v37  ;;  %2278 = vmatprep.subr.bf16.mxu0 %v3052_v29 }
  0x59   :  { %2298 = vmatprep.subr.bf16.mxu1 %v3052_v29 }
  0x5a   :  { %333 = vmatmul.mubr.bf16.gmra.mxu0 %v2809_v32 }
  0x5b   :  { %2279 = vmatpush3.bf16.msra.mxu0 %v3141_v38  ;;  %342 = vmatprep.mubr.bf16.mxu0 %v3051_v0 }
  0x5c   :  { %2299 = vmatpush3.bf16.msra.mxu1 %v3143_v39  ;;  %2280 = vmatprep.subr.bf16.mxu0 %v3052_v29 }
  0x5d   :  { %2300 = vmatprep.subr.bf16.mxu1 %v3052_v29 }
  0x5f   :  { %2281 = vmatpush3.bf16.msra.mxu0 %v3149_v40 }
  0x60   :  { %2301 = vmatpush3.bf16.msra.mxu1 %v3151_v41  ;;  %2282 = vmatprep.subr.bf16.mxu0 %v3052_v29 }
  0x61   :  { %2302 = vmatprep.subr.bf16.mxu1 %v3052_v29 }
  0x62   :  { %343 = vmatmul.mubr.bf16.gmra.mxu0 %v2816_v34 }
  0x63   :  { %2283 = vmatpush3.bf16.msra.mxu0 %v3158_v42  ;;  %2286 = vmatprep.mubr.msk.bf16.mxu0 %vm3053_vm0, %v3052_v29 }
  0x64   :  { %2303 = vmatpush3.bf16.msra.mxu1 %v3160_v43  ;;  %2284 = vmatprep.subr.bf16.mxu0 %v3052_v29 }
  0x65   :  { %2304 = vmatprep.subr.bf16.mxu1 %v3052_v29 }
  0x67   :  { %2285 = vmatpush3.bf16.msra.mxu0 %v3166_v44 }
  0x68   :  { %2305 = vmatpush3.bf16.msra.mxu1 %v3168_v45  ;;  %2310 = vmatprep.subr.bf16.mxu0 %v3052_v29 }
  0x69   :  { %2330 = vmatprep.subr.bf16.mxu1 %v3052_v29 }
  0x6a   :  { %2287 = vmatmul.mubr.bf16.vlgmr.msra.gmra.mxu0 %v3054_v47 }
  0x6b   :  { %2307 = vmatmul.mubr.bf16.vlgmr.msra.gmra.mxu1 %v3054_v47  ;;  %2311 = vmatpush3.bf16.msra.mxu0 %v3176_v46 }
  0x6c   :  { %2326 = vmatprep.mubr.msk.bf16.mxu0 %vm3053_vm0, %v3052_v29  ;;  %2312 = vmatprep.subr.bf16.mxu0 %v3052_v29 }
  0x6d   :  { %2331 = vmatpush3.bf16.msra.mxu1 %v3105_v27  ;;  %2346 = vmatprep.mubr.msk.bf16.mxu1 %vm3053_vm0, %v3052_v29 }
  0x6e   :  { %2332 = vmatprep.subr.bf16.mxu1 %v3052_v29 }
  0x6f   :  { %2313 = vmatpush3.bf16.msra.mxu0 %v3181_v48 }
  0x70   :  { %2314 = vmatprep.subr.bf16.mxu0 %v3052_v29 }
  0x71   :  { %2333 = vmatpush3.bf16.msra.mxu1 %v3111_v30 }
  0x72   :  { %2334 = vmatprep.subr.bf16.mxu1 %v3052_v29 }
  0x73   :  { %2315 = vmatpush3.bf16.msra.mxu0 %v3191_v49 }
  0x74   :  { %2316 = vmatprep.subr.bf16.mxu0 %v3052_v29 }
  0x75   :  { %2335 = vmatpush3.bf16.msra.mxu1 %v3120_v33 }
  0x76   :  { %2336 = vmatprep.subr.bf16.mxu1 %v3052_v29 }
  0x77   :  { %2317 = vmatpush3.bf16.msra.mxu0 %v3197_v50 }
  0x78   :  { %2318 = vmatprep.subr.bf16.mxu0 %v3052_v29 }
  0x79   :  { %2337 = vmatpush3.bf16.msra.mxu1 %v3130_v36 }
  0x7a   :  { %2338 = vmatprep.subr.bf16.mxu1 %v3052_v29 }
  0x7b   :  { %2319 = vmatpush3.bf16.msra.mxu0 %v3203_v51 }
  0x7c   :  { %2320 = vmatprep.subr.bf16.mxu0 %v3052_v29 }
  0x7d   :  { %2339 = vmatpush3.bf16.msra.mxu1 %v3141_v38 }
  0x7e   :  { %2340 = vmatprep.subr.bf16.mxu1 %v3052_v29 }
  0x7f   :  { %2321 = vmatpush3.bf16.msra.mxu0 %v3209_v52 }
  0x80   :  { %2322 = vmatprep.subr.bf16.mxu0 %v3052_v29 }
  0x81   :  { %2341 = vmatpush3.bf16.msra.mxu1 %v3149_v40 }
  0x82   :  { %2342 = vmatprep.subr.bf16.mxu1 %v3052_v29 }
  0x83   :  { %2323 = vmatpush3.bf16.msra.mxu0 %v3215_v53 }
  0x84   :  { %2324 = vmatprep.subr.bf16.mxu0 %v3052_v29 }
  0x85   :  { %2343 = vmatpush3.bf16.msra.mxu1 %v3158_v42 }
  0x86   :  { %2344 = vmatprep.subr.bf16.mxu1 %v3052_v29 }
  0x87   :  { %2325 = vmatpush3.bf16.msra.mxu0 %v3221_v54 }
  0x88   :  { %2350 = vmatprep.subr.bf16.mxu0 %v3052_v29 }
  0x89   :  { %2345 = vmatpush3.bf16.msra.mxu1 %v3166_v44 }
  0x8a   :  { %2370 = vmatprep.subr.bf16.mxu1 %v3052_v29  ;;  %2327 = vmatmul.mubr.bf16.vlgmr.msra.gmra.mxu0 %v3054_v47 }
  0x8b   :  { %2351 = vmatpush3.bf16.msra.mxu0 %v3107_v28  ;;  %2366 = vmatprep.mubr.msk.bf16.mxu0 %vm3053_vm0, %v3052_v29 }
  0x8c   :  { %2352 = vmatprep.subr.bf16.mxu0 %v3052_v29 }
  0x8f   :  { %2353 = vmatpush3.bf16.msra.mxu0 %v3113_v31 }
  0x90   :  { %2354 = vmatprep.subr.bf16.mxu0 %v3052_v29 }
  0x93   :  { %2355 = vmatpush3.bf16.msra.mxu0 %v3124_v35 }
  0x94   :  { %2356 = vmatprep.subr.bf16.mxu0 %v3052_v29 }
  0x97   :  { %2357 = vmatpush3.bf16.msra.mxu0 %v3132_v37 }
  0x98   :  { %2358 = vmatprep.subr.bf16.mxu0 %v3052_v29 }
  0x9b   :  { %2359 = vmatpush3.bf16.msra.mxu0 %v3143_v39 }
  0x9c   :  { %2360 = vmatprep.subr.bf16.mxu0 %v3052_v29 }
  0x9f   :  { %2361 = vmatpush3.bf16.msra.mxu0 %v3151_v41 }
  0xa0   :  { %2362 = vmatprep.subr.bf16.mxu0 %v3052_v29 }
  0xa3   :  { %2363 = vmatpush3.bf16.msra.mxu0 %v3160_v43 }
  0xa4   :  { %2364 = vmatprep.subr.bf16.mxu0 %v3052_v29 }
  0xa7   :  { %2365 = vmatpush3.bf16.msra.mxu0 %v3168_v45 }
  0xa8   :  { %2390 = vmatprep.subr.bf16.mxu0 %v3052_v29 }
 0x10a   :  { %v314_v0 = vpop.f32.mrf.mxu0 }
 0x10b   :  { %v2264_v1 = vpop.f32.mrf.mxu1  ;;  %v315_v5 = vadd.f32 %v314_v0, %v3251_v62 }
 0x10c   :  { %v396_v2 = vadd.f32 %v2264_v1, %v124_v61  ;;  %v316_v3 = vpop.f32.mrf.mxu0 }
 0x10d   :  { %v387_v4 = vpop.f32.mrf.mxu1  ;;  %v317_v6 = vadd.f32 %v316_v3, %v3253_v63 }
 0x10e   :  { %v2007_v7 = vpack.c.bf16 %v396_v2, %v396_v2  ;;  %v388_v8 = vadd.f32 %v387_v4, %v124_v61  ;;  %v318_v9 = vpop.f32.mrf.mxu0 }
 0x10f   :  { %v2265_v10 = vpop.f32.mrf.mxu1  ;;  %v3257_v11 = vpack.c.bf16 %v317_v6, %v315_v5  ;;  %v319_v16 = vadd.f32 %v318_v9, %v3251_v62 }
 0x110   :  { %503 = vst [vmem:[#allocation3 + $0x20] sm:$0xf] %v2007_v7  ;;  %v2003_v12 = vpack.c.bf16 %v388_v8, %v388_v8  ;;  %v399_v13 = vadd.f32 %v2265_v10, %v124_v61  ;;  %v320_v14 = vpop.f32.mrf.mxu0 }
 0x111   :  { %v390_v15 = vpop.f32.mrf.mxu1  ;;  %v321_v17 = vadd.f32 %v320_v14, %v3253_v63 }
 0x112   :  { %499 = vst [vmem:[#allocation3 + $0x8] sm:$0xf] %v2003_v12  ;;  %v2009_v18 = vpack.c.bf16 %v399_v13, %v399_v13  ;;  %v391_v19 = vadd.f32 %v390_v15, %v124_v61  ;;  %v324_v20 = vpop.f32.mrf.mxu0 }
 0x113   :  { %v2268_v21 = vpop.f32.mrf.mxu1  ;;  %v3261_v22 = vpack.c.bf16 %v321_v17, %v319_v16  ;;  %v325_v32 = vadd.f32 %v324_v20, %v3251_v62 }
 0x114   :  { %505 = vst [vmem:[#allocation3 + $0x2c] sm:$0xf] %v2009_v18  ;;  %v2005_v23 = vpack.c.bf16 %v391_v19, %v391_v19  ;;  %v412_v24 = vadd.f32 %v2268_v21, %v124_v61  ;;  %v326_v25 = vpop.f32.mrf.mxu0 }
 0x115   :  { %v403_v26 = vpop.f32.mrf.mxu1  ;;  %v327_v34 = vadd.f32 %v326_v25, %v3253_v63 }
 0x116   :  { %501 = vst [vmem:[#allocation3 + $0x14] sm:$0xf] %v2005_v23  ;;  %v2015_v47 = vpack.c.bf16 %v412_v24, %v412_v24  ;;  %v404_v55 = vadd.f32 %v403_v26, %v124_v61  ;;  %v328_v56 = vpop.f32.mrf.mxu0 }
 0x117   :  { %v2269_v57 = vpop.f32.mrf.mxu1  ;;  %v3265_v58 = vpack.c.bf16 %v327_v34, %v325_v32  ;;  %v329_v2 = vadd.f32 %v328_v56, %v3251_v62  ;;  %v645_v34 = vunpack.c.l.bf16 %v3257_v11 }
 0x118   :  { %511 = vst [vmem:[#allocation3 + $0x50] sm:$0xf] %v2015_v47  ;;  %v2011_v59 = vpack.c.bf16 %v404_v55, %v404_v55  ;;  %v415_v60 = vadd.f32 %v2269_v57, %v124_v61  ;;  %v330_v0 = vpop.f32.mrf.mxu0 }
 0x119   :  { %v406_v1 = vpop.f32.mrf.mxu1  ;;  %v331_v3 = vadd.f32 %v330_v0, %v3253_v63 }
 0x11a   :  { %507 = vst [vmem:[#allocation3 + $0x38] sm:$0xf] %v2011_v59  ;;  %v2017_v4 = vpack.c.bf16 %v415_v60, %v415_v60  ;;  %v407_v5 = vadd.f32 %v406_v1, %v124_v61  ;;  %v334_v6 = vpop.f32.mrf.mxu0 }
 0x11b   :  { %v3269_v7 = vpack.c.bf16 %v331_v3, %v329_v2  ;;  %v335_v10 = vadd.f32 %v334_v6, %v3251_v62  ;;  %v726_v3 = vrot.slane %v3257_v11, 4 }
 0x11c   :  { %513 = vst [vmem:[#allocation3 + $0x5c] sm:$0xf] %v2017_v4  ;;  %v2013_v8 = vpack.c.bf16 %v407_v5, %v407_v5  ;;  %v336_v9 = vpop.f32.mrf.mxu0 }
 0x11d   :  { %v337_v12 = vadd.f32 %v336_v9, %v3253_v63 }
 0x11e   :  { %509 = vst [vmem:[#allocation3 + $0x44] sm:$0xf] %v2013_v8  ;;  %v338_v13 = vpop.f32.mrf.mxu0 }
 0x11f   :  { %v3273_v14 = vpack.c.bf16 %v337_v12, %v335_v10  ;;  %v339_v16 = vadd.f32 %v338_v13, %v3251_v62  ;;  %v3288_v10 = vld [vmem:[%s3756_s4] ss:$0 sm:$0xff]  ;;  %v3290_v12 = vld [vmem:[#allocation3 + $0x8] ss:$12 sps:$4 sm:$0xff]  }
 0x120   :  { %v340_v15 = vpop.f32.mrf.mxu0 }
 0x121   :  { %v341_v17 = vadd.f32 %v340_v15, %v3253_v63 }
 0x122   :  { %v344_v61 = vpop.f32.mrf.mxu0 }
 0x123   :  { %v3277_v18 = vpack.c.bf16 %v341_v17, %v339_v16  ;;  %v345_v20 = vadd.f32 %v344_v61, %v3251_v62 }
 0x124   :  { %v346_v19 = vpop.f32.mrf.mxu0 }
 0x125   :  { %v347_v21 = vadd.f32 %v346_v19, %v3253_v63  ;;  %v825_v19 = vunpack.c.l.bf16 %v3290_v12 }
 0x126   :  { %v348_v23 = vpop.f32.mrf.mxu0 }
 0x127   :  { %v2014_v24 = vpack.c.bf16 %v347_v21, %v345_v20  ;;  %v349_v26 = vadd.f32 %v348_v23, %v3251_v62  ;;  %v728_v62 = vunpack.c.l.bf16 %v726_v3 }
 0x128   :  { %v350_v25 = vpop.f32.mrf.mxu0 }
 0x129   :  { %510 = vst [vmem:[#allocation3 + $0x48] sm:$0xff] %v2014_v24  ;;  %v351_v32 = vadd.f32 %v350_v25, %v3253_v63 }
 0x12a   :  { %v639_v47 = vpop.f32.mrf.mxu0 }
 0x12b   :  { %v719_v55 = vpop.f32.mrf.mxu1  ;;  %v2016_v56 = vpack.c.bf16 %v351_v32, %v349_v26  ;;  %v646_v57 = vadd.f32 %v645_v34, %v639_v47 }
 0x12c   :  { %v2288_v59 = vpop.f32.mrf.mxu0  ;;  %v729_v6 = vadd.f32 %v728_v62, %v719_v55 }
 0x12d   :  { %v2308_v60 = vpop.f32.mrf.mxu1  ;;  %512 = vst [vmem:[#allocation3 + $0x54] sm:$0xff] %v2016_v56  ;;  %v1970_v0 = vmul.f32 -1.442695, %v646_v57  ;;  %v875_v56 = vunpack.c.l.bf16 %v3261_v22 }
 0x12e   :  { %v642_v1 = vpop.f32.mrf.mxu0  ;;  %v1979_v63 = vmul.f32 -1.442695, %v729_v6 }
 0x12f   :  { %v722_v2 = vpop.f32.mrf.mxu1  ;;  %2831 = vpow2.f32 %v1970_v0 }
 0x130   :  { %v2289_v4 = vpop.f32.mrf.mxu0  ;;  %2833 = vpow2.f32 %v1979_v63 }
 0x131   :  { %v2309_v5 = vpop.f32.mrf.mxu1 }
 0x132   :  { %v924_v5 = vrot.slane %v3261_v22, 4 }
 0x134   :  { %v926_v63 = vunpack.c.l.bf16 %v924_v5  ;;  %v1074_v5 = vrot.slane %v3265_v58, 4 }
 0x13c   :  { %v2832_v8 = vpop.eup %2831 }
 0x13d   :  { %v650_v9 = vadd.f32 1.0, %v2832_v8  ;;  %v2834_v15 = vpop.eup %2833 }
 0x13e   :  { %v733_v21 = vadd.f32 1.0, %v2834_v15 }
 0x13f   :  { %2835 = vrcp.f32 %v650_v9 }
 0x14a   :  { %v818_v13 = vpop.f32.mrf.mxu0 }
 0x14b   :  { %v819_v11 = vadd.f32 %v3288_v10, %v818_v13 }
 0x14c   :  { %v2836_v16 = vpop.eup %2835  ;;  %v2328_v17 = vpop.f32.mrf.mxu0 }
 0x14d   :  { %v824_v61 = vmul.f32 %v2836_v16, %v819_v11 }
 0x14e   :  { %v821_v20 = vpop.f32.mrf.mxu0 }
 0x14f   :  { %v826_v23 = vadd.f32 %v825_v19, %v824_v61 }
 0x150   :  { %v2329_v24 = vpop.f32.mrf.mxu0 }
 0x151   :  { %2837 = vtanh.f32 %v826_v23 }
 0x152   :  { %2839 = vrcp.f32 %v733_v21  ;;  %v975_v21 = vunpack.c.h.bf16 %v3290_v12  ;;  %v1025_v12 = vunpack.c.l.bf16 %v3265_v58 }
 0x15e   :  { %v2838_v25 = vpop.eup %2837 }
 0x15f   :  { %v828_v26 = vsub.f32 0.0, %v2838_v25  ;;  %v2840_v32 = vpop.eup %2839 }
 0x161   :  { %v829_v34 = vmul.f32 %v2840_v32, %v828_v26 }
 0x163   :  { %v3294_v47 = vadd.f32 %v2838_v25, %v829_v34 }
 0x165   :  { %v831_v55 = vpack.c.bf16 %v3294_v47, %v3294_v47 }
 0x167   :  { %832 = vst [vmem:[#allocation10] sm:$0xf] %v831_v55  ;;  %2347 = vmatmul.mubr.bf16.vlgmr.msra.gmra.mxu1 %v831_v55  ;;  %2367 = vmatmul.mubr.bf16.vlgmr.msra.gmra.mxu0 %v831_v55 }
 0x168   :  { %2371 = vmatpush3.bf16.msra.mxu1 %v3176_v46  ;;  %2386 = vmatprep.mubr.msk.bf16.mxu1 %vm3053_vm0, %v3052_v29 }
 0x169   :  { %2372 = vmatprep.subr.bf16.mxu1 %v3052_v29  ;;  %2391 = vmatpush3.bf16.msra.mxu0 %v3105_v27 }
 0x16a   :  { %2392 = vmatprep.subr.bf16.mxu0 %v3052_v29  ;;  %2406 = vmatprep.mubr.msk.bf16.mxu0 %vm3053_vm0, %v3052_v29 }
 0x16c   :  { %2373 = vmatpush3.bf16.msra.mxu1 %v3181_v48 }
 0x16d   :  { %2374 = vmatprep.subr.bf16.mxu1 %v3052_v29  ;;  %2393 = vmatpush3.bf16.msra.mxu0 %v3111_v30 }
 0x16e   :  { %2394 = vmatprep.subr.bf16.mxu0 %v3052_v29 }
 0x170   :  { %2375 = vmatpush3.bf16.msra.mxu1 %v3191_v49 }
 0x171   :  { %2376 = vmatprep.subr.bf16.mxu1 %v3052_v29  ;;  %2395 = vmatpush3.bf16.msra.mxu0 %v3120_v33 }
 0x172   :  { %2396 = vmatprep.subr.bf16.mxu0 %v3052_v29 }
 0x174   :  { %2377 = vmatpush3.bf16.msra.mxu1 %v3197_v50 }
 0x175   :  { %2378 = vmatprep.subr.bf16.mxu1 %v3052_v29  ;;  %2397 = vmatpush3.bf16.msra.mxu0 %v3130_v36 }
 0x176   :  { %2398 = vmatprep.subr.bf16.mxu0 %v3052_v29 }
 0x178   :  { %2379 = vmatpush3.bf16.msra.mxu1 %v3203_v51 }
 0x179   :  { %2380 = vmatprep.subr.bf16.mxu1 %v3052_v29  ;;  %2399 = vmatpush3.bf16.msra.mxu0 %v3141_v38 }
 0x17a   :  { %2400 = vmatprep.subr.bf16.mxu0 %v3052_v29 }
 0x17c   :  { %2381 = vmatpush3.bf16.msra.mxu1 %v3209_v52 }
 0x17d   :  { %2382 = vmatprep.subr.bf16.mxu1 %v3052_v29  ;;  %2401 = vmatpush3.bf16.msra.mxu0 %v3149_v40 }
 0x17e   :  { %2402 = vmatprep.subr.bf16.mxu0 %v3052_v29 }
 0x180   :  { %2383 = vmatpush3.bf16.msra.mxu1 %v3215_v53 }
 0x181   :  { %2384 = vmatprep.subr.bf16.mxu1 %v3052_v29  ;;  %2403 = vmatpush3.bf16.msra.mxu0 %v3158_v42 }
 0x182   :  { %2404 = vmatprep.subr.bf16.mxu0 %v3052_v29 }
 0x184   :  { %2385 = vmatpush3.bf16.msra.mxu1 %v3221_v54 }
 0x185   :  { %2410 = vmatprep.subr.bf16.mxu1 %v3052_v29  ;;  %2405 = vmatpush3.bf16.msra.mxu0 %v3166_v44 }
 0x186   :  { %2430 = vmatprep.subr.bf16.mxu0 %v3052_v29 }
 0x187   :  { %2387 = vmatmul.mubr.bf16.vlgmr.msra.gmra.mxu1 %v831_v55 }
 0x188   :  { %2411 = vmatpush3.bf16.msra.mxu1 %v3107_v28  ;;  %2426 = vmatprep.mubr.msk.bf16.mxu1 %vm3053_vm0, %v3052_v29 }
 0x189   :  { %2412 = vmatprep.subr.bf16.mxu1 %v3052_v29 }
 0x18c   :  { %2413 = vmatpush3.bf16.msra.mxu1 %v3113_v31 }
 0x18d   :  { %2414 = vmatprep.subr.bf16.mxu1 %v3052_v29 }
 0x190   :  { %2415 = vmatpush3.bf16.msra.mxu1 %v3124_v35 }
 0x191   :  { %2416 = vmatprep.subr.bf16.mxu1 %v3052_v29 }
 0x194   :  { %2417 = vmatpush3.bf16.msra.mxu1 %v3132_v37 }
 0x195   :  { %2418 = vmatprep.subr.bf16.mxu1 %v3052_v29 }
 0x198   :  { %2419 = vmatpush3.bf16.msra.mxu1 %v3143_v39 }
 0x199   :  { %2420 = vmatprep.subr.bf16.mxu1 %v3052_v29 }
 0x19c   :  { %2421 = vmatpush3.bf16.msra.mxu1 %v3151_v41 }
 0x19d   :  { %2422 = vmatprep.subr.bf16.mxu1 %v3052_v29 }
 0x1a0   :  { %2423 = vmatpush3.bf16.msra.mxu1 %v3160_v43 }
 0x1a1   :  { %2424 = vmatprep.subr.bf16.mxu1 %v3052_v29 }
 0x1a4   :  { %2425 = vmatpush3.bf16.msra.mxu1 %v3168_v45 }
 0x1a5   :  { %2450 = vmatprep.subr.bf16.mxu1 %v3052_v29 }
 0x227   :  { %v869_v57 = vpop.f32.mrf.mxu1  ;;  %v917_v59 = vpop.f32.mrf.mxu0 }
 0x228   :  { %v876_v60 = vadd.f32 %v875_v56, %v869_v57  ;;  %v927_v8 = vadd.f32 %v926_v63, %v917_v59  ;;  %v1076_v63 = vunpack.c.l.bf16 %v1074_v5 }
 0x229   :  { %v2348_v0 = vpop.f32.mrf.mxu1  ;;  %v2368_v1 = vpop.f32.mrf.mxu0 }
 0x22a   :  { %v1988_v2 = vmul.f32 -1.442695, %v876_v60  ;;  %v1989_v9 = vmul.f32 -1.442695, %v927_v8 }
 0x22b   :  { %v872_v3 = vpop.f32.mrf.mxu1  ;;  %v920_v4 = vpop.f32.mrf.mxu0 }
 0x22c   :  { %2841 = vpow2.f32 %v1988_v2 }
 0x22d   :  { %v2349_v62 = vpop.f32.mrf.mxu1  ;;  %v2369_v6 = vpop.f32.mrf.mxu0  ;;  %2843 = vpow2.f32 %v1989_v9 }
 0x239   :  { %v2842_v13 = vpop.eup %2841 }
 0x23a   :  { %v880_v15 = vadd.f32 1.0, %v2842_v13  ;;  %v2844_v16 = vpop.eup %2843 }
 0x23b   :  { %v931_v22 = vadd.f32 1.0, %v2844_v16 }
 0x23c   :  { %2845 = vrcp.f32 %v880_v15 }
 0x247   :  { %v968_v11 = vpop.f32.mrf.mxu1 }
 0x248   :  { %v969_v17 = vadd.f32 %v3288_v10, %v968_v11  ;;  %v3417_v11 = vld [vmem:[#allocation3 + $0x20] ss:$12 sps:$4 sm:$0xff]  }
 0x249   :  { %v2846_v61 = vpop.eup %2845  ;;  %v2388_v19 = vpop.f32.mrf.mxu1  ;;  %v1125_v58 = vunpack.c.l.bf16 %v3417_v11 }
 0x24a   :  { %v974_v20 = vmul.f32 %v2846_v61, %v969_v17 }
 0x24b   :  { %v971_v23 = vpop.f32.mrf.mxu1 }
 0x24c   :  { %v976_v24 = vadd.f32 %v975_v21, %v974_v20 }
 0x24d   :  { %v2389_v25 = vpop.f32.mrf.mxu1 }
 0x24e   :  { %2847 = vtanh.f32 %v976_v24 }
 0x24f   :  { %2849 = vrcp.f32 %v931_v22 }
 0x25b   :  { %v2848_v26 = vpop.eup %2847 }
 0x25c   :  { %v978_v32 = vsub.f32 %v3294_v47, %v2848_v26  ;;  %v2850_v34 = vpop.eup %2849 }
 0x25e   :  { %v979_v55 = vmul.f32 %v2850_v34, %v978_v32 }
 0x260   :  { %v3357_v56 = vadd.f32 %v2848_v26, %v979_v55 }
 0x262   :  { %v981_v57 = vpack.c.bf16 %v3357_v56, %v3357_v56 }
 0x264   :  { %982 = vst [vmem:[#allocation10 + $0x4] sm:$0xf] %v981_v57  ;;  %2407 = vmatmul.mubr.bf16.vlgmr.msra.gmra.mxu0 %v981_v57  ;;  %2427 = vmatmul.mubr.bf16.vlgmr.msra.gmra.mxu1 %v981_v57 }
 0x265   :  { %2431 = vmatpush3.bf16.msra.mxu0 %v3176_v46  ;;  %2446 = vmatprep.mubr.msk.bf16.mxu0 %vm3053_vm0, %v3052_v29 }
 0x266   :  { %2432 = vmatprep.subr.bf16.mxu0 %v3052_v29  ;;  %2451 = vmatpush3.bf16.msra.mxu1 %v3105_v27 }
 0x267   :  { %2452 = vmatprep.subr.bf16.mxu1 %v3052_v29  ;;  %2466 = vmatprep.mubr.msk.bf16.mxu1 %vm3053_vm0, %v3052_v29 }
 0x269   :  { %2433 = vmatpush3.bf16.msra.mxu0 %v3181_v48 }
 0x26a   :  { %2434 = vmatprep.subr.bf16.mxu0 %v3052_v29  ;;  %2453 = vmatpush3.bf16.msra.mxu1 %v3111_v30 }
 0x26b   :  { %2454 = vmatprep.subr.bf16.mxu1 %v3052_v29 }
 0x26d   :  { %2435 = vmatpush3.bf16.msra.mxu0 %v3191_v49 }
 0x26e   :  { %2436 = vmatprep.subr.bf16.mxu0 %v3052_v29  ;;  %2455 = vmatpush3.bf16.msra.mxu1 %v3120_v33 }
 0x26f   :  { %2456 = vmatprep.subr.bf16.mxu1 %v3052_v29 }
 0x271   :  { %2437 = vmatpush3.bf16.msra.mxu0 %v3197_v50 }
 0x272   :  { %2438 = vmatprep.subr.bf16.mxu0 %v3052_v29  ;;  %2457 = vmatpush3.bf16.msra.mxu1 %v3130_v36 }
 0x273   :  { %2458 = vmatprep.subr.bf16.mxu1 %v3052_v29 }
 0x275   :  { %2439 = vmatpush3.bf16.msra.mxu0 %v3203_v51 }
 0x276   :  { %2440 = vmatprep.subr.bf16.mxu0 %v3052_v29  ;;  %2459 = vmatpush3.bf16.msra.mxu1 %v3141_v38 }
 0x277   :  { %2460 = vmatprep.subr.bf16.mxu1 %v3052_v29 }
 0x279   :  { %2441 = vmatpush3.bf16.msra.mxu0 %v3209_v52 }
 0x27a   :  { %2442 = vmatprep.subr.bf16.mxu0 %v3052_v29  ;;  %2461 = vmatpush3.bf16.msra.mxu1 %v3149_v40 }
 0x27b   :  { %2462 = vmatprep.subr.bf16.mxu1 %v3052_v29 }
 0x27d   :  { %2443 = vmatpush3.bf16.msra.mxu0 %v3215_v53 }
 0x27e   :  { %2444 = vmatprep.subr.bf16.mxu0 %v3052_v29  ;;  %2463 = vmatpush3.bf16.msra.mxu1 %v3158_v42 }
 0x27f   :  { %2464 = vmatprep.subr.bf16.mxu1 %v3052_v29 }
 0x281   :  { %2445 = vmatpush3.bf16.msra.mxu0 %v3221_v54 }
 0x282   :  { %2470 = vmatprep.subr.bf16.mxu0 %v3052_v29  ;;  %2465 = vmatpush3.bf16.msra.mxu1 %v3166_v44 }
 0x283   :  { %2490 = vmatprep.subr.bf16.mxu1 %v3052_v29 }
 0x284   :  { %2447 = vmatmul.mubr.bf16.vlgmr.msra.gmra.mxu0 %v981_v57 }
 0x285   :  { %2471 = vmatpush3.bf16.msra.mxu0 %v3107_v28  ;;  %2486 = vmatprep.mubr.msk.bf16.mxu0 %vm3053_vm0, %v3052_v29 }
 0x286   :  { %2472 = vmatprep.subr.bf16.mxu0 %v3052_v29 }
 0x289   :  { %2473 = vmatpush3.bf16.msra.mxu0 %v3113_v31 }
 0x28a   :  { %2474 = vmatprep.subr.bf16.mxu0 %v3052_v29 }
 0x28d   :  { %2475 = vmatpush3.bf16.msra.mxu0 %v3124_v35 }
 0x28e   :  { %2476 = vmatprep.subr.bf16.mxu0 %v3052_v29 }
 0x291   :  { %2477 = vmatpush3.bf16.msra.mxu0 %v3132_v37 }
 0x292   :  { %2478 = vmatprep.subr.bf16.mxu0 %v3052_v29 }
 0x295   :  { %2479 = vmatpush3.bf16.msra.mxu0 %v3143_v39 }
 0x296   :  { %2480 = vmatprep.subr.bf16.mxu0 %v3052_v29 }
 0x299   :  { %2481 = vmatpush3.bf16.msra.mxu0 %v3151_v41 }
 0x29a   :  { %2482 = vmatprep.subr.bf16.mxu0 %v3052_v29 }
 0x29d   :  { %2483 = vmatpush3.bf16.msra.mxu0 %v3160_v43 }
 0x29e   :  { %2484 = vmatprep.subr.bf16.mxu0 %v3052_v29 }
 0x2a1   :  { %2485 = vmatpush3.bf16.msra.mxu0 %v3168_v45 }
 0x2a2   :  { %2510 = vmatprep.subr.bf16.mxu0 %v3052_v29 }
 0x324   :  { %v1019_v47 = vpop.f32.mrf.mxu0  ;;  %v1067_v59 = vpop.f32.mrf.mxu1 }
 0x325   :  { %v1026_v60 = vadd.f32 %v1025_v12, %v1019_v47  ;;  %v1077_v8 = vadd.f32 %v1076_v63, %v1067_v59 }
 0x326   :  { %v2408_v0 = vpop.f32.mrf.mxu0  ;;  %v2428_v1 = vpop.f32.mrf.mxu1 }
 0x327   :  { %v1990_v2 = vmul.f32 -1.442695, %v1026_v60  ;;  %v1991_v9 = vmul.f32 -1.442695, %v1077_v8 }
 0x328   :  { %v1022_v3 = vpop.f32.mrf.mxu0  ;;  %v1070_v4 = vpop.f32.mrf.mxu1 }
 0x329   :  { %2851 = vpow2.f32 %v1990_v2  ;;  %v1275_v3 = vunpack.c.h.bf16 %v3417_v11  ;;  %v3493_v11 = vld [vmem:[#allocation9 + $0xa8] ss:$12 sps:$4 sm:$0xff]  }
 0x32a   :  { %v2409_v62 = vpop.f32.mrf.mxu0  ;;  %v2429_v6 = vpop.f32.mrf.mxu1  ;;  %2853 = vpow2.f32 %v1991_v9 }
 0x336   :  { %v2852_v13 = vpop.eup %2851 }
 0x337   :  { %v1030_v15 = vadd.f32 1.0, %v2852_v13  ;;  %v2854_v17 = vpop.eup %2853 }
 0x338   :  { %v1081_v22 = vadd.f32 1.0, %v2854_v17  ;;  %v3547_v17 = vld [vmem:[#allocation9 + $0x94] ss:$12 sps:$4 sm:$0xff]  }
 0x339   :  { %2855 = vrcp.f32 %v1030_v15 }
 0x344   :  { %v1118_v16 = vpop.f32.mrf.mxu0 }
 0x345   :  { %v1119_v61 = vadd.f32 %v3288_v10, %v1118_v16  ;;  %v3501_v16 = vld [vmem:[#allocation9 + $0x90] ss:$12 sps:$4 sm:$0xff]  }
 0x346   :  { %v2856_v19 = vpop.eup %2855  ;;  %v2448_v20 = vpop.f32.mrf.mxu0 }
 0x347   :  { %v1124_v21 = vmul.f32 %v2856_v19, %v1119_v61  ;;  %v3555_v61 = vld [vmem:[#allocation9 + $0x64] ss:$12 sps:$4 sm:$0xff]   ;;  %v3559_v19 = vld [vmem:[#allocation9 + $0x4c] ss:$12 sps:$4 sm:$0xff]   ;;  %v3563_v20 = vld [vmem:[#allocation9 + $0x34] ss:$12 sps:$4 sm:$0xff]  }
 0x348   :  { %v1121_v23 = vpop.f32.mrf.mxu0 }
 0x349   :  { %v1126_v24 = vadd.f32 %v1125_v58, %v1124_v21  ;;  %v3567_v21 = vld [vmem:[#allocation9 + $0x1c] ss:$12 sps:$4 sm:$0xff]   ;;  %v3571_v58 = vld [vmem:[#allocation9 + $0x4] ss:$12 sps:$4 sm:$0xff]   ;;  %v1325_v23 = vunpack.c.l.bf16 %v3273_v14 }
 0x34a   :  { %v2449_v25 = vpop.f32.mrf.mxu0 }
 0x34b   :  { %2857 = vtanh.f32 %v1126_v24 }
 0x34c   :  { %2859 = vrcp.f32 %v1081_v22 }
 0x358   :  { %v2858_v26 = vpop.eup %2857 }
 0x359   :  { %v1128_v32 = vsub.f32 %v3357_v56, %v2858_v26  ;;  %v2860_v34 = vpop.eup %2859 }
 0x35b   :  { %v1129_v55 = vmul.f32 %v2860_v34, %v1128_v32 }
 0x35d   :  { %v3422_v57 = vadd.f32 %v2858_v26, %v1129_v55 }
 0x35f   :  { %v1131_v12 = vpack.c.bf16 %v3422_v57, %v3422_v57 }
 0x361   :  { %1132 = vst [vmem:[#allocation10 + $0x8] sm:$0xf] %v1131_v12  ;;  %2467 = vmatmul.mubr.bf16.vlgmr.msra.gmra.mxu1 %v1131_v12  ;;  %2487 = vmatmul.mubr.bf16.vlgmr.msra.gmra.mxu0 %v1131_v12 }
 0x362   :  { %2491 = vmatpush3.bf16.msra.mxu1 %v3176_v46  ;;  %2506 = vmatprep.mubr.msk.bf16.mxu1 %vm3053_vm0, %v3052_v29 }
 0x363   :  { %2492 = vmatprep.subr.bf16.mxu1 %v3052_v29  ;;  %2511 = vmatpush3.bf16.msra.mxu0 %v3105_v27  ;;  %v1175_v27 = vunpack.c.l.bf16 %v3269_v7 }
 0x364   :  { %2512 = vmatprep.subr.bf16.mxu0 %v3052_v29  ;;  %2526 = vmatprep.mubr.msk.bf16.mxu0 %vm3053_vm0, %v3052_v29 }
 0x366   :  { %2493 = vmatpush3.bf16.msra.mxu1 %v3181_v48 }
 0x367   :  { %2494 = vmatprep.subr.bf16.mxu1 %v3052_v29  ;;  %2513 = vmatpush3.bf16.msra.mxu0 %v3111_v30 }
 0x368   :  { %2514 = vmatprep.subr.bf16.mxu0 %v3052_v29 }
 0x36a   :  { %2495 = vmatpush3.bf16.msra.mxu1 %v3191_v49 }
 0x36b   :  { %2496 = vmatprep.subr.bf16.mxu1 %v3052_v29  ;;  %2515 = vmatpush3.bf16.msra.mxu0 %v3120_v33 }
 0x36c   :  { %2516 = vmatprep.subr.bf16.mxu0 %v3052_v29 }
 0x36e   :  { %2497 = vmatpush3.bf16.msra.mxu1 %v3197_v50 }
 0x36f   :  { %2498 = vmatprep.subr.bf16.mxu1 %v3052_v29  ;;  %2517 = vmatpush3.bf16.msra.mxu0 %v3130_v36 }
 0x370   :  { %2518 = vmatprep.subr.bf16.mxu0 %v3052_v29 }
 0x372   :  { %2499 = vmatpush3.bf16.msra.mxu1 %v3203_v51 }
 0x373   :  { %2500 = vmatprep.subr.bf16.mxu1 %v3052_v29  ;;  %2519 = vmatpush3.bf16.msra.mxu0 %v3141_v38 }
 0x374   :  { %2520 = vmatprep.subr.bf16.mxu0 %v3052_v29 }
 0x376   :  { %2501 = vmatpush3.bf16.msra.mxu1 %v3209_v52 }
 0x377   :  { %2502 = vmatprep.subr.bf16.mxu1 %v3052_v29  ;;  %2521 = vmatpush3.bf16.msra.mxu0 %v3149_v40 }
 0x378   :  { %2522 = vmatprep.subr.bf16.mxu0 %v3052_v29 }
 0x37a   :  { %2503 = vmatpush3.bf16.msra.mxu1 %v3215_v53 }
 0x37b   :  { %2504 = vmatprep.subr.bf16.mxu1 %v3052_v29  ;;  %2523 = vmatpush3.bf16.msra.mxu0 %v3158_v42 }
 0x37c   :  { %2524 = vmatprep.subr.bf16.mxu0 %v3052_v29 }
 0x37e   :  { %2505 = vmatpush3.bf16.msra.mxu1 %v3221_v54 }
 0x37f   :  { %2530 = vmatprep.subr.bf16.mxu1 %v3052_v29  ;;  %2525 = vmatpush3.bf16.msra.mxu0 %v3166_v44 }
 0x380   :  { %2550 = vmatprep.subr.bf16.mxu0 %v3052_v29 }
 0x381   :  { %2507 = vmatmul.mubr.bf16.vlgmr.msra.gmra.mxu1 %v1131_v12  ;;  %v1374_v12 = vrot.slane %v3273_v14, 4 }
 0x382   :  { %2531 = vmatpush3.bf16.msra.mxu1 %v3107_v28  ;;  %2546 = vmatprep.mubr.msk.bf16.mxu1 %vm3053_vm0, %v3052_v29 }
 0x383   :  { %2532 = vmatprep.subr.bf16.mxu1 %v3052_v29 }
 0x386   :  { %2533 = vmatpush3.bf16.msra.mxu1 %v3113_v31 }
 0x387   :  { %2534 = vmatprep.subr.bf16.mxu1 %v3052_v29 }
 0x38a   :  { %2535 = vmatpush3.bf16.msra.mxu1 %v3124_v35 }
 0x38b   :  { %2536 = vmatprep.subr.bf16.mxu1 %v3052_v29 }
 0x38e   :  { %2537 = vmatpush3.bf16.msra.mxu1 %v3132_v37 }
 0x38f   :  { %2538 = vmatprep.subr.bf16.mxu1 %v3052_v29 }
 0x392   :  { %2539 = vmatpush3.bf16.msra.mxu1 %v3143_v39  ;;  %v1224_v39 = vrot.slane %v3269_v7, 4 }
 0x393   :  { %2540 = vmatprep.subr.bf16.mxu1 %v3052_v29 }
 0x394   :  { %v1226_v42 = vunpack.c.l.bf16 %v1224_v39 }
 0x396   :  { %2541 = vmatpush3.bf16.msra.mxu1 %v3151_v41 }
 0x397   :  { %2542 = vmatprep.subr.bf16.mxu1 %v3052_v29 }
 0x39a   :  { %2543 = vmatpush3.bf16.msra.mxu1 %v3160_v43 }
 0x39b   :  { %2544 = vmatprep.subr.bf16.mxu1 %v3052_v29 }
 0x39e   :  { %2545 = vmatpush3.bf16.msra.mxu1 %v3168_v45 }
 0x39f   :  { %2570 = vmatprep.subr.bf16.mxu1 %v3052_v29 }
 0x421   :  { %v1169_v28 = vpop.f32.mrf.mxu1  ;;  %v1217_v30 = vpop.f32.mrf.mxu0 }
 0x422   :  { %v1176_v31 = vadd.f32 %v1175_v27, %v1169_v28  ;;  %v1227_v43 = vadd.f32 %v1226_v42, %v1217_v30  ;;  %v1376_v30 = vunpack.c.l.bf16 %v1374_v12 }
 0x423   :  { %v2468_v33 = vpop.f32.mrf.mxu1  ;;  %v2488_v35 = vpop.f32.mrf.mxu0 }
 0x424   :  { %v1992_v36 = vmul.f32 -1.442695, %v1176_v31  ;;  %v1993_v44 = vmul.f32 -1.442695, %v1227_v43 }
 0x425   :  { %v1172_v37 = vpop.f32.mrf.mxu1  ;;  %v1220_v38 = vpop.f32.mrf.mxu0 }
 0x426   :  { %2861 = vpow2.f32 %v1992_v36  ;;  %v3577_v37 = vld [vmem:[#allocation3 + $0x38] ss:$12 sps:$4 sm:$0xff]  }
 0x427   :  { %v2469_v40 = vpop.f32.mrf.mxu1  ;;  %v2489_v41 = vpop.f32.mrf.mxu0  ;;  %2863 = vpow2.f32 %v1993_v44  ;;  %v1425_v14 = vunpack.c.l.bf16 %v3577_v37 }
 0x433   :  { %v2862_v45 = vpop.eup %2861 }
 0x434   :  { %v1180_v56 = vadd.f32 1.0, %v2862_v45  ;;  %v2864_v59 = vpop.eup %2863 }
 0x435   :  { %v1231_v7 = vadd.f32 1.0, %v2864_v59 }
 0x436   :  { %2865 = vrcp.f32 %v1180_v56 }
 0x441   :  { %v1268_v47 = vpop.f32.mrf.mxu1 }
 0x442   :  { %v1269_v60 = vadd.f32 %v3288_v10, %v1268_v47 }
 0x443   :  { %v2866_v0 = vpop.eup %2865  ;;  %v2508_v1 = vpop.f32.mrf.mxu1 }
 0x444   :  { %v1274_v2 = vmul.f32 %v2866_v0, %v1269_v60 }
 0x445   :  { %v1271_v4 = vpop.f32.mrf.mxu1 }
 0x446   :  { %v1276_v5 = vadd.f32 %v1275_v3, %v1274_v2  ;;  %v3586_v4 = vld [vmem:[#allocation9 + $0xb0] ss:$12 sps:$4 sm:$0xff]  }
 0x447   :  { %v2509_v62 = vpop.f32.mrf.mxu1 }
 0x448   :  { %2867 = vtanh.f32 %v1276_v5  ;;  %v3602_v5 = vld [vmem:[#allocation9 + $0x80] ss:$12 sps:$4 sm:$0xff]   ;;  %v3608_v62 = vld [vmem:[#allocation9 + $0x68] ss:$12 sps:$4 sm:$0xff]  }
 0x449   :  { %2869 = vrcp.f32 %v1231_v7  ;;  %v3596_v7 = vld [vmem:[#allocation9 + $0x98] ss:$12 sps:$4 sm:$0xff]  }
 0x455   :  { %v2868_v6 = vpop.eup %2867 }
 0x456   :  { %v1278_v63 = vsub.f32 %v3422_v57, %v2868_v6  ;;  %v2870_v8 = vpop.eup %2869 }
 0x458   :  { %v1279_v9 = vmul.f32 %v2870_v8, %v1278_v63  ;;  %v3620_v63 = vld [vmem:[#allocation9 + $0x38] ss:$12 sps:$4 sm:$0xff]   ;;  %v3626_v8 = vld [vmem:[#allocation9 + $0x20] ss:$12 sps:$4 sm:$0xff]  }
 0x45a   :  { %v3485_v13 = vadd.f32 %v2868_v6, %v1279_v9  ;;  %v3614_v6 = vld [vmem:[#allocation9 + $0x50] ss:$12 sps:$4 sm:$0xff]   ;;  %v3632_v9 = vld [vmem:[#allocation9 + $0x8] ss:$12 sps:$4 sm:$0xff]  }
 0x45c   :  { %v1281_v15 = vpack.c.bf16 %v3485_v13, %v3485_v13 }
 0x45e   :  { %1282 = vst [vmem:[#allocation10 + $0xc] sm:$0xf] %v1281_v15  ;;  %2527 = vmatmul.mubr.bf16.vlgmr.msra.gmra.mxu0 %v1281_v15  ;;  %2547 = vmatmul.mubr.bf16.vlgmr.msra.gmra.mxu1 %v1281_v15 }
 0x45f   :  { %2551 = vmatpush3.bf16.msra.mxu0 %v3176_v46  ;;  %2566 = vmatprep.mubr.msk.bf16.mxu0 %vm3053_vm0, %v3052_v29  ;;  %v3507_v46 = vld [vmem:[#allocation9 + $0x78] ss:$12 sps:$4 sm:$0xff]  }
 0x460   :  { %2552 = vmatprep.subr.bf16.mxu0 %v3052_v29  ;;  %2571 = vmatpush3.bf16.msra.mxu1 %v3493_v11 }
 0x461   :  { %2572 = vmatprep.subr.bf16.mxu1 %v3052_v29  ;;  %2586 = vmatprep.mubr.msk.bf16.mxu1 %vm3053_vm0, %v3052_v29 }
 0x463   :  { %2553 = vmatpush3.bf16.msra.mxu0 %v3181_v48  ;;  %v3513_v48 = vld [vmem:[#allocation9 + $0x60] ss:$12 sps:$4 sm:$0xff]  }
 0x464   :  { %2554 = vmatprep.subr.bf16.mxu0 %v3052_v29  ;;  %2573 = vmatpush3.bf16.msra.mxu1 %v3501_v16 }
 0x465   :  { %2574 = vmatprep.subr.bf16.mxu1 %v3052_v29 }
 0x467   :  { %2555 = vmatpush3.bf16.msra.mxu0 %v3191_v49  ;;  %v3519_v49 = vld [vmem:[#allocation9 + $0x48] ss:$12 sps:$4 sm:$0xff]  }
 0x468   :  { %2556 = vmatprep.subr.bf16.mxu0 %v3052_v29  ;;  %2575 = vmatpush3.bf16.msra.mxu1 %v3507_v46 }
 0x469   :  { %2576 = vmatprep.subr.bf16.mxu1 %v3052_v29 }
 0x46b   :  { %2557 = vmatpush3.bf16.msra.mxu0 %v3197_v50  ;;  %v3525_v50 = vld [vmem:[#allocation9 + $0x30] ss:$12 sps:$4 sm:$0xff]  }
 0x46c   :  { %2558 = vmatprep.subr.bf16.mxu0 %v3052_v29  ;;  %2577 = vmatpush3.bf16.msra.mxu1 %v3513_v48 }
 0x46d   :  { %2578 = vmatprep.subr.bf16.mxu1 %v3052_v29 }
 0x46f   :  { %2559 = vmatpush3.bf16.msra.mxu0 %v3203_v51  ;;  %v3531_v51 = vld [vmem:[#allocation9 + $0x18] ss:$12 sps:$4 sm:$0xff]  }
 0x470   :  { %2560 = vmatprep.subr.bf16.mxu0 %v3052_v29  ;;  %2579 = vmatpush3.bf16.msra.mxu1 %v3519_v49 }
 0x471   :  { %2580 = vmatprep.subr.bf16.mxu1 %v3052_v29 }
 0x473   :  { %2561 = vmatpush3.bf16.msra.mxu0 %v3209_v52  ;;  %v3537_v52 = vld [vmem:[#allocation9] ss:$12 sps:$4 sm:$0xff]  }
 0x474   :  { %2562 = vmatprep.subr.bf16.mxu0 %v3052_v29  ;;  %2581 = vmatpush3.bf16.msra.mxu1 %v3525_v50 }
 0x475   :  { %2582 = vmatprep.subr.bf16.mxu1 %v3052_v29 }
 0x477   :  { %2563 = vmatpush3.bf16.msra.mxu0 %v3215_v53  ;;  %v3541_v53 = vld [vmem:[#allocation9 + $0xac] ss:$12 sps:$4 sm:$0xff]  }
 0x478   :  { %2564 = vmatprep.subr.bf16.mxu0 %v3052_v29  ;;  %2583 = vmatpush3.bf16.msra.mxu1 %v3531_v51 }
 0x479   :  { %2584 = vmatprep.subr.bf16.mxu1 %v3052_v29 }
 0x47b   :  { %2565 = vmatpush3.bf16.msra.mxu0 %v3221_v54  ;;  %v3551_v54 = vld [vmem:[#allocation9 + $0x7c] ss:$12 sps:$4 sm:$0xff]  }
 0x47c   :  { %2590 = vmatprep.subr.bf16.mxu0 %v3052_v29  ;;  %2585 = vmatpush3.bf16.msra.mxu1 %v3537_v52 }
 0x47d   :  { %2610 = vmatprep.subr.bf16.mxu1 %v3052_v29 }
 0x47e   :  { %2567 = vmatmul.mubr.bf16.vlgmr.msra.gmra.mxu0 %v1281_v15 }
 0x47f   :  { %2591 = vmatpush3.bf16.msra.mxu0 %v3541_v53  ;;  %2606 = vmatprep.mubr.msk.bf16.mxu0 %vm3053_vm0, %v3052_v29 }
 0x480   :  { %2592 = vmatprep.subr.bf16.mxu0 %v3052_v29 }
 0x483   :  { %2593 = vmatpush3.bf16.msra.mxu0 %v3547_v17 }
 0x484   :  { %2594 = vmatprep.subr.bf16.mxu0 %v3052_v29 }
 0x487   :  { %2595 = vmatpush3.bf16.msra.mxu0 %v3551_v54 }
 0x488   :  { %2596 = vmatprep.subr.bf16.mxu0 %v3052_v29 }
 0x48b   :  { %2597 = vmatpush3.bf16.msra.mxu0 %v3555_v61 }
 0x48c   :  { %2598 = vmatprep.subr.bf16.mxu0 %v3052_v29 }
 0x48f   :  { %2599 = vmatpush3.bf16.msra.mxu0 %v3559_v19 }
 0x490   :  { %2600 = vmatprep.subr.bf16.mxu0 %v3052_v29 }
 0x493   :  { %2601 = vmatpush3.bf16.msra.mxu0 %v3563_v20 }
 0x494   :  { %2602 = vmatprep.subr.bf16.mxu0 %v3052_v29 }
 0x497   :  { %2603 = vmatpush3.bf16.msra.mxu0 %v3567_v21 }
 0x498   :  { %2604 = vmatprep.subr.bf16.mxu0 %v3052_v29 }
 0x49b   :  { %2605 = vmatpush3.bf16.msra.mxu0 %v3571_v58 }
 0x49c   :  { %2630 = vmatprep.subr.bf16.mxu0 %v3052_v29 }
 0x51e   :  { %v1319_v22 = vpop.f32.mrf.mxu0  ;;  %v1367_v24 = vpop.f32.mrf.mxu1 }
 0x51f   :  { %v1326_v25 = vadd.f32 %v1325_v23, %v1319_v22  ;;  %v1377_v31 = vadd.f32 %v1376_v30, %v1367_v24 }
 0x520   :  { %v2528_v26 = vpop.f32.mrf.mxu0  ;;  %v2548_v32 = vpop.f32.mrf.mxu1 }
 0x521   :  { %v1994_v34 = vmul.f32 -1.442695, %v1326_v25  ;;  %v1995_v33 = vmul.f32 -1.442695, %v1377_v31 }
 0x522   :  { %v1322_v55 = vpop.f32.mrf.mxu0  ;;  %v1370_v57 = vpop.f32.mrf.mxu1 }
 0x523   :  { %2871 = vpow2.f32 %v1994_v34  ;;  %v1524_v55 = vrot.slane %v3277_v18, 4 }
 0x524   :  { %v2529_v27 = vpop.f32.mrf.mxu0  ;;  %v2549_v28 = vpop.f32.mrf.mxu1  ;;  %2873 = vpow2.f32 %v1995_v33 }
 0x525   :  { %v1526_v27 = vunpack.c.l.bf16 %v1524_v55 }
 0x530   :  { %v2872_v35 = vpop.eup %2871 }
 0x531   :  { %v1330_v36 = vadd.f32 1.0, %v2872_v35  ;;  %v2874_v39 = vpop.eup %2873 }
 0x532   :  { %v1381_v45 = vadd.f32 1.0, %v2874_v39 }
 0x533   :  { %2875 = vrcp.f32 %v1330_v36 }
 0x53e   :  { %v1418_v38 = vpop.f32.mrf.mxu0 }
 0x53f   :  { %v1419_v40 = vadd.f32 %v3288_v10, %v1418_v38 }
 0x540   :  { %v2876_v41 = vpop.eup %2875  ;;  %v2568_v42 = vpop.f32.mrf.mxu0 }
 0x541   :  { %v1424_v43 = vmul.f32 %v2876_v41, %v1419_v40  ;;  %v1575_v42 = vunpack.c.h.bf16 %v3577_v37 }
 0x542   :  { %v1421_v44 = vpop.f32.mrf.mxu0 }
 0x543   :  { %v1426_v56 = vadd.f32 %v1425_v14, %v1424_v43 }
 0x544   :  { %v2569_v47 = vpop.f32.mrf.mxu0 }
 0x545   :  { %2877 = vtanh.f32 %v1426_v56 }
 0x546   :  { %2879 = vrcp.f32 %v1381_v45 }
 0x552   :  { %v2878_v59 = vpop.eup %2877 }
 0x553   :  { %v1428_v60 = vsub.f32 %v3485_v13, %v2878_v59  ;;  %v2880_v0 = vpop.eup %2879  ;;  %v1475_v13 = vunpack.c.l.bf16 %v3277_v18 }
 0x555   :  { %v1429_v1 = vmul.f32 %v2880_v0, %v1428_v60 }
 0x557   :  { %v3582_v2 = vadd.f32 %v2878_v59, %v1429_v1 }
 0x559   :  { %v1431_v3 = vpack.c.bf16 %v3582_v2, %v3582_v2 }
 0x55b   :  { %1432 = vst [vmem:[#allocation10 + $0x10] sm:$0xf] %v1431_v3  ;;  %2587 = vmatmul.mubr.bf16.vlgmr.msra.gmra.mxu1 %v1431_v3  ;;  %2607 = vmatmul.mubr.bf16.vlgmr.msra.gmra.mxu0 %v1431_v3 }
 0x55c   :  { %2611 = vmatpush3.bf16.msra.mxu1 %v3586_v4  ;;  %2626 = vmatprep.mubr.msk.bf16.mxu1 %vm3053_vm0, %v3052_v29 }
 0x55d   :  { %2612 = vmatprep.subr.bf16.mxu1 %v3052_v29  ;;  %2631 = vmatpush3.bf16.msra.mxu0 %v3493_v11 }
 0x55e   :  { %2632 = vmatprep.subr.bf16.mxu0 %v3052_v29  ;;  %2646 = vmatprep.mubr.msk.bf16.mxu0 %vm3053_vm0, %v3052_v29 }
 0x560   :  { %2613 = vmatpush3.bf16.msra.mxu1 %v3596_v7 }
 0x561   :  { %2614 = vmatprep.subr.bf16.mxu1 %v3052_v29  ;;  %2633 = vmatpush3.bf16.msra.mxu0 %v3501_v16 }
 0x562   :  { %2634 = vmatprep.subr.bf16.mxu0 %v3052_v29 }
 0x564   :  { %2615 = vmatpush3.bf16.msra.mxu1 %v3602_v5 }
 0x565   :  { %2616 = vmatprep.subr.bf16.mxu1 %v3052_v29  ;;  %2635 = vmatpush3.bf16.msra.mxu0 %v3507_v46 }
 0x566   :  { %2636 = vmatprep.subr.bf16.mxu0 %v3052_v29 }
 0x568   :  { %2617 = vmatpush3.bf16.msra.mxu1 %v3608_v62 }
 0x569   :  { %2618 = vmatprep.subr.bf16.mxu1 %v3052_v29  ;;  %2637 = vmatpush3.bf16.msra.mxu0 %v3513_v48 }
 0x56a   :  { %2638 = vmatprep.subr.bf16.mxu0 %v3052_v29 }
 0x56c   :  { %2619 = vmatpush3.bf16.msra.mxu1 %v3614_v6 }
 0x56d   :  { %2620 = vmatprep.subr.bf16.mxu1 %v3052_v29  ;;  %2639 = vmatpush3.bf16.msra.mxu0 %v3519_v49 }
 0x56e   :  { %2640 = vmatprep.subr.bf16.mxu0 %v3052_v29 }
 0x570   :  { %2621 = vmatpush3.bf16.msra.mxu1 %v3620_v63 }
 0x571   :  { %2622 = vmatprep.subr.bf16.mxu1 %v3052_v29  ;;  %2641 = vmatpush3.bf16.msra.mxu0 %v3525_v50 }
 0x572   :  { %2642 = vmatprep.subr.bf16.mxu0 %v3052_v29 }
 0x574   :  { %2623 = vmatpush3.bf16.msra.mxu1 %v3626_v8 }
 0x575   :  { %2624 = vmatprep.subr.bf16.mxu1 %v3052_v29  ;;  %2643 = vmatpush3.bf16.msra.mxu0 %v3531_v51 }
 0x576   :  { %2644 = vmatprep.subr.bf16.mxu0 %v3052_v29 }
 0x578   :  { %2625 = vmatpush3.bf16.msra.mxu1 %v3632_v9 }
 0x579   :  { %2650 = vmatprep.subr.bf16.mxu1 %v3052_v29  ;;  %2645 = vmatpush3.bf16.msra.mxu0 %v3537_v52 }
 0x57a   :  { %2670 = vmatprep.subr.bf16.mxu0 %v3052_v29 }
 0x57b   :  { %2627 = vmatmul.mubr.bf16.vlgmr.msra.gmra.mxu1 %v1431_v3 }
 0x57c   :  { %2651 = vmatpush3.bf16.msra.mxu1 %v3541_v53  ;;  %2666 = vmatprep.mubr.msk.bf16.mxu1 %vm3053_vm0, %v3052_v29 }
 0x57d   :  { %2652 = vmatprep.subr.bf16.mxu1 %v3052_v29 }
 0x580   :  { %2653 = vmatpush3.bf16.msra.mxu1 %v3547_v17 }
 0x581   :  { %2654 = vmatprep.subr.bf16.mxu1 %v3052_v29 }
 0x584   :  { %2655 = vmatpush3.bf16.msra.mxu1 %v3551_v54 }
 0x585   :  { %2656 = vmatprep.subr.bf16.mxu1 %v3052_v29 }
 0x588   :  { %2657 = vmatpush3.bf16.msra.mxu1 %v3555_v61 }
 0x589   :  { %2658 = vmatprep.subr.bf16.mxu1 %v3052_v29 }
 0x58c   :  { %2659 = vmatpush3.bf16.msra.mxu1 %v3559_v19 }
 0x58d   :  { %2660 = vmatprep.subr.bf16.mxu1 %v3052_v29 }
 0x590   :  { %2661 = vmatpush3.bf16.msra.mxu1 %v3563_v20 }
 0x591   :  { %2662 = vmatprep.subr.bf16.mxu1 %v3052_v29 }
 0x594   :  { %2663 = vmatpush3.bf16.msra.mxu1 %v3567_v21 }
 0x595   :  { %2664 = vmatprep.subr.bf16.mxu1 %v3052_v29 }
 0x598   :  { %2665 = vmatpush3.bf16.msra.mxu1 %v3571_v58 }
 0x599   :  { %2690 = vmatprep.subr.bf16.mxu1 %v3052_v29 }
 0x61b   :  { %v1469_v15 = vpop.f32.mrf.mxu1  ;;  %v1517_v23 = vpop.f32.mrf.mxu0 }
 0x61c   :  { %v1476_v22 = vadd.f32 %v1475_v13, %v1469_v15  ;;  %v1527_v28 = vadd.f32 %v1526_v27, %v1517_v23  ;;  %v2935_v13 = vld [vmem:[%s3756_s4] ss:$0 sm:$0xff]  ;;  %s3055_s4 = smov [#allocation11]  }
 0x61d   :  { %v2588_v24 = vpop.f32.mrf.mxu1  ;;  %v2608_v25 = vpop.f32.mrf.mxu0  ;;  %s1903_s18 = sshll.u32 %s3055_s4, 4  ;;  %s1904_s18 = int_to_ptr.vmem [resolvable:$true] %s1903_s18 }
 0x61e   :  { %v1996_v26 = vmul.f32 -1.442695, %v1476_v22  ;;  %v1997_v30 = vmul.f32 -1.442695, %v1527_v28  ;;  %s2996_s21 = scalar_lea.vmem %s1904_s18, 128  ;;  %p3001_p2 = scmp.lt.s32.totalorder %s1904_s18, %s1904_s18 }
 0x61f   :  { %v1472_v32 = vpop.f32.mrf.mxu1  ;;  %v1520_v34 = vpop.f32.mrf.mxu0  ;;  %p2997_p1 = scmp.ne.s32.totalorder %s1904_s18, %s2996_s21  ;;  %p3002_p3 = scmp.lt.s32.totalorder %s2996_s21, %s2996_s21 }
 0x620   :  { %2881 = vpow2.f32 %v1996_v26 }
 0x621   :  { %v2589_v57 = vpop.f32.mrf.mxu1  ;;  %v2609_v12 = vpop.f32.mrf.mxu0  ;;  %2883 = vpow2.f32 %v1997_v30  ;;  %p3003_p4 = por %p3002_p3, %p3001_p2 }
 0x623   :  { %p3004_p5 = pnand %p3003_p4, %p2997_p1 }
 0x62d   :  { %v2882_v31 = vpop.eup %2881 }
 0x62e   :  { %v1480_v33 = vadd.f32 1.0, %v2882_v31  ;;  %v2884_v36 = vpop.eup %2883 }
 0x62f   :  { %v1531_v18 = vadd.f32 1.0, %v2884_v36 }
 0x630   :  { %2885 = vrcp.f32 %v1480_v33 }
 0x63b   :  { %v1568_v35 = vpop.f32.mrf.mxu1 }
 0x63c   :  { %v1569_v38 = vadd.f32 %v3288_v10, %v1568_v35 }
 0x63d   :  { %v2886_v39 = vpop.eup %2885  ;;  %v2628_v40 = vpop.f32.mrf.mxu1 }
 0x63e   :  { %v1574_v41 = vmul.f32 %v2886_v39, %v1569_v38 }
 0x63f   :  { %v1571_v43 = vpop.f32.mrf.mxu1 }
 0x640   :  { %v1576_v14 = vadd.f32 %v1575_v42, %v1574_v41 }
 0x641   :  { %v2629_v44 = vpop.f32.mrf.mxu1 }
 0x642   :  { %2887 = vtanh.f32 %v1576_v14 }
 0x643   :  { %2889 = vrcp.f32 %v1531_v18 }
 0x64f   :  { %v2888_v45 = vpop.eup %2887 }
 0x650   :  { %v1578_v56 = vsub.f32 %v3582_v2, %v2888_v45  ;;  %v2890_v47 = vpop.eup %2889 }
 0x652   :  { %v1579_v59 = vmul.f32 %v2890_v47, %v1578_v56 }
 0x654   :  { %v3661_v60 = vadd.f32 %v2888_v45, %v1579_v59 }
 0x656   :  { %v1581_v10 = vpack.c.bf16 %v3661_v60, %v3661_v60 }
 0x658   :  { %1582 = vst [vmem:[#allocation10 + $0x14] sm:$0xf] %v1581_v10  ;;  %2647 = vmatmul.mubr.bf16.vlgmr.msra.gmra.mxu0 %v1581_v10  ;;  %2667 = vmatmul.mubr.bf16.vlgmr.msra.gmra.mxu1 %v1581_v10 }
 0x659   :  { %2671 = vmatpush3.bf16.msra.mxu0 %v3586_v4  ;;  %2686 = vmatprep.mubr.msk.bf16.mxu0 %vm3053_vm0, %v3052_v29 }
 0x65a   :  { %2672 = vmatprep.subr.bf16.mxu0 %v3052_v29  ;;  %2691 = vmatpush3.bf16.msra.mxu1 %v3493_v11  ;;  %v1583_v11 = vld [vmem:[#allocation3 + $0x48] sm:$0xff] }
 0x65b   :  { %2692 = vmatprep.subr.bf16.mxu1 %v3052_v29  ;;  %2706 = vmatprep.mubr.msk.bf16.mxu1 %vm3053_vm0, %v3052_v29 }
 0x65d   :  { %2673 = vmatpush3.bf16.msra.mxu0 %v3596_v7 }
 0x65e   :  { %2674 = vmatprep.subr.bf16.mxu0 %v3052_v29  ;;  %2693 = vmatpush3.bf16.msra.mxu1 %v3501_v16  ;;  %v1625_v16 = vunpack.c.l.bf16 %v1583_v11 }
 0x65f   :  { %2694 = vmatprep.subr.bf16.mxu1 %v3052_v29 }
 0x661   :  { %2675 = vmatpush3.bf16.msra.mxu0 %v3602_v5 }
 0x662   :  { %2676 = vmatprep.subr.bf16.mxu0 %v3052_v29  ;;  %2695 = vmatpush3.bf16.msra.mxu1 %v3507_v46 }
 0x663   :  { %2696 = vmatprep.subr.bf16.mxu1 %v3052_v29 }
 0x665   :  { %2677 = vmatpush3.bf16.msra.mxu0 %v3608_v62 }
 0x666   :  { %2678 = vmatprep.subr.bf16.mxu0 %v3052_v29  ;;  %2697 = vmatpush3.bf16.msra.mxu1 %v3513_v48 }
 0x667   :  { %2698 = vmatprep.subr.bf16.mxu1 %v3052_v29 }
 0x669   :  { %2679 = vmatpush3.bf16.msra.mxu0 %v3614_v6 }
 0x66a   :  { %2680 = vmatprep.subr.bf16.mxu0 %v3052_v29  ;;  %2699 = vmatpush3.bf16.msra.mxu1 %v3519_v49 }
 0x66b   :  { %2700 = vmatprep.subr.bf16.mxu1 %v3052_v29 }
 0x66d   :  { %2681 = vmatpush3.bf16.msra.mxu0 %v3620_v63 }
 0x66e   :  { %2682 = vmatprep.subr.bf16.mxu0 %v3052_v29  ;;  %2701 = vmatpush3.bf16.msra.mxu1 %v3525_v50 }
 0x66f   :  { %2702 = vmatprep.subr.bf16.mxu1 %v3052_v29 }
 0x671   :  { %2683 = vmatpush3.bf16.msra.mxu0 %v3626_v8 }
 0x672   :  { %2684 = vmatprep.subr.bf16.mxu0 %v3052_v29  ;;  %2703 = vmatpush3.bf16.msra.mxu1 %v3531_v51 }
 0x673   :  { %2704 = vmatprep.subr.bf16.mxu1 %v3052_v29 }
 0x675   :  { %2685 = vmatpush3.bf16.msra.mxu0 %v3632_v9 }
 0x676   :  { %2710 = vmatprep.subr.bf16.mxu0 %v3052_v29  ;;  %2705 = vmatpush3.bf16.msra.mxu1 %v3537_v52 }
 0x677   :  { %2730 = vmatprep.subr.bf16.mxu1 %v3052_v29 }
 0x678   :  { %2687 = vmatmul.mubr.bf16.vlgmr.msra.gmra.mxu0 %v1581_v10 }
 0x679   :  { %2711 = vmatpush3.bf16.msra.mxu0 %v3541_v53  ;;  %2726 = vmatprep.mubr.msk.bf16.mxu0 %vm3053_vm0, %v3052_v29 }
 0x67a   :  { %2712 = vmatprep.subr.bf16.mxu0 %v3052_v29 }
 0x67d   :  { %2713 = vmatpush3.bf16.msra.mxu0 %v3547_v17 }
 0x67e   :  { %2714 = vmatprep.subr.bf16.mxu0 %v3052_v29 }
 0x681   :  { %2715 = vmatpush3.bf16.msra.mxu0 %v3551_v54  ;;  %v1674_v54 = vrot.slane %v1583_v11, 4 }
 0x682   :  { %2716 = vmatprep.subr.bf16.mxu0 %v3052_v29 }
 0x685   :  { %2717 = vmatpush3.bf16.msra.mxu0 %v3555_v61 }
 0x686   :  { %2718 = vmatprep.subr.bf16.mxu0 %v3052_v29 }
 0x689   :  { %2719 = vmatpush3.bf16.msra.mxu0 %v3559_v19 }
 0x68a   :  { %2720 = vmatprep.subr.bf16.mxu0 %v3052_v29 }
 0x68d   :  { %2721 = vmatpush3.bf16.msra.mxu0 %v3563_v20  ;;  %v1676_v20 = vunpack.c.l.bf16 %v1674_v54 }
 0x68e   :  { %2722 = vmatprep.subr.bf16.mxu0 %v3052_v29 }
 0x691   :  { %2723 = vmatpush3.bf16.msra.mxu0 %v3567_v21 }
 0x692   :  { %2724 = vmatprep.subr.bf16.mxu0 %v3052_v29 }
 0x695   :  { %2725 = vmatpush3.bf16.msra.mxu0 %v3571_v58  ;;  %v3718_v58 = vld [vmem:[#allocation3 + $0x50] ss:$12 sps:$4 sm:$0xff]  }
 0x696   :  { %v1725_v25 = vunpack.c.l.bf16 %v3718_v58  ;;  %v1875_v59 = vunpack.c.h.bf16 %v3718_v58 }
 0x718   :  { %v1619_v46 = vpop.f32.mrf.mxu0  ;;  %v1667_v48 = vpop.f32.mrf.mxu1 }
 0x719   :  { %v1626_v49 = vadd.f32 %v1625_v16, %v1619_v46  ;;  %v1677_v21 = vadd.f32 %v1676_v20, %v1667_v48 }
 0x71a   :  { %v2648_v50 = vpop.f32.mrf.mxu0  ;;  %v2668_v51 = vpop.f32.mrf.mxu1 }
 0x71b   :  { %v1998_v52 = vmul.f32 -1.442695, %v1626_v49  ;;  %v1999_v37 = vmul.f32 -1.442695, %v1677_v21 }
 0x71c   :  { %v1622_v53 = vpop.f32.mrf.mxu0  ;;  %v1670_v17 = vpop.f32.mrf.mxu1 }
 0x71d   :  { %2891 = vpow2.f32 %v1998_v52 }
 0x71e   :  { %v2649_v61 = vpop.f32.mrf.mxu0  ;;  %v2669_v19 = vpop.f32.mrf.mxu1  ;;  %2893 = vpow2.f32 %v1999_v37 }
 0x72a   :  { %v2892_v0 = vpop.eup %2891 }
 0x72b   :  { %v1630_v1 = vadd.f32 1.0, %v2892_v0  ;;  %v2894_v3 = vpop.eup %2893 }
 0x72c   :  { %v1681_v32 = vadd.f32 1.0, %v2894_v3 }
 0x72d   :  { %2895 = vrcp.f32 %v1630_v1 }
 0x738   :  { %v1718_v2 = vpop.f32.mrf.mxu0 }
 0x739   :  { %v1719_v15 = vadd.f32 %v2935_v13, %v1718_v2 }
 0x73a   :  { %v2896_v23 = vpop.eup %2895  ;;  %v2688_v22 = vpop.f32.mrf.mxu0 }
 0x73b   :  { %v1724_v24 = vmul.f32 %v2896_v23, %v1719_v15 }
 0x73c   :  { %v1721_v26 = vpop.f32.mrf.mxu0 }
 0x73d   :  { %v1726_v34 = vadd.f32 %v1725_v25, %v1724_v24 }
 0x73e   :  { %v2689_v55 = vpop.f32.mrf.mxu0 }
 0x73f   :  { %2897 = vtanh.f32 %v1726_v34 }
 0x740   :  { %2899 = vrcp.f32 %v1681_v32 }
 0x74c   :  { %v2898_v57 = vpop.eup %2897 }
 0x74d   :  { %v1728_v12 = vsub.f32 %v3661_v60, %v2898_v57  ;;  %v2900_v27 = vpop.eup %2899 }
 0x74f   :  { %v1729_v28 = vmul.f32 %v2900_v27, %v1728_v12 }
 0x751   :  { %v1730_v30 = vadd.f32 %v2898_v57, %v1729_v28 }
 0x753   :  { %v1731_v31 = vpack.c.bf16 %v1730_v30, %v1730_v30 }
 0x755   :  { %1732 = vst [vmem:[#allocation10 + $0x18] sm:$0xf] %v1731_v31  ;;  %2707 = vmatmul.mubr.bf16.vlgmr.msra.gmra.mxu1 %v1731_v31  ;;  %2727 = vmatmul.mubr.bf16.vlgmr.msra.gmra.mxu0 %v1731_v31 }
 0x756   :  { %2731 = vmatpush3.bf16.msra.mxu1 %v3586_v4  ;;  %2746 = vmatprep.mubr.msk.bf16.mxu1 %vm3053_vm0, %v3052_v29  ;;  %v1733_v4 = vld [vmem:[#allocation3 + $0x54] sm:$0xff] }
 0x757   :  { %2732 = vmatprep.subr.bf16.mxu1 %v3052_v29 }
 0x75a   :  { %2733 = vmatpush3.bf16.msra.mxu1 %v3596_v7  ;;  %v1775_v7 = vunpack.c.l.bf16 %v1733_v4 }
 0x75b   :  { %2734 = vmatprep.subr.bf16.mxu1 %v3052_v29 }
 0x75e   :  { %2735 = vmatpush3.bf16.msra.mxu1 %v3602_v5 }
 0x75f   :  { %2736 = vmatprep.subr.bf16.mxu1 %v3052_v29 }
 0x762   :  { %2737 = vmatpush3.bf16.msra.mxu1 %v3608_v62 }
 0x763   :  { %2738 = vmatprep.subr.bf16.mxu1 %v3052_v29 }
 0x766   :  { %2739 = vmatpush3.bf16.msra.mxu1 %v3614_v6 }
 0x767   :  { %2740 = vmatprep.subr.bf16.mxu1 %v3052_v29 }
 0x76a   :  { %2741 = vmatpush3.bf16.msra.mxu1 %v3620_v63  ;;  %v1824_v63 = vrot.slane %v1733_v4, 4 }
 0x76b   :  { %2742 = vmatprep.subr.bf16.mxu1 %v3052_v29 }
 0x76e   :  { %2743 = vmatpush3.bf16.msra.mxu1 %v3626_v8  ;;  %v1826_v8 = vunpack.c.l.bf16 %v1824_v63 }
 0x76f   :  { %2744 = vmatprep.subr.bf16.mxu1 %v3052_v29 }
 0x772   :  { %2745 = vmatpush3.bf16.msra.mxu1 %v3632_v9 }
 0x775   :  { %2747 = vmatmul.mubr.bf16.vlgmr.msra.gmra.mxu1 %v1731_v31 }
 0x815   :  { %v1769_v5 = vpop.f32.mrf.mxu1  ;;  %v1817_v62 = vpop.f32.mrf.mxu0 }
 0x816   :  { %v1776_v33 = vadd.f32 %v1775_v7, %v1769_v5  ;;  %v1827_v42 = vadd.f32 %v1826_v8, %v1817_v62 }
 0x817   :  { %v2708_v35 = vpop.f32.mrf.mxu1  ;;  %v2728_v6 = vpop.f32.mrf.mxu0 }
 0x818   :  { %v2000_v36 = vmul.f32 -1.442695, %v1776_v33  ;;  %v2001_v29 = vmul.f32 -1.442695, %v1827_v42 }
 0x819   :  { %v1772_v38 = vpop.f32.mrf.mxu1  ;;  %v1820_v39 = vpop.f32.mrf.mxu0 }
 0x81a   :  { %2901 = vpow2.f32 %v2000_v36 }
 0x81b   :  { %v2709_v40 = vpop.f32.mrf.mxu1  ;;  %v2729_v41 = vpop.f32.mrf.mxu0  ;;  %2903 = vpow2.f32 %v2001_v29 }
 0x827   :  { %v2902_v43 = vpop.eup %2901 }
 0x828   :  { %v1780_v9 = vadd.f32 1.0, %v2902_v43  ;;  %v2904_v14 = vpop.eup %2903 }
 0x829   :  { %v1831_v10 = vadd.f32 1.0, %v2904_v14 }
 0x82a   :  { %2905 = vrcp.f32 %v1780_v9 }
 0x835   :  { %v1868_v18 = vpop.f32.mrf.mxu1 }
 0x836   :  { %v1869_v44 = vadd.f32 %v2935_v13, %v1868_v18 }
 0x837   :  { %v2906_v45 = vpop.eup %2905  ;;  %v2748_v56 = vpop.f32.mrf.mxu1 }
 0x838   :  { %v1874_v47 = vmul.f32 %v2906_v45, %v1869_v44 }
 0x839   :  { %v1871_v60 = vpop.f32.mrf.mxu1 }
 0x83a   :  { %v1876_v11 = vadd.f32 %v1875_v59, %v1874_v47 }
 0x83b   :  { %v2749_v16 = vpop.f32.mrf.mxu1 }
 0x83c   :  { %2907 = vtanh.f32 %v1876_v11 }
 0x83d   :  { %2909 = vrcp.f32 %v1831_v10 }
 0x849   :  { %v2908_v46 = vpop.eup %2907 }
 0x84a   :  { %v1878_v48 = vsub.f32 %v1730_v30, %v2908_v46  ;;  %v2910_v49 = vpop.eup %2909 }
 0x84c   :  { %v1879_v50 = vmul.f32 %v2910_v49, %v1878_v48 }
 0x84e   :  { %v1880_v51 = vadd.f32 %v2908_v46, %v1879_v50 }
 0x850   :  { %v1881_v52 = vpack.c.bf16 %v1880_v51, %v1880_v51  ;;  %1884 = vst [vmem:[#allocation11] sm:$0xff] %v1880_v51 }
 0x851   :  { %3007 = shalt.err (!%p3004_p5)
}
 0x852   :  { %1906 = dma.vmem_to_hbm [thread:$0]  %s1904_s18, 128, %s3758_s6, [#allocation12]   ;;  %1882 = vst [vmem:[#allocation10 + $0x1c] sm:$0xf] %v1881_v52 }
 0x853   :  { %s3016_s24 = scalar_lea.vmem %s1891_s20, 512  ;;  %p3021_p7 = scmp.lt.s32.totalorder %s1891_s20, %s1891_s20 }
 0x854   :  { %p3017_p6 = scmp.ne.s32.totalorder %s1891_s20, %s3016_s24  ;;  %p3022_p8 = scmp.lt.s32.totalorder %s3016_s24, %s3016_s24 }
 0x856   :  { %p3023_p9 = por %p3022_p8, %p3021_p7 }
 0x858   :  { %p3024_p10 = pnand %p3023_p9, %p3017_p6 }
 0x85a   :  { %3027 = shalt.err (!%p3024_p10)
}
 0x85b   :  { %1896 = dma.vmem_to_hbm [thread:$0]  %s1891_s20, 512, %s3757_s5, [#allocation6], %s3048_s7, %s3048_s7, %s3049_s8  }
 0x85c   :  { %3040 = dma.done.wait [#allocation6], 512  }
 0x85d   :  { %3041 = vsyncadd [#allocation6], 4294966784 }
 0x85e   :  { %3042 = dma.done.wait [#allocation12], 128  }
 0x85f   :  { %3043 = vsyncadd [#allocation12], 4294967168 }
 0x860   :  { %1913 = vsyncpa [#allocation5], 1 }
 0x861   :  { %1914 = vsyncpa [#allocation8], 1 }
 0x862   :  { %1915 = vsyncpa [#allocation6], 1 }
 0x863   :  { %1916 = vsyncpa [#allocation12], 1 }

// kernel: tpu_custom_call.1
= control target key start
LH: loop header
LB: loop body
LE: loop exit
PB: predicated region body
PF: predicated region fallthrough
CT: control target
= control target key end

     0   :  { %12 = vsyncpa [#allocation5], 0  ;;  %s3752_s0 = inlined_call_operand.hbm [shape: bf16[1,64,128], index: 0, kind: input, shape index: {}]   ;;  %s3753_s1 = inlined_call_operand.hbm [shape: bf16[128,384], index: 1, kind: input, shape index: {}]   ;;  %s3754_s2 = inlined_call_operand.hbm [shape: bf16[128,384], index: 2, kind: input, shape index: {}]   ;;  %s3755_s3 = inlined_call_operand.vmem [shape: f32[1,384], index: 3, kind: input, shape index: {}]   ;;  %s3756_s4 = inlined_call_operand.vmem [shape: f32[1,128], index: 4, kind: input, shape index: {}]   ;;  %s3757_s5 = inlined_call_operand.hbm [shape: bf16[1,64,128], index: 5, kind: output, shape index: {0}]   ;;  %s3758_s6 = inlined_call_operand.hbm [shape: f32[1,8,128], index: 6, kind: output, shape index: {1}]  }
   0x1   :  { %13 = vsyncpa [#allocation8], 0 }
   0x2   :  { %14 = vsyncpa [#allocation6], 0 }
   0x3   :  { %15 = vsyncpa [#allocation12], 0  ;;  %s3044_s21 = smov [#allocation7]  }
   0x4   :  { %s33_s22 = sshll.u32 %s3044_s21, 4  ;;  %s34_s22 = int_to_ptr.vmem [resolvable:$true] %s33_s22 }
   0x5   :  { %s2944_s23 = scalar_lea.vmem %s34_s22, 3072  ;;  %p2949_p1 = scmp.lt.s32.totalorder %s34_s22, %s34_s22 }
   0x6   :  { %p2945_p0 = scmp.ne.s32.totalorder %s34_s22, %s2944_s23  ;;  %p2950_p2 = scmp.lt.s32.totalorder %s2944_s23, %s2944_s23 }
   0x8   :  { %p2951_p3 = por %p2950_p2, %p2949_p1 }
   0xa   :  { %p2952_p4 = pnand %p2951_p3, %p2945_p0 }
   0xc   :  { %2955 = shalt.err (!%p2952_p4)
}
   0xd   :  { %s3045_s24 = smov 192   ;;  %s3046_s25 = smov 12  }
   0xe   :  { %39 = dma.hbm_to_vmem [thread:$0]  %s3753_s1, 3072, %s34_s22, [#allocation8], %s3045_s24, %s3045_s24, %s3046_s25  }
   0xf   :  { %s3047_s28 = smov [#allocation4]  }
  0x10   :  { %s21_s29 = sshll.u32 %s3047_s28, 4  ;;  %s22_s29 = int_to_ptr.vmem [resolvable:$true] %s21_s29 }
  0x11   :  { %s2964_s30 = scalar_lea.vmem %s22_s29, 512  ;;  %p2969_p6 = scmp.lt.s32.totalorder %s22_s29, %s22_s29 }
  0x12   :  { %p2965_p5 = scmp.ne.s32.totalorder %s22_s29, %s2964_s30  ;;  %p2970_p7 = scmp.lt.s32.totalorder %s2964_s30, %s2964_s30 }
  0x14   :  { %p2971_p8 = por %p2970_p7, %p2969_p6 }
  0x16   :  { %p2972_p9 = pnand %p2971_p8, %p2965_p5 }
  0x18   :  { %2975 = shalt.err (!%p2972_p9)
}
  0x19   :  { %s3048_s7 = smov 64   ;;  %s3049_s8 = smov 4  }
  0x1a   :  { %27 = dma.hbm_to_vmem [thread:$0]  %s3752_s0, 512, %s22_s29, [#allocation5], %s3048_s7, %s3048_s7, %s3049_s8  }
  0x1b   :  { %s3050_s1 = smov [#allocation9]  }
  0x1c   :  { %s45_s11 = sshll.u32 %s3050_s1, 4  ;;  %s46_s11 = int_to_ptr.vmem [resolvable:$true] %s45_s11 }
  0x1d   :  { %s2984_s12 = scalar_lea.vmem %s46_s11, 3072  ;;  %p2989_p11 = scmp.lt.s32.totalorder %s46_s11, %s46_s11 }
  0x1e   :  { %p2985_p10 = scmp.ne.s32.totalorder %s46_s11, %s2984_s12  ;;  %p2990_p12 = scmp.lt.s32.totalorder %s2984_s12, %s2984_s12 }
  0x20   :  { %p2991_p13 = por %p2990_p12, %p2989_p11 }
  0x22   :  { %p2992_p0 = pnand %p2991_p13, %p2985_p10 }
  0x24   :  { %2995 = shalt.err (!%p2992_p0)
}
  0x25   :  { %51 = dma.hbm_to_vmem [thread:$0]  %s3754_s2, 3072, %s46_s11, [#allocation8], %s3045_s24, %s3045_s24, %s3046_s25  }
  0x26   :  { %3036 = dma.done.wait [#allocation5], 512  }
  0x27   :  { %3037 = vsyncadd [#allocation5], 4294966784 }
  0x28   :  { %3038 = dma.done.wait [#allocation8], 6144  }
  0x29   :  { %3039 = vsyncadd [#allocation8], 4294961152  ;;  %v3051_v0 = vmov 0   ;;  %v2763_v1 = vld [vmem:[#allocation7 + $0xac] ss:$12 sps:$4 sm:$0xff]   ;;  %v2795_v18 = vld [vmem:[#allocation4] sm:$0xff]   ;;  %v113_v55 = vlaneseq }
  0x2a   :  { %312 = vmatprep.mubr.bf16.mxu0 %v3051_v0  ;;  %v2765_v2 = vld [vmem:[#allocation7 + $0xb0] ss:$12 sps:$4 sm:$0xff]   ;;  %280 = vmatprep.subr.bf16.mxu0 %v2763_v1  ;;  %v2766_v3 = vld [vmem:[#allocation7 + $0xa8] ss:$12 sps:$4 sm:$0xff]   ;;  %v2769_v5 = vld [vmem:[#allocation7 + $0x98] ss:$12 sps:$4 sm:$0xff]  }
  0x2b   :  { %2246 = vmatprep.subr.bf16.mxu1 %v2765_v2  ;;  %v2767_v4 = vld [vmem:[#allocation7 + $0x94] ss:$12 sps:$4 sm:$0xff]   ;;  %281 = vmatpush1.bf16.msra.mxu0 %v2766_v3  ;;  %v2770_v6 = vld [vmem:[#allocation7 + $0x90] ss:$12 sps:$4 sm:$0xff]   ;;  %v2774_v9 = vld [vmem:[#allocation7 + $0x78] ss:$12 sps:$4 sm:$0xff]  }
  0x2c   :  { %2247 = vmatpush3.bf16.msra.mxu1 %v2765_v2  ;;  %282 = vmatprep.subr.bf16.mxu0 %v2767_v4  ;;  %v2771_v7 = vld [vmem:[#allocation7 + $0x7c] ss:$12 sps:$4 sm:$0xff]   ;;  %v2773_v8 = vld [vmem:[#allocation7 + $0x80] ss:$12 sps:$4 sm:$0xff]   ;;  %v2775_v10 = vld [vmem:[#allocation7 + $0x64] ss:$12 sps:$4 sm:$0xff]  }
  0x2d   :  { %2248 = vmatprep.subr.bf16.mxu1 %v2769_v5  ;;  %v2777_v11 = vld [vmem:[#allocation7 + $0x68] ss:$12 sps:$4 sm:$0xff]   ;;  %v2778_v12 = vld [vmem:[#allocation7 + $0x60] ss:$12 sps:$4 sm:$0xff]   ;;  %v2781_v14 = vld [vmem:[#allocation7 + $0x50] ss:$12 sps:$4 sm:$0xff]   ;;  %2262 = vmatprep.mubr.bf16.mxu1 %v2795_v18 }
  0x2e   :  { %v2779_v13 = vld [vmem:[#allocation7 + $0x4c] ss:$12 sps:$4 sm:$0xff]   ;;  %v2782_v15 = vld [vmem:[#allocation7 + $0x48] ss:$12 sps:$4 sm:$0xff]   ;;  %v2786_v19 = vld [vmem:[#allocation7 + $0x30] ss:$12 sps:$4 sm:$0xff]  }
  0x2f   :  { %283 = vmatpush1.bf16.msra.mxu0 %v2770_v6  ;;  %v2783_v16 = vld [vmem:[#allocation7 + $0x34] ss:$12 sps:$4 sm:$0xff]   ;;  %v2785_v17 = vld [vmem:[#allocation7 + $0x38] ss:$12 sps:$4 sm:$0xff]   ;;  %v2787_v20 = vld [vmem:[#allocation7 + $0x1c] ss:$12 sps:$4 sm:$0xff]  }
  0x30   :  { %2249 = vmatpush3.bf16.msra.mxu1 %v2769_v5  ;;  %284 = vmatprep.subr.bf16.mxu0 %v2771_v7  ;;  %v2789_v21 = vld [vmem:[#allocation7 + $0x20] ss:$12 sps:$4 sm:$0xff]   ;;  %v2790_v22 = vld [vmem:[#allocation7 + $0x18] ss:$12 sps:$4 sm:$0xff]   ;;  %v2793_v24 = vld [vmem:[#allocation7 + $0x8] ss:$12 sps:$4 sm:$0xff]  }
  0x31   :  { %2250 = vmatprep.subr.bf16.mxu1 %v2773_v8  ;;  %v2791_v23 = vld [vmem:[#allocation7 + $0x4] ss:$12 sps:$4 sm:$0xff]   ;;  %v2794_v25 = vld [vmem:[#allocation7] ss:$12 sps:$4 sm:$0xff]   ;;  %v3105_v27 = vld [vmem:[#allocation9 + $0xa8] ss:$12 sps:$4 sm:$0xff]  }
  0x32   :  { %v2796_v26 = vld [vmem:[#allocation4 + $0x8] sm:$0xff]   ;;  %v3052_v29 = vmov 0.0   ;;  %v3111_v30 = vld [vmem:[#allocation9 + $0x90] ss:$12 sps:$4 sm:$0xff]   ;;  %v3113_v31 = vld [vmem:[#allocation9 + $0x94] ss:$12 sps:$4 sm:$0xff]  }
  0x33   :  { %285 = vmatpush1.bf16.msra.mxu0 %v2774_v9  ;;  %v3107_v28 = vld [vmem:[#allocation9 + $0xac] ss:$12 sps:$4 sm:$0xff]   ;;  %v2809_v32 = vld [vmem:[#allocation4 + $0x10] sm:$0xff]   ;;  %v3124_v35 = vld [vmem:[#allocation9 + $0x7c] ss:$12 sps:$4 sm:$0xff]   ;;  %vm3053_vm0 = vmmov 0  }
  0x34   :  { %2251 = vmatpush3.bf16.msra.mxu1 %v2773_v8  ;;  %286 = vmatprep.subr.bf16.mxu0 %v2775_v10  ;;  %v3120_v33 = vld [vmem:[#allocation9 + $0x78] ss:$12 sps:$4 sm:$0xff]   ;;  %v3130_v36 = vld [vmem:[#allocation9 + $0x60] ss:$12 sps:$4 sm:$0xff]   ;;  %v3141_v38 = vld [vmem:[#allocation9 + $0x48] ss:$12 sps:$4 sm:$0xff]  }
  0x35   :  { %2252 = vmatprep.subr.bf16.mxu1 %v2777_v11  ;;  %v2816_v34 = vld [vmem:[#allocation4 + $0x18] sm:$0xff]   ;;  %v3132_v37 = vld [vmem:[#allocation9 + $0x64] ss:$12 sps:$4 sm:$0xff]   ;;  %v3151_v41 = vld [vmem:[#allocation9 + $0x34] ss:$12 sps:$4 sm:$0xff]   ;;  %v3054_v47 = vmov 0.0|0.0  }
  0x36   :  { %v3143_v39 = vld [vmem:[#allocation9 + $0x4c] ss:$12 sps:$4 sm:$0xff]   ;;  %v3149_v40 = vld [vmem:[#allocation9 + $0x30] ss:$12 sps:$4 sm:$0xff]   ;;  %v3197_v50 = vld [vmem:[#allocation9 + $0x68] ss:$12 sps:$4 sm:$0xff]  }
  0x37   :  { %287 = vmatpush1.bf16.msra.mxu0 %v2778_v12  ;;  %v3158_v42 = vld [vmem:[#allocation9 + $0x18] ss:$12 sps:$4 sm:$0xff]   ;;  %v3160_v43 = vld [vmem:[#allocation9 + $0x1c] ss:$12 sps:$4 sm:$0xff]   ;;  %v3166_v44 = vld [vmem:[#allocation9] ss:$12 sps:$4 sm:$0xff]  }
  0x38   :  { %2253 = vmatpush3.bf16.msra.mxu1 %v2777_v11  ;;  %288 = vmatprep.subr.bf16.mxu0 %v2779_v13  ;;  %v3168_v45 = vld [vmem:[#allocation9 + $0x4] ss:$12 sps:$4 sm:$0xff]   ;;  %v3191_v49 = vld [vmem:[#allocation9 + $0x80] ss:$12 sps:$4 sm:$0xff]   ;;  %v3221_v54 = vld [vmem:[#allocation9 + $0x8] ss:$12 sps:$4 sm:$0xff]  }
  0x39   :  { %2254 = vmatprep.subr.bf16.mxu1 %v2781_v14  ;;  %v3176_v46 = vld [vmem:[#allocation9 + $0xb0] ss:$12 sps:$4 sm:$0xff]   ;;  %v3181_v48 = vld [vmem:[#allocation9 + $0x98] ss:$12 sps:$4 sm:$0xff]   ;;  %v3215_v53 = vld [vmem:[#allocation9 + $0x20] ss:$12 sps:$4 sm:$0xff]  }
  0x3a   :  { %v3203_v51 = vld [vmem:[#allocation9 + $0x50] ss:$12 sps:$4 sm:$0xff]   ;;  %v3209_v52 = vld [vmem:[#allocation9 + $0x38] ss:$12 sps:$4 sm:$0xff]   ;;  %v114_v56 = vshrl.u32 %v113_v55, 7  ;;  %s3056_s19 = smov [#allocation10]  }
  0x3b   :  { %289 = vmatpush1.bf16.msra.mxu0 %v2782_v15  ;;  %v111_v60 = vld [vmem:[%s3755_s3] sm:$0x7]  ;;  %s1890_s20 = sshll.u32 %s3056_s19, 4  ;;  %s1891_s20 = int_to_ptr.vmem [resolvable:$true] %s1890_s20 }
  0x3c   :  { %2255 = vmatpush3.bf16.msra.mxu1 %v2781_v14  ;;  %290 = vmatprep.subr.bf16.mxu0 %v2783_v16  ;;  %v123_v57 = vsub.s32 2, %v114_v56  ;;  %v115_v58 = vsub.s32 0, %v114_v56  ;;  %v119_v59 = vsub.s32 1, %v114_v56 }
  0x3d   :  { %2256 = vmatprep.subr.bf16.mxu1 %v2785_v17 }
  0x3e   :  { %v124_v61 = vrot.slane %v111_v60, %v123_v57  ;;  %v3251_v62 = vrot.slane %v111_v60, %v115_v58  ;;  %v3253_v63 = vrot.slane %v111_v60, %v119_v59 }
  0x3f   :  { %291 = vmatpush1.bf16.msra.mxu0 %v2786_v19 }
  0x40   :  { %2257 = vmatpush3.bf16.msra.mxu1 %v2785_v17  ;;  %292 = vmatprep.subr.bf16.mxu0 %v2787_v20 }
  0x41   :  { %2258 = vmatprep.subr.bf16.mxu1 %v2789_v21 }
  0x43   :  { %293 = vmatpush1.bf16.msra.mxu0 %v2790_v22 }
  0x44   :  { %2259 = vmatpush3.bf16.msra.mxu1 %v2789_v21  ;;  %294 = vmatprep.subr.bf16.mxu0 %v2791_v23 }
  0x45   :  { %2260 = vmatprep.subr.bf16.mxu1 %v2793_v24 }
  0x47   :  { %295 = vmatpush1.bf16.msra.mxu0 %v2794_v25 }
  0x48   :  { %2261 = vmatpush3.bf16.msra.mxu1 %v2793_v24  ;;  %2270 = vmatprep.subr.bf16.mxu0 %v3052_v29 }
  0x49   :  { %2290 = vmatprep.subr.bf16.mxu1 %v3052_v29 }
  0x4a   :  { %313 = vmatmul.mubr.bf16.vlgmr.msra.gmra.mxu0 %v2795_v18 }
  0x4b   :  { %2263 = vmatmul.mubr.bf16.vlgmr.msra.gmra.mxu1 %v2796_v26  ;;  %2271 = vmatpush3.bf16.msra.mxu0 %v3105_v27 }
  0x4c   :  { %2291 = vmatpush3.bf16.msra.mxu1 %v3107_v28  ;;  %2272 = vmatprep.subr.bf16.mxu0 %v3052_v29 }
  0x4d   :  { %2292 = vmatprep.subr.bf16.mxu1 %v3052_v29  ;;  %322 = vmatprep.mubr.bf16.mxu0 %v3051_v0 }
  0x4e   :  { %2266 = vmatprep.mubr.bf16.mxu1 %v2809_v32 }
  0x4f   :  { %2273 = vmatpush3.bf16.msra.mxu0 %v3111_v30 }
  0x50   :  { %2293 = vmatpush3.bf16.msra.mxu1 %v3113_v31  ;;  %2274 = vmatprep.subr.bf16.mxu0 %v3052_v29 }
  0x51   :  { %2294 = vmatprep.subr.bf16.mxu1 %v3052_v29 }
  0x52   :  { %323 = vmatmul.mubr.bf16.gmra.mxu0 %v2796_v26 }
  0x53   :  { %2267 = vmatmul.mubr.bf16.gmra.mxu1 %v2816_v34  ;;  %2275 = vmatpush3.bf16.msra.mxu0 %v3120_v33 }
  0x54   :  { %2295 = vmatpush3.bf16.msra.mxu1 %v3124_v35  ;;  %2276 = vmatprep.subr.bf16.mxu0 %v3052_v29 }
  0x55   :  { %2296 = vmatprep.subr.bf16.mxu1 %v3052_v29  ;;  %332 = vmatprep.mubr.bf16.mxu0 %v3051_v0 }
  0x56   :  { %2306 = vmatprep.mubr.msk.bf16.mxu1 %vm3053_vm0, %v3052_v29 }
  0x57   :  { %2277 = vmatpush3.bf16.msra.mxu0 %v3130_v36 }
  0x58   :  { %2297 = vmatpush3.bf16.msra.mxu1 %v3132_v37  ;;  %2278 = vmatprep.subr.bf16.mxu0 %v3052_v29 }
  0x59   :  { %2298 = vmatprep.subr.bf16.mxu1 %v3052_v29 }
  0x5a   :  { %333 = vmatmul.mubr.bf16.gmra.mxu0 %v2809_v32 }
  0x5b   :  { %2279 = vmatpush3.bf16.msra.mxu0 %v3141_v38  ;;  %342 = vmatprep.mubr.bf16.mxu0 %v3051_v0 }
  0x5c   :  { %2299 = vmatpush3.bf16.msra.mxu1 %v3143_v39  ;;  %2280 = vmatprep.subr.bf16.mxu0 %v3052_v29 }
  0x5d   :  { %2300 = vmatprep.subr.bf16.mxu1 %v3052_v29 }
  0x5f   :  { %2281 = vmatpush3.bf16.msra.mxu0 %v3149_v40 }
  0x60   :  { %2301 = vmatpush3.bf16.msra.mxu1 %v3151_v41  ;;  %2282 = vmatprep.subr.bf16.mxu0 %v3052_v29 }
  0x61   :  { %2302 = vmatprep.subr.bf16.mxu1 %v3052_v29 }
  0x62   :  { %343 = vmatmul.mubr.bf16.gmra.mxu0 %v2816_v34 }
  0x63   :  { %2283 = vmatpush3.bf16.msra.mxu0 %v3158_v42  ;;  %2286 = vmatprep.mubr.msk.bf16.mxu0 %vm3053_vm0, %v3052_v29 }
  0x64   :  { %2303 = vmatpush3.bf16.msra.mxu1 %v3160_v43  ;;  %2284 = vmatprep.subr.bf16.mxu0 %v3052_v29 }
  0x65   :  { %2304 = vmatprep.subr.bf16.mxu1 %v3052_v29 }
  0x67   :  { %2285 = vmatpush3.bf16.msra.mxu0 %v3166_v44 }
  0x68   :  { %2305 = vmatpush3.bf16.msra.mxu1 %v3168_v45  ;;  %2310 = vmatprep.subr.bf16.mxu0 %v3052_v29 }
  0x69   :  { %2330 = vmatprep.subr.bf16.mxu1 %v3052_v29 }
  0x6a   :  { %2287 = vmatmul.mubr.bf16.vlgmr.msra.gmra.mxu0 %v3054_v47 }
  0x6b   :  { %2307 = vmatmul.mubr.bf16.vlgmr.msra.gmra.mxu1 %v3054_v47  ;;  %2311 = vmatpush3.bf16.msra.mxu0 %v3176_v46 }
  0x6c   :  { %2326 = vmatprep.mubr.msk.bf16.mxu0 %vm3053_vm0, %v3052_v29  ;;  %2312 = vmatprep.subr.bf16.mxu0 %v3052_v29 }
  0x6d   :  { %2331 = vmatpush3.bf16.msra.mxu1 %v3105_v27  ;;  %2346 = vmatprep.mubr.msk.bf16.mxu1 %vm3053_vm0, %v3052_v29 }
  0x6e   :  { %2332 = vmatprep.subr.bf16.mxu1 %v3052_v29 }
  0x6f   :  { %2313 = vmatpush3.bf16.msra.mxu0 %v3181_v48 }
  0x70   :  { %2314 = vmatprep.subr.bf16.mxu0 %v3052_v29 }
  0x71   :  { %2333 = vmatpush3.bf16.msra.mxu1 %v3111_v30 }
  0x72   :  { %2334 = vmatprep.subr.bf16.mxu1 %v3052_v29 }
  0x73   :  { %2315 = vmatpush3.bf16.msra.mxu0 %v3191_v49 }
  0x74   :  { %2316 = vmatprep.subr.bf16.mxu0 %v3052_v29 }
  0x75   :  { %2335 = vmatpush3.bf16.msra.mxu1 %v3120_v33 }
  0x76   :  { %2336 = vmatprep.subr.bf16.mxu1 %v3052_v29 }
  0x77   :  { %2317 = vmatpush3.bf16.msra.mxu0 %v3197_v50 }
  0x78   :  { %2318 = vmatprep.subr.bf16.mxu0 %v3052_v29 }
  0x79   :  { %2337 = vmatpush3.bf16.msra.mxu1 %v3130_v36 }
  0x7a   :  { %2338 = vmatprep.subr.bf16.mxu1 %v3052_v29 }
  0x7b   :  { %2319 = vmatpush3.bf16.msra.mxu0 %v3203_v51 }
  0x7c   :  { %2320 = vmatprep.subr.bf16.mxu0 %v3052_v29 }
  0x7d   :  { %2339 = vmatpush3.bf16.msra.mxu1 %v3141_v38 }
  0x7e   :  { %2340 = vmatprep.subr.bf16.mxu1 %v3052_v29 }
  0x7f   :  { %2321 = vmatpush3.bf16.msra.mxu0 %v3209_v52 }
  0x80   :  { %2322 = vmatprep.subr.bf16.mxu0 %v3052_v29 }
  0x81   :  { %2341 = vmatpush3.bf16.msra.mxu1 %v3149_v40 }
  0x82   :  { %2342 = vmatprep.subr.bf16.mxu1 %v3052_v29 }
  0x83   :  { %2323 = vmatpush3.bf16.msra.mxu0 %v3215_v53 }
  0x84   :  { %2324 = vmatprep.subr.bf16.mxu0 %v3052_v29 }
  0x85   :  { %2343 = vmatpush3.bf16.msra.mxu1 %v3158_v42 }
  0x86   :  { %2344 = vmatprep.subr.bf16.mxu1 %v3052_v29 }
  0x87   :  { %2325 = vmatpush3.bf16.msra.mxu0 %v3221_v54 }
  0x88   :  { %2350 = vmatprep.subr.bf16.mxu0 %v3052_v29 }
  0x89   :  { %2345 = vmatpush3.bf16.msra.mxu1 %v3166_v44 }
  0x8a   :  { %2370 = vmatprep.subr.bf16.mxu1 %v3052_v29  ;;  %2327 = vmatmul.mubr.bf16.vlgmr.msra.gmra.mxu0 %v3054_v47 }
  0x8b   :  { %2351 = vmatpush3.bf16.msra.mxu0 %v3107_v28  ;;  %2366 = vmatprep.mubr.msk.bf16.mxu0 %vm3053_vm0, %v3052_v29 }
  0x8c   :  { %2352 = vmatprep.subr.bf16.mxu0 %v3052_v29 }
  0x8f   :  { %2353 = vmatpush3.bf16.msra.mxu0 %v3113_v31 }
  0x90   :  { %2354 = vmatprep.subr.bf16.mxu0 %v3052_v29 }
  0x93   :  { %2355 = vmatpush3.bf16.msra.mxu0 %v3124_v35 }
  0x94   :  { %2356 = vmatprep.subr.bf16.mxu0 %v3052_v29 }
  0x97   :  { %2357 = vmatpush3.bf16.msra.mxu0 %v3132_v37 }
  0x98   :  { %2358 = vmatprep.subr.bf16.mxu0 %v3052_v29 }
  0x9b   :  { %2359 = vmatpush3.bf16.msra.mxu0 %v3143_v39 }
  0x9c   :  { %2360 = vmatprep.subr.bf16.mxu0 %v3052_v29 }
  0x9f   :  { %2361 = vmatpush3.bf16.msra.mxu0 %v3151_v41 }
  0xa0   :  { %2362 = vmatprep.subr.bf16.mxu0 %v3052_v29 }
  0xa3   :  { %2363 = vmatpush3.bf16.msra.mxu0 %v3160_v43 }
  0xa4   :  { %2364 = vmatprep.subr.bf16.mxu0 %v3052_v29 }
  0xa7   :  { %2365 = vmatpush3.bf16.msra.mxu0 %v3168_v45 }
  0xa8   :  { %2390 = vmatprep.subr.bf16.mxu0 %v3052_v29 }
 0x10a   :  { %v314_v0 = vpop.f32.mrf.mxu0 }
 0x10b   :  { %v2264_v1 = vpop.f32.mrf.mxu1  ;;  %v315_v5 = vadd.f32 %v314_v0, %v3251_v62 }
 0x10c   :  { %v396_v2 = vadd.f32 %v2264_v1, %v124_v61  ;;  %v316_v3 = vpop.f32.mrf.mxu0 }
 0x10d   :  { %v387_v4 = vpop.f32.mrf.mxu1  ;;  %v317_v6 = vadd.f32 %v316_v3, %v3253_v63 }
 0x10e   :  { %v2007_v7 = vpack.c.bf16 %v396_v2, %v396_v2  ;;  %v388_v8 = vadd.f32 %v387_v4, %v124_v61  ;;  %v318_v9 = vpop.f32.mrf.mxu0 }
 0x10f   :  { %v2265_v10 = vpop.f32.mrf.mxu1  ;;  %v3257_v11 = vpack.c.bf16 %v317_v6, %v315_v5  ;;  %v319_v16 = vadd.f32 %v318_v9, %v3251_v62 }
 0x110   :  { %503 = vst [vmem:[#allocation3 + $0x20] sm:$0xf] %v2007_v7  ;;  %v2003_v12 = vpack.c.bf16 %v388_v8, %v388_v8  ;;  %v399_v13 = vadd.f32 %v2265_v10, %v124_v61  ;;  %v320_v14 = vpop.f32.mrf.mxu0 }
 0x111   :  { %v390_v15 = vpop.f32.mrf.mxu1  ;;  %v321_v17 = vadd.f32 %v320_v14, %v3253_v63 }
 0x112   :  { %499 = vst [vmem:[#allocation3 + $0x8] sm:$0xf] %v2003_v12  ;;  %v2009_v18 = vpack.c.bf16 %v399_v13, %v399_v13  ;;  %v391_v19 = vadd.f32 %v390_v15, %v124_v61  ;;  %v324_v20 = vpop.f32.mrf.mxu0 }
 0x113   :  { %v2268_v21 = vpop.f32.mrf.mxu1  ;;  %v3261_v22 = vpack.c.bf16 %v321_v17, %v319_v16  ;;  %v325_v32 = vadd.f32 %v324_v20, %v3251_v62 }
 0x114   :  { %505 = vst [vmem:[#allocation3 + $0x2c] sm:$0xf] %v2009_v18  ;;  %v2005_v23 = vpack.c.bf16 %v391_v19, %v391_v19  ;;  %v412_v24 = vadd.f32 %v2268_v21, %v124_v61  ;;  %v326_v25 = vpop.f32.mrf.mxu0 }
 0x115   :  { %v403_v26 = vpop.f32.mrf.mxu1  ;;  %v327_v34 = vadd.f32 %v326_v25, %v3253_v63 }
 0x116   :  { %501 = vst [vmem:[#allocation3 + $0x14] sm:$0xf] %v2005_v23  ;;  %v2015_v47 = vpack.c.bf16 %v412_v24, %v412_v24  ;;  %v404_v55 = vadd.f32 %v403_v26, %v124_v61  ;;  %v328_v56 = vpop.f32.mrf.mxu0 }
 0x117   :  { %v2269_v57 = vpop.f32.mrf.mxu1  ;;  %v3265_v58 = vpack.c.bf16 %v327_v34, %v325_v32  ;;  %v329_v2 = vadd.f32 %v328_v56, %v3251_v62  ;;  %v645_v34 = vunpack.c.l.bf16 %v3257_v11 }
 0x118   :  { %511 = vst [vmem:[#allocation3 + $0x50] sm:$0xf] %v2015_v47  ;;  %v2011_v59 = vpack.c.bf16 %v404_v55, %v404_v55  ;;  %v415_v60 = vadd.f32 %v2269_v57, %v124_v61  ;;  %v330_v0 = vpop.f32.mrf.mxu0 }
 0x119   :  { %v406_v1 = vpop.f32.mrf.mxu1  ;;  %v331_v3 = vadd.f32 %v330_v0, %v3253_v63 }
 0x11a   :  { %507 = vst [vmem:[#allocation3 + $0x38] sm:$0xf] %v2011_v59  ;;  %v2017_v4 = vpack.c.bf16 %v415_v60, %v415_v60  ;;  %v407_v5 = vadd.f32 %v406_v1, %v124_v61  ;;  %v334_v6 = vpop.f32.mrf.mxu0 }
 0x11b   :  { %v3269_v7 = vpack.c.bf16 %v331_v3, %v329_v2  ;;  %v335_v10 = vadd.f32 %v334_v6, %v3251_v62  ;;  %v726_v3 = vrot.slane %v3257_v11, 4 }
 0x11c   :  { %513 = vst [vmem:[#allocation3 + $0x5c] sm:$0xf] %v2017_v4  ;;  %v2013_v8 = vpack.c.bf16 %v407_v5, %v407_v5  ;;  %v336_v9 = vpop.f32.mrf.mxu0 }
 0x11d   :  { %v337_v12 = vadd.f32 %v336_v9, %v3253_v63 }
 0x11e   :  { %509 = vst [vmem:[#allocation3 + $0x44] sm:$0xf] %v2013_v8  ;;  %v338_v13 = vpop.f32.mrf.mxu0 }
 0x11f   :  { %v3273_v14 = vpack.c.bf16 %v337_v12, %v335_v10  ;;  %v339_v16 = vadd.f32 %v338_v13, %v3251_v62  ;;  %v3288_v10 = vld [vmem:[%s3756_s4] ss:$0 sm:$0xff]  ;;  %v3290_v12 = vld [vmem:[#allocation3 + $0x8] ss:$12 sps:$4 sm:$0xff]  }
 0x120   :  { %v340_v15 = vpop.f32.mrf.mxu0 }
 0x121   :  { %v341_v17 = vadd.f32 %v340_v15, %v3253_v63 }
 0x122   :  { %v344_v61 = vpop.f32.mrf.mxu0 }
 0x123   :  { %v3277_v18 = vpack.c.bf16 %v341_v17, %v339_v16  ;;  %v345_v20 = vadd.f32 %v344_v61, %v3251_v62 }
 0x124   :  { %v346_v19 = vpop.f32.mrf.mxu0 }
 0x125   :  { %v347_v21 = vadd.f32 %v346_v19, %v3253_v63  ;;  %v825_v19 = vunpack.c.l.bf16 %v3290_v12 }
 0x126   :  { %v348_v23 = vpop.f32.mrf.mxu0 }
 0x127   :  { %v2014_v24 = vpack.c.bf16 %v347_v21, %v345_v20  ;;  %v349_v26 = vadd.f32 %v348_v23, %v3251_v62  ;;  %v728_v62 = vunpack.c.l.bf16 %v726_v3 }
 0x128   :  { %v350_v25 = vpop.f32.mrf.mxu0 }
 0x129   :  { %510 = vst [vmem:[#allocation3 + $0x48] sm:$0xff] %v2014_v24  ;;  %v351_v32 = vadd.f32 %v350_v25, %v3253_v63 }
 0x12a   :  { %v639_v47 = vpop.f32.mrf.mxu0 }
 0x12b   :  { %v719_v55 = vpop.f32.mrf.mxu1  ;;  %v2016_v56 = vpack.c.bf16 %v351_v32, %v349_v26  ;;  %v646_v57 = vadd.f32 %v645_v34, %v639_v47 }
 0x12c   :  { %v2288_v59 = vpop.f32.mrf.mxu0  ;;  %v729_v6 = vadd.f32 %v728_v62, %v719_v55 }
 0x12d   :  { %v2308_v60 = vpop.f32.mrf.mxu1  ;;  %512 = vst [vmem:[#allocation3 + $0x54] sm:$0xff] %v2016_v56  ;;  %v1970_v0 = vmul.f32 -1.442695, %v646_v57  ;;  %v875_v56 = vunpack.c.l.bf16 %v3261_v22 }
 0x12e   :  { %v642_v1 = vpop.f32.mrf.mxu0  ;;  %v1979_v63 = vmul.f32 -1.442695, %v729_v6 }
 0x12f   :  { %v722_v2 = vpop.f32.mrf.mxu1  ;;  %2831 = vpow2.f32 %v1970_v0 }
 0x130   :  { %v2289_v4 = vpop.f32.mrf.mxu0  ;;  %2833 = vpow2.f32 %v1979_v63 }
 0x131   :  { %v2309_v5 = vpop.f32.mrf.mxu1 }
 0x132   :  { %v924_v5 = vrot.slane %v3261_v22, 4 }
 0x134   :  { %v926_v63 = vunpack.c.l.bf16 %v924_v5  ;;  %v1074_v5 = vrot.slane %v3265_v58, 4 }
 0x13c   :  { %v2832_v8 = vpop.eup %2831 }
 0x13d   :  { %v650_v9 = vadd.f32 1.0, %v2832_v8  ;;  %v2834_v15 = vpop.eup %2833 }
 0x13e   :  { %v733_v21 = vadd.f32 1.0, %v2834_v15 }
 0x13f   :  { %2835 = vrcp.f32 %v650_v9 }
 0x14a   :  { %v818_v13 = vpop.f32.mrf.mxu0 }
 0x14b   :  { %v819_v11 = vadd.f32 %v3288_v10, %v818_v13 }
 0x14c   :  { %v2836_v16 = vpop.eup %2835  ;;  %v2328_v17 = vpop.f32.mrf.mxu0 }
 0x14d   :  { %v824_v61 = vmul.f32 %v2836_v16, %v819_v11 }
 0x14e   :  { %v821_v20 = vpop.f32.mrf.mxu0 }
 0x14f   :  { %v826_v23 = vadd.f32 %v825_v19, %v824_v61 }
 0x150   :  { %v2329_v24 = vpop.f32.mrf.mxu0 }
 0x151   :  { %2837 = vtanh.f32 %v826_v23 }
 0x152   :  { %2839 = vrcp.f32 %v733_v21  ;;  %v975_v21 = vunpack.c.h.bf16 %v3290_v12  ;;  %v1025_v12 = vunpack.c.l.bf16 %v3265_v58 }
 0x15e   :  { %v2838_v25 = vpop.eup %2837 }
 0x15f   :  { %v828_v26 = vsub.f32 0.0, %v2838_v25  ;;  %v2840_v32 = vpop.eup %2839 }
 0x161   :  { %v829_v34 = vmul.f32 %v2840_v32, %v828_v26 }
 0x163   :  { %v3294_v47 = vadd.f32 %v2838_v25, %v829_v34 }
 0x165   :  { %v831_v55 = vpack.c.bf16 %v3294_v47, %v3294_v47 }
 0x167   :  { %832 = vst [vmem:[#allocation10] sm:$0xf] %v831_v55  ;;  %2347 = vmatmul.mubr.bf16.vlgmr.msra.gmra.mxu1 %v831_v55  ;;  %2367 = vmatmul.mubr.bf16.vlgmr.msra.gmra.mxu0 %v831_v55 }
 0x168   :  { %2371 = vmatpush3.bf16.msra.mxu1 %v3176_v46  ;;  %2386 = vmatprep.mubr.msk.bf16.mxu1 %vm3053_vm0, %v3052_v29 }
 0x169   :  { %2372 = vmatprep.subr.bf16.mxu1 %v3052_v29  ;;  %2391 = vmatpush3.bf16.msra.mxu0 %v3105_v27 }
 0x16a   :  { %2392 = vmatprep.subr.bf16.mxu0 %v3052_v29  ;;  %2406 = vmatprep.mubr.msk.bf16.mxu0 %vm3053_vm0, %v3052_v29 }
 0x16c   :  { %2373 = vmatpush3.bf16.msra.mxu1 %v3181_v48 }
 0x16d   :  { %2374 = vmatprep.subr.bf16.mxu1 %v3052_v29  ;;  %2393 = vmatpush3.bf16.msra.mxu0 %v3111_v30 }
 0x16e   :  { %2394 = vmatprep.subr.bf16.mxu0 %v3052_v29 }
 0x170   :  { %2375 = vmatpush3.bf16.msra.mxu1 %v3191_v49 }
 0x171   :  { %2376 = vmatprep.subr.bf16.mxu1 %v3052_v29  ;;  %2395 = vmatpush3.bf16.msra.mxu0 %v3120_v33 }
 0x172   :  { %2396 = vmatprep.subr.bf16.mxu0 %v3052_v29 }
 0x174   :  { %2377 = vmatpush3.bf16.msra.mxu1 %v3197_v50 }
 0x175   :  { %2378 = vmatprep.subr.bf16.mxu1 %v3052_v29  ;;  %2397 = vmatpush3.bf16.msra.mxu0 %v3130_v36 }
 0x176   :  { %2398 = vmatprep.subr.bf16.mxu0 %v3052_v29 }
 0x178   :  { %2379 = vmatpush3.bf16.msra.mxu1 %v3203_v51 }
 0x179   :  { %2380 = vmatprep.subr.bf16.mxu1 %v3052_v29  ;;  %2399 = vmatpush3.bf16.msra.mxu0 %v3141_v38 }
 0x17a   :  { %2400 = vmatprep.subr.bf16.mxu0 %v3052_v29 }
 0x17c   :  { %2381 = vmatpush3.bf16.msra.mxu1 %v3209_v52 }
 0x17d   :  { %2382 = vmatprep.subr.bf16.mxu1 %v3052_v29  ;;  %2401 = vmatpush3.bf16.msra.mxu0 %v3149_v40 }
 0x17e   :  { %2402 = vmatprep.subr.bf16.mxu0 %v3052_v29 }
 0x180   :  { %2383 = vmatpush3.bf16.msra.mxu1 %v3215_v53 }
 0x181   :  { %2384 = vmatprep.subr.bf16.mxu1 %v3052_v29  ;;  %2403 = vmatpush3.bf16.msra.mxu0 %v3158_v42 }
 0x182   :  { %2404 = vmatprep.subr.bf16.mxu0 %v3052_v29 }
 0x184   :  { %2385 = vmatpush3.bf16.msra.mxu1 %v3221_v54 }
 0x185   :  { %2410 = vmatprep.subr.bf16.mxu1 %v3052_v29  ;;  %2405 = vmatpush3.bf16.msra.mxu0 %v3166_v44 }
 0x186   :  { %2430 = vmatprep.subr.bf16.mxu0 %v3052_v29 }
 0x187   :  { %2387 = vmatmul.mubr.bf16.vlgmr.msra.gmra.mxu1 %v831_v55 }
 0x188   :  { %2411 = vmatpush3.bf16.msra.mxu1 %v3107_v28  ;;  %2426 = vmatprep.mubr.msk.bf16.mxu1 %vm3053_vm0, %v3052_v29 }
 0x189   :  { %2412 = vmatprep.subr.bf16.mxu1 %v3052_v29 }
 0x18c   :  { %2413 = vmatpush3.bf16.msra.mxu1 %v3113_v31 }
 0x18d   :  { %2414 = vmatprep.subr.bf16.mxu1 %v3052_v29 }
 0x190   :  { %2415 = vmatpush3.bf16.msra.mxu1 %v3124_v35 }
 0x191   :  { %2416 = vmatprep.subr.bf16.mxu1 %v3052_v29 }
 0x194   :  { %2417 = vmatpush3.bf16.msra.mxu1 %v3132_v37 }
 0x195   :  { %2418 = vmatprep.subr.bf16.mxu1 %v3052_v29 }
 0x198   :  { %2419 = vmatpush3.bf16.msra.mxu1 %v3143_v39 }
 0x199   :  { %2420 = vmatprep.subr.bf16.mxu1 %v3052_v29 }
 0x19c   :  { %2421 = vmatpush3.bf16.msra.mxu1 %v3151_v41 }
 0x19d   :  { %2422 = vmatprep.subr.bf16.mxu1 %v3052_v29 }
 0x1a0   :  { %2423 = vmatpush3.bf16.msra.mxu1 %v3160_v43 }
 0x1a1   :  { %2424 = vmatprep.subr.bf16.mxu1 %v3052_v29 }
 0x1a4   :  { %2425 = vmatpush3.bf16.msra.mxu1 %v3168_v45 }
 0x1a5   :  { %2450 = vmatprep.subr.bf16.mxu1 %v3052_v29 }
 0x227   :  { %v869_v57 = vpop.f32.mrf.mxu1  ;;  %v917_v59 = vpop.f32.mrf.mxu0 }
 0x228   :  { %v876_v60 = vadd.f32 %v875_v56, %v869_v57  ;;  %v927_v8 = vadd.f32 %v926_v63, %v917_v59  ;;  %v1076_v63 = vunpack.c.l.bf16 %v1074_v5 }
 0x229   :  { %v2348_v0 = vpop.f32.mrf.mxu1  ;;  %v2368_v1 = vpop.f32.mrf.mxu0 }
 0x22a   :  { %v1988_v2 = vmul.f32 -1.442695, %v876_v60  ;;  %v1989_v9 = vmul.f32 -1.442695, %v927_v8 }
 0x22b   :  { %v872_v3 = vpop.f32.mrf.mxu1  ;;  %v920_v4 = vpop.f32.mrf.mxu0 }
 0x22c   :  { %2841 = vpow2.f32 %v1988_v2 }
 0x22d   :  { %v2349_v62 = vpop.f32.mrf.mxu1  ;;  %v2369_v6 = vpop.f32.mrf.mxu0  ;;  %2843 = vpow2.f32 %v1989_v9 }
 0x239   :  { %v2842_v13 = vpop.eup %2841 }
 0x23a   :  { %v880_v15 = vadd.f32 1.0, %v2842_v13  ;;  %v2844_v16 = vpop.eup %2843 }
 0x23b   :  { %v931_v22 = vadd.f32 1.0, %v2844_v16 }
 0x23c   :  { %2845 = vrcp.f32 %v880_v15 }
 0x247   :  { %v968_v11 = vpop.f32.mrf.mxu1 }
 0x248   :  { %v969_v17 = vadd.f32 %v3288_v10, %v968_v11  ;;  %v3417_v11 = vld [vmem:[#allocation3 + $0x20] ss:$12 sps:$4 sm:$0xff]  }
 0x249   :  { %v2846_v61 = vpop.eup %2845  ;;  %v2388_v19 = vpop.f32.mrf.mxu1  ;;  %v1125_v58 = vunpack.c.l.bf16 %v3417_v11 }
 0x24a   :  { %v974_v20 = vmul.f32 %v2846_v61, %v969_v17 }
 0x24b   :  { %v971_v23 = vpop.f32.mrf.mxu1 }
 0x24c   :  { %v976_v24 = vadd.f32 %v975_v21, %v974_v20 }
 0x24d   :  { %v2389_v25 = vpop.f32.mrf.mxu1 }
 0x24e   :  { %2847 = vtanh.f32 %v976_v24 }
 0x24f   :  { %2849 = vrcp.f32 %v931_v22 }
 0x25b   :  { %v2848_v26 = vpop.eup %2847 }
 0x25c   :  { %v978_v32 = vsub.f32 %v3294_v47, %v2848_v26  ;;  %v2850_v34 = vpop.eup %2849 }
 0x25e   :  { %v979_v55 = vmul.f32 %v2850_v34, %v978_v32 }
 0x260   :  { %v3357_v56 = vadd.f32 %v2848_v26, %v979_v55 }
 0x262   :  { %v981_v57 = vpack.c.bf16 %v3357_v56, %v3357_v56 }
 0x264   :  { %982 = vst [vmem:[#allocation10 + $0x4] sm:$0xf] %v981_v57  ;;  %2407 = vmatmul.mubr.bf16.vlgmr.msra.gmra.mxu0 %v981_v57  ;;  %2427 = vmatmul.mubr.bf16.vlgmr.msra.gmra.mxu1 %v981_v57 }
 0x265   :  { %2431 = vmatpush3.bf16.msra.mxu0 %v3176_v46  ;;  %2446 = vmatprep.mubr.msk.bf16.mxu0 %vm3053_vm0, %v3052_v29 }
 0x266   :  { %2432 = vmatprep.subr.bf16.mxu0 %v3052_v29  ;;  %2451 = vmatpush3.bf16.msra.mxu1 %v3105_v27 }
 0x267   :  { %2452 = vmatprep.subr.bf16.mxu1 %v3052_v29  ;;  %2466 = vmatprep.mubr.msk.bf16.mxu1 %vm3053_vm0, %v3052_v29 }
 0x269   :  { %2433 = vmatpush3.bf16.msra.mxu0 %v3181_v48 }
 0x26a   :  { %2434 = vmatprep.subr.bf16.mxu0 %v3052_v29  ;;  %2453 = vmatpush3.bf16.msra.mxu1 %v3111_v30 }
 0x26b   :  { %2454 = vmatprep.subr.bf16.mxu1 %v3052_v29 }
 0x26d   :  { %2435 = vmatpush3.bf16.msra.mxu0 %v3191_v49 }
 0x26e   :  { %2436 = vmatprep.subr.bf16.mxu0 %v3052_v29  ;;  %2455 = vmatpush3.bf16.msra.mxu1 %v3120_v33 }
 0x26f   :  { %2456 = vmatprep.subr.bf16.mxu1 %v3052_v29 }
 0x271   :  { %2437 = vmatpush3.bf16.msra.mxu0 %v3197_v50 }
 0x272   :  { %2438 = vmatprep.subr.bf16.mxu0 %v3052_v29  ;;  %2457 = vmatpush3.bf16.msra.mxu1 %v3130_v36 }
 0x273   :  { %2458 = vmatprep.subr.bf16.mxu1 %v3052_v29 }
 0x275   :  { %2439 = vmatpush3.bf16.msra.mxu0 %v3203_v51 }
 0x276   :  { %2440 = vmatprep.subr.bf16.mxu0 %v3052_v29  ;;  %2459 = vmatpush3.bf16.msra.mxu1 %v3141_v38 }
 0x277   :  { %2460 = vmatprep.subr.bf16.mxu1 %v3052_v29 }
 0x279   :  { %2441 = vmatpush3.bf16.msra.mxu0 %v3209_v52 }
 0x27a   :  { %2442 = vmatprep.subr.bf16.mxu0 %v3052_v29  ;;  %2461 = vmatpush3.bf16.msra.mxu1 %v3149_v40 }
 0x27b   :  { %2462 = vmatprep.subr.bf16.mxu1 %v3052_v29 }
 0x27d   :  { %2443 = vmatpush3.bf16.msra.mxu0 %v3215_v53 }
 0x27e   :  { %2444 = vmatprep.subr.bf16.mxu0 %v3052_v29  ;;  %2463 = vmatpush3.bf16.msra.mxu1 %v3158_v42 }
 0x27f   :  { %2464 = vmatprep.subr.bf16.mxu1 %v3052_v29 }
 0x281   :  { %2445 = vmatpush3.bf16.msra.mxu0 %v3221_v54 }
 0x282   :  { %2470 = vmatprep.subr.bf16.mxu0 %v3052_v29  ;;  %2465 = vmatpush3.bf16.msra.mxu1 %v3166_v44 }
 0x283   :  { %2490 = vmatprep.subr.bf16.mxu1 %v3052_v29 }
 0x284   :  { %2447 = vmatmul.mubr.bf16.vlgmr.msra.gmra.mxu0 %v981_v57 }
 0x285   :  { %2471 = vmatpush3.bf16.msra.mxu0 %v3107_v28  ;;  %2486 = vmatprep.mubr.msk.bf16.mxu0 %vm3053_vm0, %v3052_v29 }
 0x286   :  { %2472 = vmatprep.subr.bf16.mxu0 %v3052_v29 }
 0x289   :  { %2473 = vmatpush3.bf16.msra.mxu0 %v3113_v31 }
 0x28a   :  { %2474 = vmatprep.subr.bf16.mxu0 %v3052_v29 }
 0x28d   :  { %2475 = vmatpush3.bf16.msra.mxu0 %v3124_v35 }
 0x28e   :  { %2476 = vmatprep.subr.bf16.mxu0 %v3052_v29 }
 0x291   :  { %2477 = vmatpush3.bf16.msra.mxu0 %v3132_v37 }
 0x292   :  { %2478 = vmatprep.subr.bf16.mxu0 %v3052_v29 }
 0x295   :  { %2479 = vmatpush3.bf16.msra.mxu0 %v3143_v39 }
 0x296   :  { %2480 = vmatprep.subr.bf16.mxu0 %v3052_v29 }
 0x299   :  { %2481 = vmatpush3.bf16.msra.mxu0 %v3151_v41 }
 0x29a   :  { %2482 = vmatprep.subr.bf16.mxu0 %v3052_v29 }
 0x29d   :  { %2483 = vmatpush3.bf16.msra.mxu0 %v3160_v43 }
 0x29e   :  { %2484 = vmatprep.subr.bf16.mxu0 %v3052_v29 }
 0x2a1   :  { %2485 = vmatpush3.bf16.msra.mxu0 %v3168_v45 }
 0x2a2   :  { %2510 = vmatprep.subr.bf16.mxu0 %v3052_v29 }
 0x324   :  { %v1019_v47 = vpop.f32.mrf.mxu0  ;;  %v1067_v59 = vpop.f32.mrf.mxu1 }
 0x325   :  { %v1026_v60 = vadd.f32 %v1025_v12, %v1019_v47  ;;  %v1077_v8 = vadd.f32 %v1076_v63, %v1067_v59 }
 0x326   :  { %v2408_v0 = vpop.f32.mrf.mxu0  ;;  %v2428_v1 = vpop.f32.mrf.mxu1 }
 0x327   :  { %v1990_v2 = vmul.f32 -1.442695, %v1026_v60  ;;  %v1991_v9 = vmul.f32 -1.442695, %v1077_v8 }
 0x328   :  { %v1022_v3 = vpop.f32.mrf.mxu0  ;;  %v1070_v4 = vpop.f32.mrf.mxu1 }
 0x329   :  { %2851 = vpow2.f32 %v1990_v2  ;;  %v1275_v3 = vunpack.c.h.bf16 %v3417_v11  ;;  %v3493_v11 = vld [vmem:[#allocation9 + $0xa8] ss:$12 sps:$4 sm:$0xff]  }
 0x32a   :  { %v2409_v62 = vpop.f32.mrf.mxu0  ;;  %v2429_v6 = vpop.f32.mrf.mxu1  ;;  %2853 = vpow2.f32 %v1991_v9 }
 0x336   :  { %v2852_v13 = vpop.eup %2851 }
 0x337   :  { %v1030_v15 = vadd.f32 1.0, %v2852_v13  ;;  %v2854_v17 = vpop.eup %2853 }
 0x338   :  { %v1081_v22 = vadd.f32 1.0, %v2854_v17  ;;  %v3547_v17 = vld [vmem:[#allocation9 + $0x94] ss:$12 sps:$4 sm:$0xff]  }
 0x339   :  { %2855 = vrcp.f32 %v1030_v15 }
 0x344   :  { %v1118_v16 = vpop.f32.mrf.mxu0 }
 0x345   :  { %v1119_v61 = vadd.f32 %v3288_v10, %v1118_v16  ;;  %v3501_v16 = vld [vmem:[#allocation9 + $0x90] ss:$12 sps:$4 sm:$0xff]  }
 0x346   :  { %v2856_v19 = vpop.eup %2855  ;;  %v2448_v20 = vpop.f32.mrf.mxu0 }
 0x347   :  { %v1124_v21 = vmul.f32 %v2856_v19, %v1119_v61  ;;  %v3555_v61 = vld [vmem:[#allocation9 + $0x64] ss:$12 sps:$4 sm:$0xff]   ;;  %v3559_v19 = vld [vmem:[#allocation9 + $0x4c] ss:$12 sps:$4 sm:$0xff]   ;;  %v3563_v20 = vld [vmem:[#allocation9 + $0x34] ss:$12 sps:$4 sm:$0xff]  }
 0x348   :  { %v1121_v23 = vpop.f32.mrf.mxu0 }
 0x349   :  { %v1126_v24 = vadd.f32 %v1125_v58, %v1124_v21  ;;  %v3567_v21 = vld [vmem:[#allocation9 + $0x1c] ss:$12 sps:$4 sm:$0xff]   ;;  %v3571_v58 = vld [vmem:[#allocation9 + $0x4] ss:$12 sps:$4 sm:$0xff]   ;;  %v1325_v23 = vunpack.c.l.bf16 %v3273_v14 }
 0x34a   :  { %v2449_v25 = vpop.f32.mrf.mxu0 }
 0x34b   :  { %2857 = vtanh.f32 %v1126_v24 }
 0x34c   :  { %2859 = vrcp.f32 %v1081_v22 }
 0x358   :  { %v2858_v26 = vpop.eup %2857 }
 0x359   :  { %v1128_v32 = vsub.f32 %v3357_v56, %v2858_v26  ;;  %v2860_v34 = vpop.eup %2859 }
 0x35b   :  { %v1129_v55 = vmul.f32 %v2860_v34, %v1128_v32 }
 0x35d   :  { %v3422_v57 = vadd.f32 %v2858_v26, %v1129_v55 }
 0x35f   :  { %v1131_v12 = vpack.c.bf16 %v3422_v57, %v3422_v57 }
 0x361   :  { %1132 = vst [vmem:[#allocation10 + $0x8] sm:$0xf] %v1131_v12  ;;  %2467 = vmatmul.mubr.bf16.vlgmr.msra.gmra.mxu1 %v1131_v12  ;;  %2487 = vmatmul.mubr.bf16.vlgmr.msra.gmra.mxu0 %v1131_v12 }
 0x362   :  { %2491 = vmatpush3.bf16.msra.mxu1 %v3176_v46  ;;  %2506 = vmatprep.mubr.msk.bf16.mxu1 %vm3053_vm0, %v3052_v29 }
 0x363   :  { %2492 = vmatprep.subr.bf16.mxu1 %v3052_v29  ;;  %2511 = vmatpush3.bf16.msra.mxu0 %v3105_v27  ;;  %v1175_v27 = vunpack.c.l.bf16 %v3269_v7 }
 0x364   :  { %2512 = vmatprep.subr.bf16.mxu0 %v3052_v29  ;;  %2526 = vmatprep.mubr.msk.bf16.mxu0 %vm3053_vm0, %v3052_v29 }
 0x366   :  { %2493 = vmatpush3.bf16.msra.mxu1 %v3181_v48 }
 0x367   :  { %2494 = vmatprep.subr.bf16.mxu1 %v3052_v29  ;;  %2513 = vmatpush3.bf16.msra.mxu0 %v3111_v30 }
 0x368   :  { %2514 = vmatprep.subr.bf16.mxu0 %v3052_v29 }
 0x36a   :  { %2495 = vmatpush3.bf16.msra.mxu1 %v3191_v49 }
 0x36b   :  { %2496 = vmatprep.subr.bf16.mxu1 %v3052_v29  ;;  %2515 = vmatpush3.bf16.msra.mxu0 %v3120_v33 }
 0x36c   :  { %2516 = vmatprep.subr.bf16.mxu0 %v3052_v29 }
 0x36e   :  { %2497 = vmatpush3.bf16.msra.mxu1 %v3197_v50 }
 0x36f   :  { %2498 = vmatprep.subr.bf16.mxu1 %v3052_v29  ;;  %2517 = vmatpush3.bf16.msra.mxu0 %v3130_v36 }
 0x370   :  { %2518 = vmatprep.subr.bf16.mxu0 %v3052_v29 }
 0x372   :  { %2499 = vmatpush3.bf16.msra.mxu1 %v3203_v51 }
 0x373   :  { %2500 = vmatprep.subr.bf16.mxu1 %v3052_v29  ;;  %2519 = vmatpush3.bf16.msra.mxu0 %v3141_v38 }
 0x374   :  { %2520 = vmatprep.subr.bf16.mxu0 %v3052_v29 }
 0x376   :  { %2501 = vmatpush3.bf16.msra.mxu1 %v3209_v52 }
 0x377   :  { %2502 = vmatprep.subr.bf16.mxu1 %v3052_v29  ;;  %2521 = vmatpush3.bf16.msra.mxu0 %v3149_v40 }
 0x378   :  { %2522 = vmatprep.subr.bf16.mxu0 %v3052_v29 }
 0x37a   :  { %2503 = vmatpush3.bf16.msra.mxu1 %v3215_v53 }
 0x37b   :  { %2504 = vmatprep.subr.bf16.mxu1 %v3052_v29  ;;  %2523 = vmatpush3.bf16.msra.mxu0 %v3158_v42 }
 0x37c   :  { %2524 = vmatprep.subr.bf16.mxu0 %v3052_v29 }
 0x37e   :  { %2505 = vmatpush3.bf16.msra.mxu1 %v3221_v54 }
 0x37f   :  { %2530 = vmatprep.subr.bf16.mxu1 %v3052_v29  ;;  %2525 = vmatpush3.bf16.msra.mxu0 %v3166_v44 }
 0x380   :  { %2550 = vmatprep.subr.bf16.mxu0 %v3052_v29 }
 0x381   :  { %2507 = vmatmul.mubr.bf16.vlgmr.msra.gmra.mxu1 %v1131_v12  ;;  %v1374_v12 = vrot.slane %v3273_v14, 4 }
 0x382   :  { %2531 = vmatpush3.bf16.msra.mxu1 %v3107_v28  ;;  %2546 = vmatprep.mubr.msk.bf16.mxu1 %vm3053_vm0, %v3052_v29 }
 0x383   :  { %2532 = vmatprep.subr.bf16.mxu1 %v3052_v29 }
 0x386   :  { %2533 = vmatpush3.bf16.msra.mxu1 %v3113_v31 }
 0x387   :  { %2534 = vmatprep.subr.bf16.mxu1 %v3052_v29 }
 0x38a   :  { %2535 = vmatpush3.bf16.msra.mxu1 %v3124_v35 }
 0x38b   :  { %2536 = vmatprep.subr.bf16.mxu1 %v3052_v29 }
 0x38e   :  { %2537 = vmatpush3.bf16.msra.mxu1 %v3132_v37 }
 0x38f   :  { %2538 = vmatprep.subr.bf16.mxu1 %v3052_v29 }
 0x392   :  { %2539 = vmatpush3.bf16.msra.mxu1 %v3143_v39  ;;  %v1224_v39 = vrot.slane %v3269_v7, 4 }
 0x393   :  { %2540 = vmatprep.subr.bf16.mxu1 %v3052_v29 }
 0x394   :  { %v1226_v42 = vunpack.c.l.bf16 %v1224_v39 }
 0x396   :  { %2541 = vmatpush3.bf16.msra.mxu1 %v3151_v41 }
 0x397   :  { %2542 = vmatprep.subr.bf16.mxu1 %v3052_v29 }
 0x39a   :  { %2543 = vmatpush3.bf16.msra.mxu1 %v3160_v43 }
 0x39b   :  { %2544 = vmatprep.subr.bf16.mxu1 %v3052_v29 }
 0x39e   :  { %2545 = vmatpush3.bf16.msra.mxu1 %v3168_v45 }
 0x39f   :  { %2570 = vmatprep.subr.bf16.mxu1 %v3052_v29 }
 0x421   :  { %v1169_v28 = vpop.f32.mrf.mxu1  ;;  %v1217_v30 = vpop.f32.mrf.mxu0 }
 0x422   :  { %v1176_v31 = vadd.f32 %v1175_v27, %v1169_v28  ;;  %v1227_v43 = vadd.f32 %v1226_v42, %v1217_v30  ;;  %v1376_v30 = vunpack.c.l.bf16 %v1374_v12 }
 0x423   :  { %v2468_v33 = vpop.f32.mrf.mxu1  ;;  %v2488_v35 = vpop.f32.mrf.mxu0 }
 0x424   :  { %v1992_v36 = vmul.f32 -1.442695, %v1176_v31  ;;  %v1993_v44 = vmul.f32 -1.442695, %v1227_v43 }
 0x425   :  { %v1172_v37 = vpop.f32.mrf.mxu1  ;;  %v1220_v38 = vpop.f32.mrf.mxu0 }
 0x426   :  { %2861 = vpow2.f32 %v1992_v36  ;;  %v3577_v37 = vld [vmem:[#allocation3 + $0x38] ss:$12 sps:$4 sm:$0xff]  }
 0x427   :  { %v2469_v40 = vpop.f32.mrf.mxu1  ;;  %v2489_v41 = vpop.f32.mrf.mxu0  ;;  %2863 = vpow2.f32 %v1993_v44  ;;  %v1425_v14 = vunpack.c.l.bf16 %v3577_v37 }
 0x433   :  { %v2862_v45 = vpop.eup %2861 }
 0x434   :  { %v1180_v56 = vadd.f32 1.0, %v2862_v45  ;;  %v2864_v59 = vpop.eup %2863 }
 0x435   :  { %v1231_v7 = vadd.f32 1.0, %v2864_v59 }
 0x436   :  { %2865 = vrcp.f32 %v1180_v56 }
 0x441   :  { %v1268_v47 = vpop.f32.mrf.mxu1 }
 0x442   :  { %v1269_v60 = vadd.f32 %v3288_v10, %v1268_v47 }
 0x443   :  { %v2866_v0 = vpop.eup %2865  ;;  %v2508_v1 = vpop.f32.mrf.mxu1 }
 0x444   :  { %v1274_v2 = vmul.f32 %v2866_v0, %v1269_v60 }
 0x445   :  { %v1271_v4 = vpop.f32.mrf.mxu1 }
 0x446   :  { %v1276_v5 = vadd.f32 %v1275_v3, %v1274_v2  ;;  %v3586_v4 = vld [vmem:[#allocation9 + $0xb0] ss:$12 sps:$4 sm:$0xff]  }
 0x447   :  { %v2509_v62 = vpop.f32.mrf.mxu1 }
 0x448   :  { %2867 = vtanh.f32 %v1276_v5  ;;  %v3602_v5 = vld [vmem:[#allocation9 + $0x80] ss:$12 sps:$4 sm:$0xff]   ;;  %v3608_v62 = vld [vmem:[#allocation9 + $0x68] ss:$12 sps:$4 sm:$0xff]  }
 0x449   :  { %2869 = vrcp.f32 %v1231_v7  ;;  %v3596_v7 = vld [vmem:[#allocation9 + $0x98] ss:$12 sps:$4 sm:$0xff]  }
 0x455   :  { %v2868_v6 = vpop.eup %2867 }
 0x456   :  { %v1278_v63 = vsub.f32 %v3422_v57, %v2868_v6  ;;  %v2870_v8 = vpop.eup %2869 }
 0x458   :  { %v1279_v9 = vmul.f32 %v2870_v8, %v1278_v63  ;;  %v3620_v63 = vld [vmem:[#allocation9 + $0x38] ss:$12 sps:$4 sm:$0xff]   ;;  %v3626_v8 = vld [vmem:[#allocation9 + $0x20] ss:$12 sps:$4 sm:$0xff]  }
 0x45a   :  { %v3485_v13 = vadd.f32 %v2868_v6, %v1279_v9  ;;  %v3614_v6 = vld [vmem:[#allocation9 + $0x50] ss:$12 sps:$4 sm:$0xff]   ;;  %v3632_v9 = vld [vmem:[#allocation9 + $0x8] ss:$12 sps:$4 sm:$0xff]  }
 0x45c   :  { %v1281_v15 = vpack.c.bf16 %v3485_v13, %v3485_v13 }
 0x45e   :  { %1282 = vst [vmem:[#allocation10 + $0xc] sm:$0xf] %v1281_v15  ;;  %2527 = vmatmul.mubr.bf16.vlgmr.msra.gmra.mxu0 %v1281_v15  ;;  %2547 = vmatmul.mubr.bf16.vlgmr.msra.gmra.mxu1 %v1281_v15 }
 0x45f   :  { %2551 = vmatpush3.bf16.msra.mxu0 %v3176_v46  ;;  %2566 = vmatprep.mubr.msk.bf16.mxu0 %vm3053_vm0, %v3052_v29  ;;  %v3507_v46 = vld [vmem:[#allocation9 + $0x78] ss:$12 sps:$4 sm:$0xff]  }
 0x460   :  { %2552 = vmatprep.subr.bf16.mxu0 %v3052_v29  ;;  %2571 = vmatpush3.bf16.msra.mxu1 %v3493_v11 }
 0x461   :  { %2572 = vmatprep.subr.bf16.mxu1 %v3052_v29  ;;  %2586 = vmatprep.mubr.msk.bf16.mxu1 %vm3053_vm0, %v3052_v29 }
 0x463   :  { %2553 = vmatpush3.bf16.msra.mxu0 %v3181_v48  ;;  %v3513_v48 = vld [vmem:[#allocation9 + $0x60] ss:$12 sps:$4 sm:$0xff]  }
 0x464   :  { %2554 = vmatprep.subr.bf16.mxu0 %v3052_v29  ;;  %2573 = vmatpush3.bf16.msra.mxu1 %v3501_v16 }
 0x465   :  { %2574 = vmatprep.subr.bf16.mxu1 %v3052_v29 }
 0x467   :  { %2555 = vmatpush3.bf16.msra.mxu0 %v3191_v49  ;;  %v3519_v49 = vld [vmem:[#allocation9 + $0x48] ss:$12 sps:$4 sm:$0xff]  }
 0x468   :  { %2556 = vmatprep.subr.bf16.mxu0 %v3052_v29  ;;  %2575 = vmatpush3.bf16.msra.mxu1 %v3507_v46 }
 0x469   :  { %2576 = vmatprep.subr.bf16.mxu1 %v3052_v29 }
 0x46b   :  { %2557 = vmatpush3.bf16.msra.mxu0 %v3197_v50  ;;  %v3525_v50 = vld [vmem:[#allocation9 + $0x30] ss:$12 sps:$4 sm:$0xff]  }
 0x46c   :  { %2558 = vmatprep.subr.bf16.mxu0 %v3052_v29  ;;  %2577 = vmatpush3.bf16.msra.mxu1 %v3513_v48 }
 0x46d   :  { %2578 = vmatprep.subr.bf16.mxu1 %v3052_v29 }
 0x46f   :  { %2559 = vmatpush3.bf16.msra.mxu0 %v3203_v51  ;;  %v3531_v51 = vld [vmem:[#allocation9 + $0x18] ss:$12 sps:$4 sm:$0xff]  }
 0x470   :  { %2560 = vmatprep.subr.bf16.mxu0 %v3052_v29  ;;  %2579 = vmatpush3.bf16.msra.mxu1 %v3519_v49 }
 0x471   :  { %2580 = vmatprep.subr.bf16.mxu1 %v3052_v29 }
 0x473   :  { %2561 = vmatpush3.bf16.msra.mxu0 %v3209_v52  ;;  %v3537_v52 = vld [vmem:[#allocation9] ss:$12 sps:$4 sm:$0xff]  }
 0x474   :  { %2562 = vmatprep.subr.bf16.mxu0 %v3052_v29  ;;  %2581 = vmatpush3.bf16.msra.mxu1 %v3525_v50 }
 0x475   :  { %2582 = vmatprep.subr.bf16.mxu1 %v3052_v29 }
 0x477   :  { %2563 = vmatpush3.bf16.msra.mxu0 %v3215_v53  ;;  %v3541_v53 = vld [vmem:[#allocation9 + $0xac] ss:$12 sps:$4 sm:$0xff]  }
 0x478   :  { %2564 = vmatprep.subr.bf16.mxu0 %v3052_v29  ;;  %2583 = vmatpush3.bf16.msra.mxu1 %v3531_v51 }
 0x479   :  { %2584 = vmatprep.subr.bf16.mxu1 %v3052_v29 }
 0x47b   :  { %2565 = vmatpush3.bf16.msra.mxu0 %v3221_v54  ;;  %v3551_v54 = vld [vmem:[#allocation9 + $0x7c] ss:$12 sps:$4 sm:$0xff]  }
 0x47c   :  { %2590 = vmatprep.subr.bf16.mxu0 %v3052_v29  ;;  %2585 = vmatpush3.bf16.msra.mxu1 %v3537_v52 }
 0x47d   :  { %2610 = vmatprep.subr.bf16.mxu1 %v3052_v29 }
 0x47e   :  { %2567 = vmatmul.mubr.bf16.vlgmr.msra.gmra.mxu0 %v1281_v15 }
 0x47f   :  { %2591 = vmatpush3.bf16.msra.mxu0 %v3541_v53  ;;  %2606 = vmatprep.mubr.msk.bf16.mxu0 %vm3053_vm0, %v3052_v29 }
 0x480   :  { %2592 = vmatprep.subr.bf16.mxu0 %v3052_v29 }
 0x483   :  { %2593 = vmatpush3.bf16.msra.mxu0 %v3547_v17 }
 0x484   :  { %2594 = vmatprep.subr.bf16.mxu0 %v3052_v29 }
 0x487   :  { %2595 = vmatpush3.bf16.msra.mxu0 %v3551_v54 }
 0x488   :  { %2596 = vmatprep.subr.bf16.mxu0 %v3052_v29 }
 0x48b   :  { %2597 = vmatpush3.bf16.msra.mxu0 %v3555_v61 }
 0x48c   :  { %2598 = vmatprep.subr.bf16.mxu0 %v3052_v29 }
 0x48f   :  { %2599 = vmatpush3.bf16.msra.mxu0 %v3559_v19 }
 0x490   :  { %2600 = vmatprep.subr.bf16.mxu0 %v3052_v29 }
 0x493   :  { %2601 = vmatpush3.bf16.msra.mxu0 %v3563_v20 }
 0x494   :  { %2602 = vmatprep.subr.bf16.mxu0 %v3052_v29 }
 0x497   :  { %2603 = vmatpush3.bf16.msra.mxu0 %v3567_v21 }
 0x498   :  { %2604 = vmatprep.subr.bf16.mxu0 %v3052_v29 }
 0x49b   :  { %2605 = vmatpush3.bf16.msra.mxu0 %v3571_v58 }
 0x49c   :  { %2630 = vmatprep.subr.bf16.mxu0 %v3052_v29 }
 0x51e   :  { %v1319_v22 = vpop.f32.mrf.mxu0  ;;  %v1367_v24 = vpop.f32.mrf.mxu1 }
 0x51f   :  { %v1326_v25 = vadd.f32 %v1325_v23, %v1319_v22  ;;  %v1377_v31 = vadd.f32 %v1376_v30, %v1367_v24 }
 0x520   :  { %v2528_v26 = vpop.f32.mrf.mxu0  ;;  %v2548_v32 = vpop.f32.mrf.mxu1 }
 0x521   :  { %v1994_v34 = vmul.f32 -1.442695, %v1326_v25  ;;  %v1995_v33 = vmul.f32 -1.442695, %v1377_v31 }
 0x522   :  { %v1322_v55 = vpop.f32.mrf.mxu0  ;;  %v1370_v57 = vpop.f32.mrf.mxu1 }
 0x523   :  { %2871 = vpow2.f32 %v1994_v34  ;;  %v1524_v55 = vrot.slane %v3277_v18, 4 }
 0x524   :  { %v2529_v27 = vpop.f32.mrf.mxu0  ;;  %v2549_v28 = vpop.f32.mrf.mxu1  ;;  %2873 = vpow2.f32 %v1995_v33 }
 0x525   :  { %v1526_v27 = vunpack.c.l.bf16 %v1524_v55 }
 0x530   :  { %v2872_v35 = vpop.eup %2871 }
 0x531   :  { %v1330_v36 = vadd.f32 1.0, %v2872_v35  ;;  %v2874_v39 = vpop.eup %2873 }
 0x532   :  { %v1381_v45 = vadd.f32 1.0, %v2874_v39 }
 0x533   :  { %2875 = vrcp.f32 %v1330_v36 }
 0x53e   :  { %v1418_v38 = vpop.f32.mrf.mxu0 }
 0x53f   :  { %v1419_v40 = vadd.f32 %v3288_v10, %v1418_v38 }
 0x540   :  { %v2876_v41 = vpop.eup %2875  ;;  %v2568_v42 = vpop.f32.mrf.mxu0 }
 0x541   :  { %v1424_v43 = vmul.f32 %v2876_v41, %v1419_v40  ;;  %v1575_v42 = vunpack.c.h.bf16 %v3577_v37 }
 0x542   :  { %v1421_v44 = vpop.f32.mrf.mxu0 }
 0x543   :  { %v1426_v56 = vadd.f32 %v1425_v14, %v1424_v43 }
 0x544   :  { %v2569_v47 = vpop.f32.mrf.mxu0 }
 0x545   :  { %2877 = vtanh.f32 %v1426_v56 }
 0x546   :  { %2879 = vrcp.f32 %v1381_v45 }
 0x552   :  { %v2878_v59 = vpop.eup %2877 }
 0x553   :  { %v1428_v60 = vsub.f32 %v3485_v13, %v2878_v59  ;;  %v2880_v0 = vpop.eup %2879  ;;  %v1475_v13 = vunpack.c.l.bf16 %v3277_v18 }
 0x555   :  { %v1429_v1 = vmul.f32 %v2880_v0, %v1428_v60 }
 0x557   :  { %v3582_v2 = vadd.f32 %v2878_v59, %v1429_v1 }
 0x559   :  { %v1431_v3 = vpack.c.bf16 %v3582_v2, %v3582_v2 }
 0x55b   :  { %1432 = vst [vmem:[#allocation10 + $0x10] sm:$0xf] %v1431_v3  ;;  %2587 = vmatmul.mubr.bf16.vlgmr.msra.gmra.mxu1 %v1431_v3  ;;  %2607 = vmatmul.mubr.bf16.vlgmr.msra.gmra.mxu0 %v1431_v3 }
 0x55c   :  { %2611 = vmatpush3.bf16.msra.mxu1 %v3586_v4  ;;  %2626 = vmatprep.mubr.msk.bf16.mxu1 %vm3053_vm0, %v3052_v29 }
 0x55d   :  { %2612 = vmatprep.subr.bf16.mxu1 %v3052_v29  ;;  %2631 = vmatpush3.bf16.msra.mxu0 %v3493_v11 }
 0x55e   :  { %2632 = vmatprep.subr.bf16.mxu0 %v3052_v29  ;;  %2646 = vmatprep.mubr.msk.bf16.mxu0 %vm3053_vm0, %v3052_v29 }
 0x560   :  { %2613 = vmatpush3.bf16.msra.mxu1 %v3596_v7 }
 0x561   :  { %2614 = vmatprep.subr.bf16.mxu1 %v3052_v29  ;;  %2633 = vmatpush3.bf16.msra.mxu0 %v3501_v16 }
 0x562   :  { %2634 = vmatprep.subr.bf16.mxu0 %v3052_v29 }
 0x564   :  { %2615 = vmatpush3.bf16.msra.mxu1 %v3602_v5 }
 0x565   :  { %2616 = vmatprep.subr.bf16.mxu1 %v3052_v29  ;;  %2635 = vmatpush3.bf16.msra.mxu0 %v3507_v46 }
 0x566   :  { %2636 = vmatprep.subr.bf16.mxu0 %v3052_v29 }
 0x568   :  { %2617 = vmatpush3.bf16.msra.mxu1 %v3608_v62 }
 0x569   :  { %2618 = vmatprep.subr.bf16.mxu1 %v3052_v29  ;;  %2637 = vmatpush3.bf16.msra.mxu0 %v3513_v48 }
 0x56a   :  { %2638 = vmatprep.subr.bf16.mxu0 %v3052_v29 }
 0x56c   :  { %2619 = vmatpush3.bf16.msra.mxu1 %v3614_v6 }
 0x56d   :  { %2620 = vmatprep.subr.bf16.mxu1 %v3052_v29  ;;  %2639 = vmatpush3.bf16.msra.mxu0 %v3519_v49 }
 0x56e   :  { %2640 = vmatprep.subr.bf16.mxu0 %v3052_v29 }
 0x570   :  { %2621 = vmatpush3.bf16.msra.mxu1 %v3620_v63 }
 0x571   :  { %2622 = vmatprep.subr.bf16.mxu1 %v3052_v29  ;;  %2641 = vmatpush3.bf16.msra.mxu0 %v3525_v50 }
 0x572   :  { %2642 = vmatprep.subr.bf16.mxu0 %v3052_v29 }
 0x574   :  { %2623 = vmatpush3.bf16.msra.mxu1 %v3626_v8 }
 0x575   :  { %2624 = vmatprep.subr.bf16.mxu1 %v3052_v29  ;;  %2643 = vmatpush3.bf16.msra.mxu0 %v3531_v51 }
 0x576   :  { %2644 = vmatprep.subr.bf16.mxu0 %v3052_v29 }
 0x578   :  { %2625 = vmatpush3.bf16.msra.mxu1 %v3632_v9 }
 0x579   :  { %2650 = vmatprep.subr.bf16.mxu1 %v3052_v29  ;;  %2645 = vmatpush3.bf16.msra.mxu0 %v3537_v52 }
 0x57a   :  { %2670 = vmatprep.subr.bf16.mxu0 %v3052_v29 }
 0x57b   :  { %2627 = vmatmul.mubr.bf16.vlgmr.msra.gmra.mxu1 %v1431_v3 }
 0x57c   :  { %2651 = vmatpush3.bf16.msra.mxu1 %v3541_v53  ;;  %2666 = vmatprep.mubr.msk.bf16.mxu1 %vm3053_vm0, %v3052_v29 }
 0x57d   :  { %2652 = vmatprep.subr.bf16.mxu1 %v3052_v29 }
 0x580   :  { %2653 = vmatpush3.bf16.msra.mxu1 %v3547_v17 }
 0x581   :  { %2654 = vmatprep.subr.bf16.mxu1 %v3052_v29 }
 0x584   :  { %2655 = vmatpush3.bf16.msra.mxu1 %v3551_v54 }
 0x585   :  { %2656 = vmatprep.subr.bf16.mxu1 %v3052_v29 }
 0x588   :  { %2657 = vmatpush3.bf16.msra.mxu1 %v3555_v61 }
 0x589   :  { %2658 = vmatprep.subr.bf16.mxu1 %v3052_v29 }
 0x58c   :  { %2659 = vmatpush3.bf16.msra.mxu1 %v3559_v19 }
 0x58d   :  { %2660 = vmatprep.subr.bf16.mxu1 %v3052_v29 }
 0x590   :  { %2661 = vmatpush3.bf16.msra.mxu1 %v3563_v20 }
 0x591   :  { %2662 = vmatprep.subr.bf16.mxu1 %v3052_v29 }
 0x594   :  { %2663 = vmatpush3.bf16.msra.mxu1 %v3567_v21 }
 0x595   :  { %2664 = vmatprep.subr.bf16.mxu1 %v3052_v29 }
 0x598   :  { %2665 = vmatpush3.bf16.msra.mxu1 %v3571_v58 }
 0x599   :  { %2690 = vmatprep.subr.bf16.mxu1 %v3052_v29 }
 0x61b   :  { %v1469_v15 = vpop.f32.mrf.mxu1  ;;  %v1517_v23 = vpop.f32.mrf.mxu0 }
 0x61c   :  { %v1476_v22 = vadd.f32 %v1475_v13, %v1469_v15  ;;  %v1527_v28 = vadd.f32 %v1526_v27, %v1517_v23  ;;  %v2935_v13 = vld [vmem:[%s3756_s4] ss:$0 sm:$0xff]  ;;  %s3055_s4 = smov [#allocation11]  }
 0x61d   :  { %v2588_v24 = vpop.f32.mrf.mxu1  ;;  %v2608_v25 = vpop.f32.mrf.mxu0  ;;  %s1903_s18 = sshll.u32 %s3055_s4, 4  ;;  %s1904_s18 = int_to_ptr.vmem [resolvable:$true] %s1903_s18 }
 0x61e   :  { %v1996_v26 = vmul.f32 -1.442695, %v1476_v22  ;;  %v1997_v30 = vmul.f32 -1.442695, %v1527_v28  ;;  %s2996_s21 = scalar_lea.vmem %s1904_s18, 128  ;;  %p3001_p2 = scmp.lt.s32.totalorder %s1904_s18, %s1904_s18 }
 0x61f   :  { %v1472_v32 = vpop.f32.mrf.mxu1  ;;  %v1520_v34 = vpop.f32.mrf.mxu0  ;;  %p2997_p1 = scmp.ne.s32.totalorder %s1904_s18, %s2996_s21  ;;  %p3002_p3 = scmp.lt.s32.totalorder %s2996_s21, %s2996_s21 }
 0x620   :  { %2881 = vpow2.f32 %v1996_v26 }
 0x621   :  { %v2589_v57 = vpop.f32.mrf.mxu1  ;;  %v2609_v12 = vpop.f32.mrf.mxu0  ;;  %2883 = vpow2.f32 %v1997_v30  ;;  %p3003_p4 = por %p3002_p3, %p3001_p2 }
 0x623   :  { %p3004_p5 = pnand %p3003_p4, %p2997_p1 }
 0x62d   :  { %v2882_v31 = vpop.eup %2881 }
 0x62e   :  { %v1480_v33 = vadd.f32 1.0, %v2882_v31  ;;  %v2884_v36 = vpop.eup %2883 }
 0x62f   :  { %v1531_v18 = vadd.f32 1.0, %v2884_v36 }
 0x630   :  { %2885 = vrcp.f32 %v1480_v33 }
 0x63b   :  { %v1568_v35 = vpop.f32.mrf.mxu1 }
 0x63c   :  { %v1569_v38 = vadd.f32 %v3288_v10, %v1568_v35 }
 0x63d   :  { %v2886_v39 = vpop.eup %2885  ;;  %v2628_v40 = vpop.f32.mrf.mxu1 }
 0x63e   :  { %v1574_v41 = vmul.f32 %v2886_v39, %v1569_v38 }
 0x63f   :  { %v1571_v43 = vpop.f32.mrf.mxu1 }
 0x640   :  { %v1576_v14 = vadd.f32 %v1575_v42, %v1574_v41 }
 0x641   :  { %v2629_v44 = vpop.f32.mrf.mxu1 }
 0x642   :  { %2887 = vtanh.f32 %v1576_v14 }
 0x643   :  { %2889 = vrcp.f32 %v1531_v18 }
 0x64f   :  { %v2888_v45 = vpop.eup %2887 }
 0x650   :  { %v1578_v56 = vsub.f32 %v3582_v2, %v2888_v45  ;;  %v2890_v47 = vpop.eup %2889 }
 0x652   :  { %v1579_v59 = vmul.f32 %v2890_v47, %v1578_v56 }
 0x654   :  { %v3661_v60 = vadd.f32 %v2888_v45, %v1579_v59 }
 0x656   :  { %v1581_v10 = vpack.c.bf16 %v3661_v60, %v3661_v60 }
 0x658   :  { %1582 = vst [vmem:[#allocation10 + $0x14] sm:$0xf] %v1581_v10  ;;  %2647 = vmatmul.mubr.bf16.vlgmr.msra.gmra.mxu0 %v1581_v10  ;;  %2667 = vmatmul.mubr.bf16.vlgmr.msra.gmra.mxu1 %v1581_v10 }
 0x659   :  { %2671 = vmatpush3.bf16.msra.mxu0 %v3586_v4  ;;  %2686 = vmatprep.mubr.msk.bf16.mxu0 %vm3053_vm0, %v3052_v29 }
 0x65a   :  { %2672 = vmatprep.subr.bf16.mxu0 %v3052_v29  ;;  %2691 = vmatpush3.bf16.msra.mxu1 %v3493_v11  ;;  %v1583_v11 = vld [vmem:[#allocation3 + $0x48] sm:$0xff] }
 0x65b   :  { %2692 = vmatprep.subr.bf16.mxu1 %v3052_v29  ;;  %2706 = vmatprep.mubr.msk.bf16.mxu1 %vm3053_vm0, %v3052_v29 }
 0x65d   :  { %2673 = vmatpush3.bf16.msra.mxu0 %v3596_v7 }
 0x65e   :  { %2674 = vmatprep.subr.bf16.mxu0 %v3052_v29  ;;  %2693 = vmatpush3.bf16.msra.mxu1 %v3501_v16  ;;  %v1625_v16 = vunpack.c.l.bf16 %v1583_v11 }
 0x65f   :  { %2694 = vmatprep.subr.bf16.mxu1 %v3052_v29 }
 0x661   :  { %2675 = vmatpush3.bf16.msra.mxu0 %v3602_v5 }
 0x662   :  { %2676 = vmatprep.subr.bf16.mxu0 %v3052_v29  ;;  %2695 = vmatpush3.bf16.msra.mxu1 %v3507_v46 }
 0x663   :  { %2696 = vmatprep.subr.bf16.mxu1 %v3052_v29 }
 0x665   :  { %2677 = vmatpush3.bf16.msra.mxu0 %v3608_v62 }
 0x666   :  { %2678 = vmatprep.subr.bf16.mxu0 %v3052_v29  ;;  %2697 = vmatpush3.bf16.msra.mxu1 %v3513_v48 }
 0x667   :  { %2698 = vmatprep.subr.bf16.mxu1 %v3052_v29 }
 0x669   :  { %2679 = vmatpush3.bf16.msra.mxu0 %v3614_v6 }
 0x66a   :  { %2680 = vmatprep.subr.bf16.mxu0 %v3052_v29  ;;  %2699 = vmatpush3.bf16.msra.mxu1 %v3519_v49 }
 0x66b   :  { %2700 = vmatprep.subr.bf16.mxu1 %v3052_v29 }
 0x66d   :  { %2681 = vmatpush3.bf16.msra.mxu0 %v3620_v63 }
 0x66e   :  { %2682 = vmatprep.subr.bf16.mxu0 %v3052_v29  ;;  %2701 = vmatpush3.bf16.msra.mxu1 %v3525_v50 }
 0x66f   :  { %2702 = vmatprep.subr.bf16.mxu1 %v3052_v29 }
 0x671   :  { %2683 = vmatpush3.bf16.msra.mxu0 %v3626_v8 }
 0x672   :  { %2684 = vmatprep.subr.bf16.mxu0 %v3052_v29  ;;  %2703 = vmatpush3.bf16.msra.mxu1 %v3531_v51 }
 0x673   :  { %2704 = vmatprep.subr.bf16.mxu1 %v3052_v29 }
 0x675   :  { %2685 = vmatpush3.bf16.msra.mxu0 %v3632_v9 }
 0x676   :  { %2710 = vmatprep.subr.bf16.mxu0 %v3052_v29  ;;  %2705 = vmatpush3.bf16.msra.mxu1 %v3537_v52 }
 0x677   :  { %2730 = vmatprep.subr.bf16.mxu1 %v3052_v29 }
 0x678   :  { %2687 = vmatmul.mubr.bf16.vlgmr.msra.gmra.mxu0 %v1581_v10 }
 0x679   :  { %2711 = vmatpush3.bf16.msra.mxu0 %v3541_v53  ;;  %2726 = vmatprep.mubr.msk.bf16.mxu0 %vm3053_vm0, %v3052_v29 }
 0x67a   :  { %2712 = vmatprep.subr.bf16.mxu0 %v3052_v29 }
 0x67d   :  { %2713 = vmatpush3.bf16.msra.mxu0 %v3547_v17 }
 0x67e   :  { %2714 = vmatprep.subr.bf16.mxu0 %v3052_v29 }
 0x681   :  { %2715 = vmatpush3.bf16.msra.mxu0 %v3551_v54  ;;  %v1674_v54 = vrot.slane %v1583_v11, 4 }
 0x682   :  { %2716 = vmatprep.subr.bf16.mxu0 %v3052_v29 }
 0x685   :  { %2717 = vmatpush3.bf16.msra.mxu0 %v3555_v61 }
 0x686   :  { %2718 = vmatprep.subr.bf16.mxu0 %v3052_v29 }
 0x689   :  { %2719 = vmatpush3.bf16.msra.mxu0 %v3559_v19 }
 0x68a   :  { %2720 = vmatprep.subr.bf16.mxu0 %v3052_v29 }
 0x68d   :  { %2721 = vmatpush3.bf16.msra.mxu0 %v3563_v20  ;;  %v1676_v20 = vunpack.c.l.bf16 %v1674_v54 }
 0x68e   :  { %2722 = vmatprep.subr.bf16.mxu0 %v3052_v29 }
 0x691   :  { %2723 = vmatpush3.bf16.msra.mxu0 %v3567_v21 }
 0x692   :  { %2724 = vmatprep.subr.bf16.mxu0 %v3052_v29 }
 0x695   :  { %2725 = vmatpush3.bf16.msra.mxu0 %v3571_v58  ;;  %v3718_v58 = vld [vmem:[#allocation3 + $0x50] ss:$12 sps:$4 sm:$0xff]  }
 0x696   :  { %v1725_v25 = vunpack.c.l.bf16 %v3718_v58  ;;  %v1875_v59 = vunpack.c.h.bf16 %v3718_v58 }
 0x718   :  { %v1619_v46 = vpop.f32.mrf.mxu0  ;;  %v1667_v48 = vpop.f32.mrf.mxu1 }
 0x719   :  { %v1626_v49 = vadd.f32 %v1625_v16, %v1619_v46  ;;  %v1677_v21 = vadd.f32 %v1676_v20, %v1667_v48 }
 0x71a   :  { %v2648_v50 = vpop.f32.mrf.mxu0  ;;  %v2668_v51 = vpop.f32.mrf.mxu1 }
 0x71b   :  { %v1998_v52 = vmul.f32 -1.442695, %v1626_v49  ;;  %v1999_v37 = vmul.f32 -1.442695, %v1677_v21 }
 0x71c   :  { %v1622_v53 = vpop.f32.mrf.mxu0  ;;  %v1670_v17 = vpop.f32.mrf.mxu1 }
 0x71d   :  { %2891 = vpow2.f32 %v1998_v52 }
 0x71e   :  { %v2649_v61 = vpop.f32.mrf.mxu0  ;;  %v2669_v19 = vpop.f32.mrf.mxu1  ;;  %2893 = vpow2.f32 %v1999_v37 }
 0x72a   :  { %v2892_v0 = vpop.eup %2891 }
 0x72b   :  { %v1630_v1 = vadd.f32 1.0, %v2892_v0  ;;  %v2894_v3 = vpop.eup %2893 }
 0x72c   :  { %v1681_v32 = vadd.f32 1.0, %v2894_v3 }
 0x72d   :  { %2895 = vrcp.f32 %v1630_v1 }
 0x738   :  { %v1718_v2 = vpop.f32.mrf.mxu0 }
 0x739   :  { %v1719_v15 = vadd.f32 %v2935_v13, %v1718_v2 }
 0x73a   :  { %v2896_v23 = vpop.eup %2895  ;;  %v2688_v22 = vpop.f32.mrf.mxu0 }
 0x73b   :  { %v1724_v24 = vmul.f32 %v2896_v23, %v1719_v15 }
 0x73c   :  { %v1721_v26 = vpop.f32.mrf.mxu0 }
 0x73d   :  { %v1726_v34 = vadd.f32 %v1725_v25, %v1724_v24 }
 0x73e   :  { %v2689_v55 = vpop.f32.mrf.mxu0 }
 0x73f   :  { %2897 = vtanh.f32 %v1726_v34 }
 0x740   :  { %2899 = vrcp.f32 %v1681_v32 }
 0x74c   :  { %v2898_v57 = vpop.eup %2897 }
 0x74d   :  { %v1728_v12 = vsub.f32 %v3661_v60, %v2898_v57  ;;  %v2900_v27 = vpop.eup %2899 }
 0x74f   :  { %v1729_v28 = vmul.f32 %v2900_v27, %v1728_v12 }
 0x751   :  { %v1730_v30 = vadd.f32 %v2898_v57, %v1729_v28 }
 0x753   :  { %v1731_v31 = vpack.c.bf16 %v1730_v30, %v1730_v30 }
 0x755   :  { %1732 = vst [vmem:[#allocation10 + $0x18] sm:$0xf] %v1731_v31  ;;  %2707 = vmatmul.mubr.bf16.vlgmr.msra.gmra.mxu1 %v1731_v31  ;;  %2727 = vmatmul.mubr.bf16.vlgmr.msra.gmra.mxu0 %v1731_v31 }
 0x756   :  { %2731 = vmatpush3.bf16.msra.mxu1 %v3586_v4  ;;  %2746 = vmatprep.mubr.msk.bf16.mxu1 %vm3053_vm0, %v3052_v29  ;;  %v1733_v4 = vld [vmem:[#allocation3 + $0x54] sm:$0xff] }
 0x757   :  { %2732 = vmatprep.subr.bf16.mxu1 %v3052_v29 }
 0x75a   :  { %2733 = vmatpush3.bf16.msra.mxu1 %v3596_v7  ;;  %v1775_v7 = vunpack.c.l.bf16 %v1733_v4 }
 0x75b   :  { %2734 = vmatprep.subr.bf16.mxu1 %v3052_v29 }
 0x75e   :  { %2735 = vmatpush3.bf16.msra.mxu1 %v3602_v5 }
 0x75f   :  { %2736 = vmatprep.subr.bf16.mxu1 %v3052_v29 }
 0x762   :  { %2737 = vmatpush3.bf16.msra.mxu1 %v3608_v62 }
 0x763   :  { %2738 = vmatprep.subr.bf16.mxu1 %v3052_v29 }
 0x766   :  { %2739 = vmatpush3.bf16.msra.mxu1 %v3614_v6 }
 0x767   :  { %2740 = vmatprep.subr.bf16.mxu1 %v3052_v29 }
 0x76a   :  { %2741 = vmatpush3.bf16.msra.mxu1 %v3620_v63  ;;  %v1824_v63 = vrot.slane %v1733_v4, 4 }
 0x76b   :  { %2742 = vmatprep.subr.bf16.mxu1 %v3052_v29 }
 0x76e   :  { %2743 = vmatpush3.bf16.msra.mxu1 %v3626_v8  ;;  %v1826_v8 = vunpack.c.l.bf16 %v1824_v63 }
 0x76f   :  { %2744 = vmatprep.subr.bf16.mxu1 %v3052_v29 }
 0x772   :  { %2745 = vmatpush3.bf16.msra.mxu1 %v3632_v9 }
 0x775   :  { %2747 = vmatmul.mubr.bf16.vlgmr.msra.gmra.mxu1 %v1731_v31 }
 0x815   :  { %v1769_v5 = vpop.f32.mrf.mxu1  ;;  %v1817_v62 = vpop.f32.mrf.mxu0 }
 0x816   :  { %v1776_v33 = vadd.f32 %v1775_v7, %v1769_v5  ;;  %v1827_v42 = vadd.f32 %v1826_v8, %v1817_v62 }
 0x817   :  { %v2708_v35 = vpop.f32.mrf.mxu1  ;;  %v2728_v6 = vpop.f32.mrf.mxu0 }
 0x818   :  { %v2000_v36 = vmul.f32 -1.442695, %v1776_v33  ;;  %v2001_v29 = vmul.f32 -1.442695, %v1827_v42 }
 0x819   :  { %v1772_v38 = vpop.f32.mrf.mxu1  ;;  %v1820_v39 = vpop.f32.mrf.mxu0 }
 0x81a   :  { %2901 = vpow2.f32 %v2000_v36 }
 0x81b   :  { %v2709_v40 = vpop.f32.mrf.mxu1  ;;  %v2729_v41 = vpop.f32.mrf.mxu0  ;;  %2903 = vpow2.f32 %v2001_v29 }
 0x827   :  { %v2902_v43 = vpop.eup %2901 }
 0x828   :  { %v1780_v9 = vadd.f32 1.0, %v2902_v43  ;;  %v2904_v14 = vpop.eup %2903 }
 0x829   :  { %v1831_v10 = vadd.f32 1.0, %v2904_v14 }
 0x82a   :  { %2905 = vrcp.f32 %v1780_v9 }
 0x835   :  { %v1868_v18 = vpop.f32.mrf.mxu1 }
 0x836   :  { %v1869_v44 = vadd.f32 %v2935_v13, %v1868_v18 }
 0x837   :  { %v2906_v45 = vpop.eup %2905  ;;  %v2748_v56 = vpop.f32.mrf.mxu1 }
 0x838   :  { %v1874_v47 = vmul.f32 %v2906_v45, %v1869_v44 }
 0x839   :  { %v1871_v60 = vpop.f32.mrf.mxu1 }
 0x83a   :  { %v1876_v11 = vadd.f32 %v1875_v59, %v1874_v47 }
 0x83b   :  { %v2749_v16 = vpop.f32.mrf.mxu1 }
 0x83c   :  { %2907 = vtanh.f32 %v1876_v11 }
 0x83d   :  { %2909 = vrcp.f32 %v1831_v10 }
 0x849   :  { %v2908_v46 = vpop.eup %2907 }
 0x84a   :  { %v1878_v48 = vsub.f32 %v1730_v30, %v2908_v46  ;;  %v2910_v49 = vpop.eup %2909 }
 0x84c   :  { %v1879_v50 = vmul.f32 %v2910_v49, %v1878_v48 }
 0x84e   :  { %v1880_v51 = vadd.f32 %v2908_v46, %v1879_v50 }
 0x850   :  { %v1881_v52 = vpack.c.bf16 %v1880_v51, %v1880_v51  ;;  %1884 = vst [vmem:[#allocation11] sm:$0xff] %v1880_v51 }
 0x851   :  { %3007 = shalt.err (!%p3004_p5)
}
 0x852   :  { %1906 = dma.vmem_to_hbm [thread:$0]  %s1904_s18, 128, %s3758_s6, [#allocation12]   ;;  %1882 = vst [vmem:[#allocation10 + $0x1c] sm:$0xf] %v1881_v52 }
 0x853   :  { %s3016_s24 = scalar_lea.vmem %s1891_s20, 512  ;;  %p3021_p7 = scmp.lt.s32.totalorder %s1891_s20, %s1891_s20 }
 0x854   :  { %p3017_p6 = scmp.ne.s32.totalorder %s1891_s20, %s3016_s24  ;;  %p3022_p8 = scmp.lt.s32.totalorder %s3016_s24, %s3016_s24 }
 0x856   :  { %p3023_p9 = por %p3022_p8, %p3021_p7 }
 0x858   :  { %p3024_p10 = pnand %p3023_p9, %p3017_p6 }
 0x85a   :  { %3027 = shalt.err (!%p3024_p10)
}
 0x85b   :  { %1896 = dma.vmem_to_hbm [thread:$0]  %s1891_s20, 512, %s3757_s5, [#allocation6], %s3048_s7, %s3048_s7, %s3049_s8  }
 0x85c   :  { %3040 = dma.done.wait [#allocation6], 512  }
 0x85d   :  { %3041 = vsyncadd [#allocation6], 4294966784 }
 0x85e   :  { %3042 = dma.done.wait [#allocation12], 128  }
 0x85f   :  { %3043 = vsyncadd [#allocation12], 4294967168 }
 0x860   :  { %1913 = vsyncpa [#allocation5], 1 }
 0x861   :  { %1914 = vsyncpa [#allocation8], 1 }
 0x862   :  { %1915 = vsyncpa [#allocation6], 1 }
 0x863   :  { %1916 = vsyncpa [#allocation12], 1 }

</bundles_post_ra>
